<compile_context>
chip_gen: v5e
topology: v5e:2x2
jax: 0.10.0
libtpu: 0.0.40
codegen_flags: <defaults>
</compile_context>

<pallas_src>
import functools

import jax
import jax.numpy as jnp
from jax import lax
from jax.experimental import pallas as pl
from jax.experimental.pallas import tpu as pltpu


# ---------------------------------------------------------------------------
# Hardware-aware sizing.
# ---------------------------------------------------------------------------
def _tpu_vmem_bytes():
    try:
        info = pltpu.get_tpu_info()
        return int(getattr(info, "vmem_capacity_bytes", 64 * 2**20))
    except Exception:
        return 64 * 2**20            # conservative (v7x-sized) fallback


_VMEM_BYTES = _tpu_vmem_bytes()
_SMALL_VMEM = _VMEM_BYTES <= 80 * 2**20            # v7x: 64 MiB per TensorCore
_DIST_TM_CAP = 256
_DIST_TN_CAP = 2048 if _SMALL_VMEM else 4096       # bigger output tiles on v5e/v6e
_CONV_VMEM_BUDGET = (6 if _SMALL_VMEM else 12) * 2**20
_VMEM_LIMIT = int(min(_VMEM_BYTES * 3 // 4, 96 * 2**20))


def _divisor_tile(n, unit, cap, prefer_multi=False):
    """Largest multiple of `unit` dividing n, <= cap; fallback full extent.

    prefer_multi keeps >=2 grid steps along the axis when cheaply possible
    (v7x megacore)."""
    best = None
    for t in range(unit, min(n, cap) + 1, unit):
        if n % t == 0:
            best = t
    if best is None:
        return n
    if prefer_multi and best == n and n % (2 * unit) == 0:
        best = n // 2
    return best


# ---------------------------------------------------------------------------
# Pallas kernel 1: farthest point sampling (one batch segment per grid step).
# ---------------------------------------------------------------------------
def _fps_kernel(pos_ref, out_ref, dist_ref):
    # pos_ref: (1, 3, Ns) f32; out_ref: (1, 8, S) int32; dist_ref: (1, Ns) f32.
    Ns = pos_ref.shape[2]
    S = out_ref.shape[2]
    pos = pos_ref[0]                                            # (3, Ns)
    lane = lax.broadcasted_iota(jnp.int32, (1, Ns), 1)          # (1, Ns)
    sel_lane = lax.broadcasted_iota(jnp.int32, (8, S), 1)       # (8, S)

    dist_ref[...] = jnp.full((1, Ns), 1e30, jnp.float32)
    # TODO(synk): torch_geometric fps uses a random start; deterministic
    # start at segment-local index 0 is used here.
    out_ref[0] = jnp.zeros((8, S), jnp.int32)

    def body(i, prev):
        onehot = lane == prev                                   # (1, Ns)
        p = jnp.sum(jnp.where(onehot, pos, 0.0), axis=1, keepdims=True)   # (3,1)
        d = jnp.sum((pos - p) ** 2, axis=0, keepdims=True)                # (1,Ns)
        nd = jnp.minimum(dist_ref[...], d)
        dist_ref[...] = nd
        mx = jnp.max(nd, axis=1, keepdims=True)                 # (1, 1)
        cand = jnp.where(nd >= mx, lane, jnp.int32(Ns))
        nxt = jnp.min(cand, axis=1, keepdims=True)[0, 0].astype(jnp.int32)
        out_ref[0] = jnp.where(sel_lane == i, nxt, out_ref[0])
        return nxt

    lax.fori_loop(1, S, body, jnp.int32(0))


def fps_pallas(pos, num_batches, n_sample):
    N = pos.shape[0]
    Ns = N // num_batches
    pos_t = pos.reshape(num_batches, Ns, 3).transpose(0, 2, 1)  # (B, 3, Ns)
    idx_b = pl.pallas_call(
        _fps_kernel,
        out_shape=jax.ShapeDtypeStruct((num_batches, 8, n_sample), jnp.int32),
        grid=(num_batches,),
        in_specs=[pl.BlockSpec((1, 3, Ns), lambda b: (b, 0, 0))],
        out_specs=pl.BlockSpec((1, 8, n_sample), lambda b: (b, 0, 0)),
        scratch_shapes=[pltpu.VMEM((1, Ns), jnp.float32)],
        compiler_params=pltpu.CompilerParams(
            dimension_semantics=("parallel",)),
    )(pos_t)
    seg_idx = idx_b[:, 0, :]                                    # (B, n_sample)
    offsets = (jnp.arange(num_batches, dtype=jnp.int32) * Ns)[:, None]
    return (seg_idx + offsets).reshape(-1)                      # global indices


# ---------------------------------------------------------------------------
# Pallas kernel 2: radius-selection keys (exact f32 VPU distance + batch mask).
# key[m, j] = j if |c_m - p_j|^2 <= r^2 and same batch, else N.
# ---------------------------------------------------------------------------
def _radius_key_kernel(pc_ref, bc_ref, pa_ref, ba_ref, key_ref, *, r2, n_total):
    tn = pa_ref.shape[1]
    j0 = pl.program_id(1) * tn
    pc = pc_ref[...]                                            # (tm, 3)
    pa = pa_ref[...]                                            # (3, tn)
    d = ((pc[:, 0:1] - pa[0:1, :]) ** 2
         + (pc[:, 1:2] - pa[1:2, :]) ** 2
         + (pc[:, 2:3] - pa[2:3, :]) ** 2)                      # (tm, tn) exact f32
    ok = (d <= r2) & (bc_ref[...] == ba_ref[...])               # (tm, tn)
    jidx = j0 + lax.broadcasted_iota(jnp.int32, d.shape, 1)
    key_ref[...] = jnp.where(ok, jidx, jnp.int32(n_total))


def radius_keys(pos_c, batch_c, pos, batch, r):
    M = pos_c.shape[0]
    N = pos.shape[0]
    tm = _divisor_tile(M, 8, _DIST_TM_CAP, prefer_multi=True)
    tn = _divisor_tile(N, 128, _DIST_TN_CAP)
    pa_t = pos.T                                                # (3, N)
    bc = batch_c.astype(jnp.int32).reshape(M, 1)
    ba = batch.astype(jnp.int32).reshape(1, N)
    kern = functools.partial(_radius_key_kernel,
                             r2=float(r) * float(r), n_total=N)
    return pl.pallas_call(
        kern,
        out_shape=jax.ShapeDtypeStruct((M, N), jnp.int32),
        grid=(M // tm, N // tn),
        in_specs=[
            pl.BlockSpec((tm, 3), lambda i, j: (i, 0)),
            pl.BlockSpec((tm, 1), lambda i, j: (i, 0)),
            pl.BlockSpec((3, tn), lambda i, j: (0, j)),
            pl.BlockSpec((1, tn), lambda i, j: (0, j)),
        ],
        out_specs=pl.BlockSpec((tm, tn), lambda i, j: (i, j)),
        compiler_params=pltpu.CompilerParams(
            dimension_semantics=("parallel", "parallel"),
            vmem_limit_bytes=_VMEM_LIMIT),
    )(pos_c, bc, pa_t, ba)


def radius_neighbors(keys, max_k):
    # Up to max_k neighbors within radius per center, first-found by point
    # index (matches torch_geometric.radius "arbitrary up to K" semantics).
    M, N = keys.shape
    neg, order = lax.top_k(-keys, max_k)                # K smallest keys per row
    count = jnp.sum((neg > -N).astype(jnp.int32), axis=1, keepdims=True)
    return order.astype(jnp.int32), count               # (M, K), (M, 1)


# ---------------------------------------------------------------------------
# Pallas kernel 3: PointNetConv MLP tail + running masked max over K chunks.
# h1 = relu(x_j @ w1_x + (pos_j - pos_i) @ w1_pos + b1) is pre-gathered into
# a (M, K, H1) bf16 slab; validity is a prefix of length count[m] along K.
# ---------------------------------------------------------------------------
def _conv_kernel(h1_ref, cnt_ref, w2_ref, b2_ref, w3_ref, b3_ref, o_ref):
    tm, Kc, H1 = h1_ref.shape
    C = o_ref.shape[-1]
    kchunk = pl.program_id(1)

    @pl.when(kchunk == 0)
    def _():
        o_ref[...] = jnp.full(o_ref.shape, -1e30, o_ref.dtype)

    h = jnp.dot(h1_ref[...].reshape(tm * Kc, H1), w2_ref[...],
                preferred_element_type=jnp.float32) + b2_ref[...]
    h = jnp.maximum(h, 0.0).astype(jnp.bfloat16)
    h = jnp.dot(h, w3_ref[...],
                preferred_element_type=jnp.float32) + b3_ref[...]
    h = jnp.maximum(h, 0.0)                                     # (tm*Kc, C)
    h = h.reshape(tm, Kc, C)

    # validity = prefix of length cnt along the (global) K axis; lane broadcast
    # only, no (M, K) mask relayout.
    kpos = kchunk * Kc + lax.broadcasted_iota(jnp.int32, (tm, Kc, 1), 1)
    valid = kpos < cnt_ref[...].reshape(tm, 1, 1)               # (tm, Kc, 1)
    h = jnp.where(valid, h, jnp.float32(-1e30))
    o_ref[...] = jnp.maximum(o_ref[...], jnp.max(h, axis=1))    # running max

    @pl.when(kchunk == pl.num_programs(1) - 1)
    def _():
        o_ref[...] = jnp.where(cnt_ref[...] > 0, o_ref[...], 0.0)


def pointnet_conv(h1, cnt, w2, b2, w3_pad, b3_pad):
    M, K, H1 = h1.shape
    H2 = w2.shape[1]
    C_pad = w3_pad.shape[1]
    assert K % 8 == 0, "max_k must be a multiple of 8 (free in-kernel reshape)"
    Kc = 16 if K % 16 == 0 else 8

    # VMEM-budgeted row tile: ~3 live (tm*Kc, C_pad) f32 temporaries + the
    # double-buffered h1 block must fit comfortably under the scoped limit.
    per_row = (Kc * (C_pad * 4 * 3 + H2 * 4 + H2 * 2 + H1 * 2 * 2)
               + C_pad * 4 * 2)
    cap = max(8, _CONV_VMEM_BUDGET // max(per_row, 1))
    tm = _divisor_tile(M, 8, cap, prefer_multi=True)

    return pl.pallas_call(
        _conv_kernel,
        out_shape=jax.ShapeDtypeStruct((M, C_pad), jnp.float32),
        grid=(M // tm, K // Kc),
        in_specs=[
            pl.BlockSpec((tm, Kc, H1), lambda i, k: (i, k, 0)),
            pl.BlockSpec((tm, 1), lambda i, k: (i, 0)),
            pl.BlockSpec(w2.shape, lambda i, k: (0, 0)),
            pl.BlockSpec(b2.shape, lambda i, k: (0, 0)),
            pl.BlockSpec(w3_pad.shape, lambda i, k: (0, 0)),
            pl.BlockSpec(b3_pad.shape, lambda i, k: (0, 0)),
        ],
        out_specs=pl.BlockSpec((tm, C_pad), lambda i, k: (i, 0)),
        compiler_params=pltpu.CompilerParams(
            dimension_semantics=("parallel", "arbitrary"),
            vmem_limit_bytes=_VMEM_LIMIT),
    )(h1, cnt, w2, b2, w3_pad, b3_pad)


# ---------------------------------------------------------------------------
# SAModule forward (glue in plain JAX: top_k selection, gathers).
# ---------------------------------------------------------------------------
def sa_module_forward(x, pos, batch, mlp_params, *, ratio, r, max_k, num_batches):
    N, C_in = x.shape
    assert N % num_batches == 0, "ragged batches unsupported"
    Ns = N // num_batches
    n_sample = int(Ns * ratio)
    assert n_sample >= 1
    assert max_k % 8 == 0

    # --- fps(pos, batch, ratio) ---
    idx = fps_pallas(pos, num_batches, n_sample)          # (M,)
    M = num_batches * n_sample
    pos_c = pos[idx]                                       # (M, 3)
    batch_c = batch[idx]                                   # (M,)

    # --- radius(pos, pos[idx], r, max_num_neighbors=max_k) ---
    keys = radius_keys(pos_c, batch_c, pos, batch, r)      # (M, N) int32
    nbr_idx, nbr_cnt = radius_neighbors(keys, max_k)       # (M, K), (M, 1)

    # --- PointNetConv((x, x[idx]), (pos, pos[idx]), edge_index) ---
    (w1, b1), (w2, b2), (w3, b3) = mlp_params
    w1_x, w1_pos = w1[:C_in], w1[C_in:C_in + 3]
    C_out = w3.shape[1]

    # First linear layer split + hoisted: per-point part before the gather,
    # per-edge relative-position correction added in the wrapper.
    hx = x @ w1_x                                          # (N, H1)
    rel = pos[nbr_idx] - pos_c[:, None, :]                 # (M, K, 3)
    h1 = hx[nbr_idx] + jnp.einsum('mkd,dh->mkh', rel, w1_pos) + b1
    h1 = jnp.maximum(h1, 0.0).astype(jnp.bfloat16)         # (M, K, H1)

    # Lane-dense output: pad last layer to 128 lanes, slice after the call.
    C_pad = 128 * ((C_out + 127) // 128)
    w3_pad = jnp.pad(w3, ((0, 0), (0, C_pad - C_out))).astype(jnp.bfloat16)
    b3_pad = jnp.pad(b3, ((0, 0), (0, C_pad - C_out)))

    out = pointnet_conv(h1, nbr_cnt,
                        w2.astype(jnp.bfloat16), b2, w3_pad, b3_pad)
    return out[:, :C_out], pos_c, batch_c


def init_mlp(key, dims):
    # nn = MLP(dims) with Linear + ReLU per layer (deterministic synthetic init).
    params = []
    keys = jax.random.split(key, len(dims) - 1)
    for k, din, dout in zip(keys, dims[:-1], dims[1:]):
        w = jax.random.normal(k, (din, dout), jnp.float32) * (1.0 / jnp.sqrt(din))
        b = jnp.zeros((1, dout), jnp.float32)
        params.append((w, b))
    return params


if __name__ == "__main__":
    key = jax.random.PRNGKey(0)
    k1, k2, k3 = jax.random.split(key, 3)

    B, Ns, C_in = 2, 128, 4          # 2 point clouds, 128 points each, 4 feats
    N = B * Ns
    ratio, r, max_k = 0.25, 0.4, 64  # -> M = 64 sampled centers, K = 64 nbrs

    pos = jax.random.uniform(k1, (N, 3), jnp.float32)
    x = jax.random.normal(k2, (N, C_in), jnp.float32)
    batch = jnp.repeat(jnp.arange(B, dtype=jnp.int32), Ns)

    # MLP([C_in + 3, 32, 32, 64]) as in SAModule's local nn.
    mlp_params = init_mlp(k3, [C_in + 3, 32, 32, 64])

    fwd = jax.jit(functools.partial(
        sa_module_forward, ratio=ratio, r=r, max_k=max_k, num_batches=B))
    out_x, out_pos, out_batch = fwd(x, pos, batch, mlp_params)
    jax.block_until_ready((out_x, out_pos, out_batch))

    assert out_x.shape == (64, 64)
    assert out_pos.shape == (64, 3)
    assert out_batch.shape == (64,)
    assert bool(jnp.all(jnp.isfinite(out_x)))
    print("KERNEL_OK")
</pallas_src>

<mosaic_0001>
module attributes {stable_mosaic.version = 11 : i64} {
  func.func @_fps_kernel(%arg0: i32, %arg1: memref<1x3x128xf32, #tpu.memory_space<vmem>>, %arg2: memref<1x8x32xi32, #tpu.memory_space<vmem>>, %arg3: memref<1x128xf32, #tpu.memory_space<vmem>>) attributes {dimension_semantics = [#tpu.dimension_semantics<parallel>], iteration_bounds = array<i64: 2>, scalar_prefetch = 0 : i64, scratch_operands = 1 : i64, tpu.core_type = #tpu.core_type<tc>, window_params = [{transform_indices = @transform_0, window_bounds = array<i64: 1, 3, 128>}, {transform_indices = @transform_1, window_bounds = array<i64: 1, 8, 32>}]} {
    %c0 = arith.constant 0 : index
    %c0_0 = arith.constant 0 : index
    %c0_1 = arith.constant 0 : index
    %0 = vector.load %arg1[%c0, %c0_0, %c0_1] : memref<1x3x128xf32, #tpu.memory_space<vmem>>, vector<1x3x128xf32>
    %1 = vector.shape_cast %0 : vector<1x3x128xf32> to vector<3x128xf32>
    %2 = tpu.iota {dimensions = array<i32: 1>} : vector<1x128xi32>
    %3 = tpu.iota {dimensions = array<i32: 1>} : vector<8x32xi32>
    %cst = arith.constant 1.000000e+30 : f32
    %4 = vector.broadcast %cst : f32 to vector<1x128xf32>
    %c0_2 = arith.constant 0 : index
    %c0_3 = arith.constant 0 : index
    %5 = vector.load %arg3[%c0_2, %c0_3] : memref<1x128xf32, #tpu.memory_space<vmem>>, vector<1x128xf32>
    tpu.vector_store %arg3[%c0_2, %c0_3], %4 {strides = array<i32>} : memref<1x128xf32, #tpu.memory_space<vmem>>, vector<1x128xf32>,
    %c0_i32 = arith.constant 0 : i32
    %6 = vector.broadcast %c0_i32 : i32 to vector<8x32xi32>
    %c0_4 = arith.constant 0 : index
    %c0_5 = arith.constant 0 : index
    %c0_6 = arith.constant 0 : index
    %7 = vector.load %arg2[%c0_4, %c0_5, %c0_6] : memref<1x8x32xi32, #tpu.memory_space<vmem>>, vector<1x8x32xi32>
    %8 = vector.shape_cast %7 : vector<1x8x32xi32> to vector<8x32xi32>
    %9 = vector.shape_cast %6 : vector<8x32xi32> to vector<1x8x32xi32>
    tpu.vector_store %arg2[%c0_4, %c0_5, %c0_6], %9 {strides = array<i32>} : memref<1x8x32xi32, #tpu.memory_space<vmem>>, vector<1x8x32xi32>,
    %c0_i32_7 = arith.constant 0 : i32
    %c1_i32 = arith.constant 1 : i32
    %c31_i32 = arith.constant 31 : i32
    %10 = arith.addi %c1_i32, %c31_i32 : i32
    %c1_i32_8 = arith.constant 1 : i32
    %11 = scf.for %arg4 = %c1_i32 to %10 step %c1_i32_8 iter_args(%arg5 = %c0_i32_7) -> (i32)  : i32 {
      %12 = vector.broadcast %arg5 : i32 to vector<1x128xi32>
      %13 = arith.cmpi eq, %2, %12 : vector<1x128xi32>
      %cst_10 = arith.constant 0.000000e+00 : f32
      %14 = vector.shape_cast %13 : vector<1x128xi1> to vector<1x128xi1>
      %15 = vector.broadcast %14 : vector<1x128xi1> to vector<3x128xi1>
      %16 = vector.broadcast %cst_10 : f32 to vector<3x128xf32>
      %17 = arith.select %15, %1, %16 : vector<3x128xi1>, vector<3x128xf32>
      %cst_11 = arith.constant dense<0.000000e+00> : vector<3xf32>
      %18 = vector.multi_reduction <add>, %17, %cst_11 [1] : vector<3x128xf32> to vector<3xf32>
      %19 = vector.shape_cast %18 : vector<3xf32> to vector<3x1xf32>
      %20 = vector.broadcast %19 : vector<3x1xf32> to vector<3x128xf32>
      %21 = arith.subf %1, %20 : vector<3x128xf32>
      %22 = arith.mulf %21, %21 : vector<3x128xf32>
      %cst_12 = arith.constant dense<0.000000e+00> : vector<128xf32>
      %23 = vector.multi_reduction <add>, %22, %cst_12 [0] : vector<3x128xf32> to vector<128xf32>
      %24 = vector.shape_cast %23 : vector<128xf32> to vector<1x128xf32>
      %c0_13 = arith.constant 0 : index
      %c0_14 = arith.constant 0 : index
      %25 = vector.load %arg3[%c0_13, %c0_14] : memref<1x128xf32, #tpu.memory_space<vmem>>, vector<1x128xf32>
      %26 = arith.minimumf %25, %24 : vector<1x128xf32>
      %c0_15 = arith.constant 0 : index
      %c0_16 = arith.constant 0 : index
      %27 = vector.load %arg3[%c0_15, %c0_16] : memref<1x128xf32, #tpu.memory_space<vmem>>, vector<1x128xf32>
      tpu.vector_store %arg3[%c0_15, %c0_16], %26 {strides = array<i32>} : memref<1x128xf32, #tpu.memory_space<vmem>>, vector<1x128xf32>,
      %cst_17 = arith.constant dense<0xFF800000> : vector<1xf32>
      %28 = vector.multi_reduction <maximumf>, %26, %cst_17 [1] : vector<1x128xf32> to vector<1xf32>
      %29 = vector.shape_cast %28 : vector<1xf32> to vector<1x1xf32>
      %30 = vector.broadcast %29 : vector<1x1xf32> to vector<1x128xf32>
      %31 = arith.cmpf oge, %26, %30 : vector<1x128xf32>
      %c128_i32 = arith.constant 128 : i32
      %32 = vector.broadcast %c128_i32 : i32 to vector<1x128xi32>
      %33 = arith.select %31, %2, %32 : vector<1x128xi1>, vector<1x128xi32>
      %cst_18 = arith.constant dense<2147483647> : vector<1xi32>
      %34 = vector.multi_reduction <minsi>, %33, %cst_18 [1] : vector<1x128xi32> to vector<1xi32>
      %35 = vector.shape_cast %34 : vector<1xi32> to vector<1x1xi32>
      %36 = vector.extract %35[0, 0] : i32 from vector<1x1xi32>
      %37 = vector.broadcast %arg4 : i32 to vector<8x32xi32>
      %38 = arith.cmpi eq, %3, %37 : vector<8x32xi32>
      %c0_19 = arith.constant 0 : index
      %c0_20 = arith.constant 0 : index
      %c0_21 = arith.constant 0 : index
      %39 = vector.load %arg2[%c0_19, %c0_20, %c0_21] : memref<1x8x32xi32, #tpu.memory_space<vmem>>, vector<1x8x32xi32>
      %40 = vector.shape_cast %39 : vector<1x8x32xi32> to vector<8x32xi32>
      %41 = vector.broadcast %36 : i32 to vector<8x32xi32>
      %42 = arith.select %38, %41, %40 : vector<8x32xi1>, vector<8x32xi32>
      %c0_22 = arith.constant 0 : index
      %c0_23 = arith.constant 0 : index
      %c0_24 = arith.constant 0 : index
      %43 = vector.load %arg2[%c0_22, %c0_23, %c0_24] : memref<1x8x32xi32, #tpu.memory_space<vmem>>, vector<1x8x32xi32>
      %44 = vector.shape_cast %43 : vector<1x8x32xi32> to vector<8x32xi32>
      %45 = vector.shape_cast %42 : vector<8x32xi32> to vector<1x8x32xi32>
      tpu.vector_store %arg2[%c0_22, %c0_23, %c0_24], %45 {strides = array<i32>} : memref<1x8x32xi32, #tpu.memory_space<vmem>>, vector<1x8x32xi32>,
      scf.yield %36 : i32
    }
    %c31_i32_9 = arith.constant 31 : i32
    return
  }
  func.func @transform_0(%arg0: i32) -> (i32, i32, i32) {
    %c0_i32 = arith.constant 0 : i32
    %c0_i32_0 = arith.constant 0 : i32
    %c0_i32_1 = arith.constant 0 : i32
    return %arg0, %c0_i32, %c0_i32_0 : i32, i32, i32
  }
  func.func @transform_1(%arg0: i32) -> (i32, i32, i32) {
    %c0_i32 = arith.constant 0 : i32
    %c0_i32_0 = arith.constant 0 : i32
    %c0_i32_1 = arith.constant 0 : i32
    return %arg0, %c0_i32, %c0_i32_0 : i32, i32, i32
  }
}

module attributes {stable_mosaic.version = 11 : i64} {
  func.func @_radius_key_kernel(%arg0: i32, %arg1: i32, %arg2: memref<32x3xf32, #tpu.memory_space<vmem>>, %arg3: memref<32x1xi32, #tpu.memory_space<vmem>>, %arg4: memref<3x256xf32, #tpu.memory_space<vmem>>, %arg5: memref<1x256xi32, #tpu.memory_space<vmem>>, %arg6: memref<32x256xi32, #tpu.memory_space<vmem>>) attributes {dimension_semantics = [#tpu.dimension_semantics<parallel>, #tpu.dimension_semantics<parallel>], iteration_bounds = array<i64: 2, 1>, scalar_prefetch = 0 : i64, scratch_operands = 0 : i64, tpu.core_type = #tpu.core_type<tc>, window_params = [{transform_indices = @transform_0, window_bounds = array<i64: 32, 3>}, {transform_indices = @transform_1, window_bounds = array<i64: 32, 1>}, {transform_indices = @transform_2, window_bounds = array<i64: 3, 256>}, {transform_indices = @transform_3, window_bounds = array<i64: 1, 256>}, {transform_indices = @transform_4, window_bounds = array<i64: 32, 256>}]} {
    %c256_i32 = arith.constant 256 : i32
    %0 = arith.muli %arg1, %c256_i32 : i32
    %c0 = arith.constant 0 : index
    %c0_0 = arith.constant 0 : index
    %1 = vector.load %arg2[%c0, %c0_0] : memref<32x3xf32, #tpu.memory_space<vmem>>, vector<32x3xf32>
    %c0_1 = arith.constant 0 : index
    %c0_2 = arith.constant 0 : index
    %2 = vector.load %arg4[%c0_1, %c0_2] : memref<3x256xf32, #tpu.memory_space<vmem>>, vector<3x256xf32>
    %3 = vector.extract_strided_slice %1 {offsets = [0, 0], sizes = [32, 1], strides = [1, 1]} : vector<32x3xf32> to vector<32x1xf32>
    %4 = vector.extract_strided_slice %2 {offsets = [0, 0], sizes = [1, 256], strides = [1, 1]} : vector<3x256xf32> to vector<1x256xf32>
    %5 = vector.broadcast %3 : vector<32x1xf32> to vector<32x256xf32>
    %6 = vector.broadcast %4 : vector<1x256xf32> to vector<32x256xf32>
    %7 = arith.subf %5, %6 : vector<32x256xf32>
    %8 = arith.mulf %7, %7 : vector<32x256xf32>
    %9 = vector.extract_strided_slice %1 {offsets = [0, 1], sizes = [32, 1], strides = [1, 1]} : vector<32x3xf32> to vector<32x1xf32>
    %10 = vector.extract_strided_slice %2 {offsets = [1, 0], sizes = [1, 256], strides = [1, 1]} : vector<3x256xf32> to vector<1x256xf32>
    %11 = vector.broadcast %9 : vector<32x1xf32> to vector<32x256xf32>
    %12 = vector.broadcast %10 : vector<1x256xf32> to vector<32x256xf32>
    %13 = arith.subf %11, %12 : vector<32x256xf32>
    %14 = arith.mulf %13, %13 : vector<32x256xf32>
    %15 = arith.addf %8, %14 : vector<32x256xf32>
    %16 = vector.extract_strided_slice %1 {offsets = [0, 2], sizes = [32, 1], strides = [1, 1]} : vector<32x3xf32> to vector<32x1xf32>
    %17 = vector.extract_strided_slice %2 {offsets = [2, 0], sizes = [1, 256], strides = [1, 1]} : vector<3x256xf32> to vector<1x256xf32>
    %18 = vector.broadcast %16 : vector<32x1xf32> to vector<32x256xf32>
    %19 = vector.broadcast %17 : vector<1x256xf32> to vector<32x256xf32>
    %20 = arith.subf %18, %19 : vector<32x256xf32>
    %21 = arith.mulf %20, %20 : vector<32x256xf32>
    %22 = arith.addf %15, %21 : vector<32x256xf32>
    %cst = arith.constant 1.600000e-01 : f32
    %23 = vector.broadcast %cst : f32 to vector<32x256xf32>
    %24 = arith.cmpf ole, %22, %23 : vector<32x256xf32>
    %c0_3 = arith.constant 0 : index
    %c0_4 = arith.constant 0 : index
    %25 = vector.load %arg3[%c0_3, %c0_4] : memref<32x1xi32, #tpu.memory_space<vmem>>, vector<32x1xi32>
    %c0_5 = arith.constant 0 : index
    %c0_6 = arith.constant 0 : index
    %26 = vector.load %arg5[%c0_5, %c0_6] : memref<1x256xi32, #tpu.memory_space<vmem>>, vector<1x256xi32>
    %27 = vector.broadcast %25 : vector<32x1xi32> to vector<32x256xi32>
    %28 = vector.broadcast %26 : vector<1x256xi32> to vector<32x256xi32>
    %29 = arith.cmpi eq, %27, %28 : vector<32x256xi32>
    %30 = arith.andi %24, %29 : vector<32x256xi1>
    %31 = tpu.iota {dimensions = array<i32: 1>} : vector<32x256xi32>
    %32 = vector.broadcast %0 : i32 to vector<32x256xi32>
    %33 = arith.addi %32, %31 : vector<32x256xi32>
    %c256_i32_7 = arith.constant 256 : i32
    %34 = vector.broadcast %c256_i32_7 : i32 to vector<32x256xi32>
    %35 = arith.select %30, %33, %34 : vector<32x256xi1>, vector<32x256xi32>
    %c0_8 = arith.constant 0 : index
    %c0_9 = arith.constant 0 : index
    %36 = vector.load %arg6[%c0_8, %c0_9] : memref<32x256xi32, #tpu.memory_space<vmem>>, vector<32x256xi32>
    tpu.vector_store %arg6[%c0_8, %c0_9], %35 {strides = array<i32>} : memref<32x256xi32, #tpu.memory_space<vmem>>, vector<32x256xi32>,
    return
  }
  func.func @transform_0(%arg0: i32, %arg1: i32) -> (i32, i32) {
    %c0_i32 = arith.constant 0 : i32
    %c0_i32_0 = arith.constant 0 : i32
    return %arg0, %c0_i32 : i32, i32
  }
  func.func @transform_1(%arg0: i32, %arg1: i32) -> (i32, i32) {
    %c0_i32 = arith.constant 0 : i32
    %c0_i32_0 = arith.constant 0 : i32
    return %arg0, %c0_i32 : i32, i32
  }
  func.func @transform_2(%arg0: i32, %arg1: i32) -> (i32, i32) {
    %c0_i32 = arith.constant 0 : i32
    %c0_i32_0 = arith.constant 0 : i32
    return %c0_i32, %arg1 : i32, i32
  }
  func.func @transform_3(%arg0: i32, %arg1: i32) -> (i32, i32) {
    %c0_i32 = arith.constant 0 : i32
    %c0_i32_0 = arith.constant 0 : i32
    return %c0_i32, %arg1 : i32, i32
  }
  func.func @transform_4(%arg0: i32, %arg1: i32) -> (i32, i32) {
    %c0_i32 = arith.constant 0 : i32
    return %arg0, %arg1 : i32, i32
  }
}

module attributes {stable_mosaic.version = 11 : i64} {
  func.func @_conv_kernel(%arg0: i32, %arg1: i32, %arg2: memref<32x16x32xbf16, #tpu.memory_space<vmem>>, %arg3: memref<32x1xi32, #tpu.memory_space<vmem>>, %arg4: memref<32x32xbf16, #tpu.memory_space<vmem>>, %arg5: memref<1x32xf32, #tpu.memory_space<vmem>>, %arg6: memref<32x128xbf16, #tpu.memory_space<vmem>>, %arg7: memref<1x128xf32, #tpu.memory_space<vmem>>, %arg8: memref<32x128xf32, #tpu.memory_space<vmem>>) attributes {dimension_semantics = [#tpu.dimension_semantics<parallel>, #tpu.dimension_semantics<arbitrary>], iteration_bounds = array<i64: 2, 4>, scalar_prefetch = 0 : i64, scratch_operands = 0 : i64, tpu.core_type = #tpu.core_type<tc>, window_params = [{transform_indices = @transform_0, window_bounds = array<i64: 32, 16, 32>}, {transform_indices = @transform_1, window_bounds = array<i64: 32, 1>}, {pipeline_mode = #tpu.pipeline_mode<synchronous>, transform_indices = @transform_2, window_bounds = array<i64: 32, 32>}, {pipeline_mode = #tpu.pipeline_mode<synchronous>, transform_indices = @transform_3, window_bounds = array<i64: 1, 32>}, {pipeline_mode = #tpu.pipeline_mode<synchronous>, transform_indices = @transform_4, window_bounds = array<i64: 32, 128>}, {pipeline_mode = #tpu.pipeline_mode<synchronous>, transform_indices = @transform_5, window_bounds = array<i64: 1, 128>}, {transform_indices = @transform_6, window_bounds = array<i64: 32, 128>}]} {
    %c0_i32 = arith.constant 0 : i32
    %0 = arith.cmpi eq, %arg1, %c0_i32 : i32
    %1 = arith.extui %0 : i1 to i32
    %c0_i32_0 = arith.constant 0 : i32
    %2 = arith.cmpi ne, %1, %c0_i32_0 : i32
    scf.if %2 {
      %cst_23 = arith.constant -1.000000e+30 : f32
      %40 = vector.broadcast %cst_23 : f32 to vector<32x128xf32>
      %c0_24 = arith.constant 0 : index
      %c0_25 = arith.constant 0 : index
      %41 = vector.load %arg8[%c0_24, %c0_25] : memref<32x128xf32, #tpu.memory_space<vmem>>, vector<32x128xf32>
      tpu.vector_store %arg8[%c0_24, %c0_25], %40 {strides = array<i32>} : memref<32x128xf32, #tpu.memory_space<vmem>>, vector<32x128xf32>,
    } else {
    }
    %c0 = arith.constant 0 : index
    %c0_1 = arith.constant 0 : index
    %c0_2 = arith.constant 0 : index
    %3 = vector.load %arg2[%c0, %c0_1, %c0_2] : memref<32x16x32xbf16, #tpu.memory_space<vmem>>, vector<32x16x32xbf16>
    %4 = vector.shape_cast %3 : vector<32x16x32xbf16> to vector<512x32xbf16>
    %c0_3 = arith.constant 0 : index
    %c0_4 = arith.constant 0 : index
    %5 = vector.load %arg4[%c0_3, %c0_4] : memref<32x32xbf16, #tpu.memory_space<vmem>>, vector<32x32xbf16>
    %cst = arith.constant dense<0.000000e+00> : vector<512x32xf32>
    %6 = tpu.matmul %4, %5, %cst {dimension_numbers = #tpu.dot_dimension_numbers<[1], [0], [0], [1], [0, 0, 1, 1], [], []>} : vector<512x32xbf16>, vector<32x32xbf16>, vector<512x32xf32> -> vector<512x32xf32>
    %c0_5 = arith.constant 0 : index
    %c0_6 = arith.constant 0 : index
    %7 = vector.load %arg5[%c0_5, %c0_6] : memref<1x32xf32, #tpu.memory_space<vmem>>, vector<1x32xf32>
    %8 = vector.broadcast %7 : vector<1x32xf32> to vector<512x32xf32>
    %9 = arith.addf %6, %8 : vector<512x32xf32>
    %cst_7 = arith.constant 0.000000e+00 : f32
    %10 = vector.broadcast %cst_7 : f32 to vector<512x32xf32>
    %11 = arith.maximumf %9, %10 : vector<512x32xf32>
    %12 = arith.truncf %11 : vector<512x32xf32> to vector<512x32xbf16>
    %c0_8 = arith.constant 0 : index
    %c0_9 = arith.constant 0 : index
    %13 = vector.load %arg6[%c0_8, %c0_9] : memref<32x128xbf16, #tpu.memory_space<vmem>>, vector<32x128xbf16>
    %cst_10 = arith.constant dense<0.000000e+00> : vector<512x128xf32>
    %14 = tpu.matmul %12, %13, %cst_10 {dimension_numbers = #tpu.dot_dimension_numbers<[1], [0], [0], [1], [0, 0, 1, 1], [], []>} : vector<512x32xbf16>, vector<32x128xbf16>, vector<512x128xf32> -> vector<512x128xf32>
    %c0_11 = arith.constant 0 : index
    %c0_12 = arith.constant 0 : index
    %15 = vector.load %arg7[%c0_11, %c0_12] : memref<1x128xf32, #tpu.memory_space<vmem>>, vector<1x128xf32>
    %16 = vector.broadcast %15 : vector<1x128xf32> to vector<512x128xf32>
    %17 = arith.addf %14, %16 : vector<512x128xf32>
    %cst_13 = arith.constant 0.000000e+00 : f32
    %18 = vector.broadcast %cst_13 : f32 to vector<512x128xf32>
    %19 = arith.maximumf %17, %18 : vector<512x128xf32>
    %20 = vector.shape_cast %19 : vector<512x128xf32> to vector<32x16x128xf32>
    %c16_i32 = arith.constant 16 : i32
    %21 = arith.muli %arg1, %c16_i32 : i32
    %22 = tpu.iota {dimensions = array<i32: 1>} : vector<32x16x1xi32>
    %23 = vector.broadcast %21 : i32 to vector<32x16x1xi32>
    %24 = arith.addi %23, %22 : vector<32x16x1xi32>
    %c0_14 = arith.constant 0 : index
    %c0_15 = arith.constant 0 : index
    %25 = vector.load %arg3[%c0_14, %c0_15] : memref<32x1xi32, #tpu.memory_space<vmem>>, vector<32x1xi32>
    %26 = vector.shape_cast %25 : vector<32x1xi32> to vector<32x1x1xi32>
    %27 = vector.broadcast %26 : vector<32x1x1xi32> to vector<32x16x1xi32>
    %28 = arith.cmpi slt, %24, %27 : vector<32x16x1xi32>
    %cst_16 = arith.constant -1.000000e+30 : f32
    %29 = vector.shape_cast %28 : vector<32x16x1xi1> to vector<32x16x1xi1>
    %30 = vector.broadcast %29 : vector<32x16x1xi1> to vector<32x16x128xi1>
    %31 = vector.broadcast %cst_16 : f32 to vector<32x16x128xf32>
    %32 = arith.select %30, %20, %31 : vector<32x16x128xi1>, vector<32x16x128xf32>
    %c0_17 = arith.constant 0 : index
    %c0_18 = arith.constant 0 : index
    %33 = vector.load %arg8[%c0_17, %c0_18] : memref<32x128xf32, #tpu.memory_space<vmem>>, vector<32x128xf32>
    %cst_19 = arith.constant dense<0xFF800000> : vector<32x128xf32>
    %34 = vector.multi_reduction <maximumf>, %32, %cst_19 [1] : vector<32x16x128xf32> to vector<32x128xf32>
    %35 = arith.maximumf %33, %34 : vector<32x128xf32>
    %c0_20 = arith.constant 0 : index
    %c0_21 = arith.constant 0 : index
    %36 = vector.load %arg8[%c0_20, %c0_21] : memref<32x128xf32, #tpu.memory_space<vmem>>, vector<32x128xf32>
    tpu.vector_store %arg8[%c0_20, %c0_21], %35 {strides = array<i32>} : memref<32x128xf32, #tpu.memory_space<vmem>>, vector<32x128xf32>,
    %c3_i32 = arith.constant 3 : i32
    %37 = arith.cmpi eq, %arg1, %c3_i32 : i32
    %38 = arith.extui %37 : i1 to i32
    %c0_i32_22 = arith.constant 0 : i32
    %39 = arith.cmpi ne, %38, %c0_i32_22 : i32
    scf.if %39 {
      %c0_23 = arith.constant 0 : index
      %c0_24 = arith.constant 0 : index
      %40 = vector.load %arg3[%c0_23, %c0_24] : memref<32x1xi32, #tpu.memory_space<vmem>>, vector<32x1xi32>
      %c0_i32_25 = arith.constant 0 : i32
      %41 = vector.broadcast %c0_i32_25 : i32 to vector<32x1xi32>
      %42 = arith.cmpi sgt, %40, %41 : vector<32x1xi32>
      %c0_26 = arith.constant 0 : index
      %c0_27 = arith.constant 0 : index
      %43 = vector.load %arg8[%c0_26, %c0_27] : memref<32x128xf32, #tpu.memory_space<vmem>>, vector<32x128xf32>
      %cst_28 = arith.constant 0.000000e+00 : f32
      %44 = vector.shape_cast %42 : vector<32x1xi1> to vector<32x1xi1>
      %45 = vector.broadcast %44 : vector<32x1xi1> to vector<32x128xi1>
      %46 = vector.broadcast %cst_28 : f32 to vector<32x128xf32>
      %47 = arith.select %45, %43, %46 : vector<32x128xi1>, vector<32x128xf32>
      %c0_29 = arith.constant 0 : index
      %c0_30 = arith.constant 0 : index
      %48 = vector.load %arg8[%c0_29, %c0_30] : memref<32x128xf32, #tpu.memory_space<vmem>>, vector<32x128xf32>
      tpu.vector_store %arg8[%c0_29, %c0_30], %47 {strides = array<i32>} : memref<32x128xf32, #tpu.memory_space<vmem>>, vector<32x128xf32>,
    } else {
    }
    return
  }
  func.func @transform_0(%arg0: i32, %arg1: i32) -> (i32, i32, i32) {
    %c0_i32 = arith.constant 0 : i32
    %c0_i32_0 = arith.constant 0 : i32
    return %arg0, %arg1, %c0_i32 : i32, i32, i32
  }
  func.func @transform_1(%arg0: i32, %arg1: i32) -> (i32, i32) {
    %c0_i32 = arith.constant 0 : i32
    %c0_i32_0 = arith.constant 0 : i32
    return %arg0, %c0_i32 : i32, i32
  }
  func.func @transform_2(%arg0: i32, %arg1: i32) -> (i32, i32) {
    %c0_i32 = arith.constant 0 : i32
    %c0_i32_0 = arith.constant 0 : i32
    %c0_i32_1 = arith.constant 0 : i32
    return %c0_i32, %c0_i32_0 : i32, i32
  }
  func.func @transform_3(%arg0: i32, %arg1: i32) -> (i32, i32) {
    %c0_i32 = arith.constant 0 : i32
    %c0_i32_0 = arith.constant 0 : i32
    %c0_i32_1 = arith.constant 0 : i32
    return %c0_i32, %c0_i32_0 : i32, i32
  }
  func.func @transform_4(%arg0: i32, %arg1: i32) -> (i32, i32) {
    %c0_i32 = arith.constant 0 : i32
    %c0_i32_0 = arith.constant 0 : i32
    %c0_i32_1 = arith.constant 0 : i32
    return %c0_i32, %c0_i32_0 : i32, i32
  }
  func.func @transform_5(%arg0: i32, %arg1: i32) -> (i32, i32) {
    %c0_i32 = arith.constant 0 : i32
    %c0_i32_0 = arith.constant 0 : i32
    %c0_i32_1 = arith.constant 0 : i32
    return %c0_i32, %c0_i32_0 : i32, i32
  }
  func.func @transform_6(%arg0: i32, %arg1: i32) -> (i32, i32) {
    %c0_i32 = arith.constant 0 : i32
    %c0_i32_0 = arith.constant 0 : i32
    return %arg0, %c0_i32 : i32, i32
  }
}

</mosaic_0001>

<bundles_post_ra>
// kernel: neg.1
= control target key start
LH: loop header
LB: loop body
LE: loop exit
PB: predicated region body
PF: predicated region fallthrough
CT: control target
= control target key end

     0   :  { %s264_s0 = inlined_call_operand.vmem [shape: s32[64,256], index: 0, kind: input, shape index: {}]   ;;  %s265_s1 = inlined_call_operand.vmem [shape: s32[64,256], index: 1, kind: output, shape index: {}]  }
   0x1   :  { %v2_v0 = vld [vmem:[%s264_s0] sm:$0xff]  ;;  %v128_v1 = vld [vmem:[%s264_s0 + $0x10] sm:$0xff]  ;;  %v142_v14 = vld [vmem:[%s264_s0 + $0x8] sm:$0xff] }
   0x2   :  { %v130_v2 = vld [vmem:[%s264_s0 + $0x20] sm:$0xff]  ;;  %v5_v3 = vsub.s32 0, %v2_v0  ;;  %v12_v4 = vsub.s32 0, %v128_v1  ;;  %v132_v6 = vld [vmem:[%s264_s0 + $0x30] sm:$0xff]  ;;  %v144_v16 = vld [vmem:[%s264_s0 + $0x18] sm:$0xff]  ;;  %v68_v19 = vsub.s32 0, %v142_v14 }
   0x3   :  { %v20_v5 = vsub.s32 0, %v130_v2  ;;  %v134_v7 = vld [vmem:[%s264_s0 + $0x40] sm:$0xff]  ;;  %v136_v8 = vld [vmem:[%s264_s0 + $0x50] sm:$0xff]  ;;  %v28_v9 = vsub.s32 0, %v132_v6  ;;  %v146_v18 = vld [vmem:[%s264_s0 + $0x28] sm:$0xff]  ;;  %v76_v21 = vsub.s32 0, %v144_v16 }
   0x4   :  { %v138_v10 = vld [vmem:[%s264_s0 + $0x60] sm:$0xff]  ;;  %7 = vst [vmem:[%s265_s1] sm:$0xff] %v5_v3  ;;  %v36_v11 = vsub.s32 0, %v134_v7  ;;  %v140_v12 = vld [vmem:[%s264_s0 + $0x70] sm:$0xff]  ;;  %v44_v13 = vsub.s32 0, %v136_v8  ;;  %v148_v20 = vld [vmem:[%s264_s0 + $0x38] sm:$0xff]  ;;  %v84_v23 = vsub.s32 0, %v146_v18 }
   0x5   :  { %129 = vst [vmem:[%s265_s1 + $0x10] sm:$0xff] %v12_v4  ;;  %v52_v15 = vsub.s32 0, %v138_v10  ;;  %v60_v17 = vsub.s32 0, %v140_v12  ;;  %v150_v22 = vld [vmem:[%s264_s0 + $0x48] sm:$0xff]  ;;  %v152_v24 = vld [vmem:[%s264_s0 + $0x58] sm:$0xff]  ;;  %v92_v25 = vsub.s32 0, %v148_v20 }
   0x6   :  { %131 = vst [vmem:[%s265_s1 + $0x20] sm:$0xff] %v20_v5  ;;  %v154_v26 = vld [vmem:[%s264_s0 + $0x68] sm:$0xff]  ;;  %v100_v27 = vsub.s32 0, %v150_v22  ;;  %v156_v28 = vld [vmem:[%s264_s0 + $0x78] sm:$0xff]  ;;  %v108_v29 = vsub.s32 0, %v152_v24 }
   0x7   :  { %133 = vst [vmem:[%s265_s1 + $0x30] sm:$0xff] %v28_v9  ;;  %v116_v30 = vsub.s32 0, %v154_v26  ;;  %v124_v31 = vsub.s32 0, %v156_v28 }
   0x8   :  { %135 = vst [vmem:[%s265_s1 + $0x40] sm:$0xff] %v36_v11 }
   0x9   :  { %137 = vst [vmem:[%s265_s1 + $0x50] sm:$0xff] %v44_v13 }
   0xa   :  { %139 = vst [vmem:[%s265_s1 + $0x60] sm:$0xff] %v52_v15 }
   0xb   :  { %141 = vst [vmem:[%s265_s1 + $0x70] sm:$0xff] %v60_v17 }
   0xc   :  { %143 = vst [vmem:[%s265_s1 + $0x8] sm:$0xff] %v68_v19 }
   0xd   :  { %145 = vst [vmem:[%s265_s1 + $0x18] sm:$0xff] %v76_v21 }
   0xe   :  { %147 = vst [vmem:[%s265_s1 + $0x28] sm:$0xff] %v84_v23 }
   0xf   :  { %149 = vst [vmem:[%s265_s1 + $0x38] sm:$0xff] %v92_v25 }
  0x10   :  { %151 = vst [vmem:[%s265_s1 + $0x48] sm:$0xff] %v100_v27 }
  0x11   :  { %153 = vst [vmem:[%s265_s1 + $0x58] sm:$0xff] %v108_v29 }
  0x12   :  { %155 = vst [vmem:[%s265_s1 + $0x68] sm:$0xff] %v116_v30 }
  0x13   :  { %157 = vst [vmem:[%s265_s1 + $0x78] sm:$0xff] %v124_v31 }

// kernel: sa_module_forward.3
= control target key start
LH: loop header
LB: loop body
LE: loop exit
PB: predicated region body
PF: predicated region fallthrough
CT: control target
= control target key end

     0   :  { %6 = vsyncpa [#allocation4], 0  ;;  %s552_s0 = inlined_call_operand.hbm [shape: f32[2,3,128], index: 0, kind: input, shape index: {}]   ;;  %s553_s1 = inlined_call_operand.vmem [shape: s32[2,8,32], index: 1, kind: output, shape index: {}]  }
   0x1   :  { %8 = vsyncpa [#allocation4 + $0x1], 0  ;;  %s432_s6 = smov 0   ;;  %s434_s7 = smov 0  }
   0x2   :  { %s436_s8 = smov 0   ;;  %s438_s9 = smov 0  }
   0x3 LB: > { %s451_s10 = sadd.s32 4294967295, %s410_s9   ;;  %s454_s11 = sadd.s32 1, %s410_s9   ;;  %s410_s9 = sphi %s438_s9, %s560_s9   ;;  %s406_s8 = sphi %s436_s8, %s559_s8   ;;  %s402_s7 = sphi %s434_s7, %s558_s7   ;;  %s398_s6 = sphi %s432_s6, %s557_s6  }
   0x4   : > { %s18_s12 = ssub.s32 %s410_s9, %s454_s11  ;;  %s21_s13 = sadd.s32 1, %s406_s8 }
   0x5   : > { %p19_p0 = scmp.eq.s32.totalorder %s18_s12, 0  ;;  %p28_p1 = scmp.ne.s32.totalorder %s406_s8, %s402_s7 }
   0x6   : > { %p29_p2 = scmp.eq.s32.totalorder %s410_s9, 0  ;;  %p34_p3 = scmp.ne.s32.totalorder %s402_s7, %s398_s6 }
   0x7   : > { %s464_s14 = scalar_select %p19_p0, %s406_s8, %s21_s13  }
   0x8   : > { %p466_p4 = por %p29_p2, %p28_p1  ;;  %p35_p5 = scmp.eq.s32.totalorder %s451_s10, 0 }
   0x9   : > { %p287_p6 = scmp.lt.s32.totalorder %s410_s9, 2  ;;  %s84_s17 = sand.u32 1, %s406_s8  }
   0xa   : > { %p472_p7 = por %p35_p5, %p34_p3  ;;  %s272_s18 = sshll.u32 %s84_s17, 2 }
   0xb   : > { %s273_s19 = sshll.u32 %s410_s9, 2  ;;  %s88_s23 = scalar_lea.vmem [#allocation3], %s272_s18 }
   0xc   : > { %s92_s22 = scalar_lea.hbm %s552_s0, %s273_s19  ;;  %s96_s24 = sshll.u32 %s88_s23, 4  ;;  %s97_s24 = int_to_ptr.vmem [resolvable:$true] %s96_s24 }
   0xd   : > { %s94_s25 = sshll.u32 %s92_s22, 4  ;;  %p483_p8 = pnand %p287_p6, %p466_p4  ;;  %s95_s25 = int_to_ptr.hbm [resolvable:$true] %s94_s25 }
   0xe   : > { %p274_p9 = scmp.ge.s32.totalorder %s410_s9, 1  ;;  %p101_p10 = scmp.lt.s32.totalorder %s410_s9, 3 }
   0xf   : > { %s85_s27 = scalar_lea.sflag [#allocation4], %s84_s17  ;;  %s338_s28 = sshra.s32 %s95_s25, 4  ;;  %s339_s28 = int_to_ptr.hbm [resolvable:$true] %s338_s28 }
  0x10   : > { %s340_s29 = scalar_lea.hbm %s339_s28, 4  ;;  %p342_p12 = pneg %p483_p8 }
  0x11   : > { %p341_p11 = scmp.ne.s32.totalorder %s339_s28, %s340_s29  ;;  %s345_s3 = scalar_lea.hbm %s552_s0, 8 }
  0x12   : > { %p346_p1 = scmp.lt.s32.totalorder %s339_s28, %s552_s0  ;;  %p347_p2 = scmp.lt.s32.totalorder %s345_s3, %s340_s29 }
  0x13   : > { %p343_p13 = pnand %p342_p12, %p341_p11 }
  0x14   : > { %p348_p3 = por %p347_p2, %p346_p1 }
  0x15   : > { %p344_p0 = pneg %p343_p13 }
  0x17   : > { %p349_p4 = pnand %p348_p3, %p344_p0 }
  0x19   : > { %352 = shalt.err (!%p349_p4)
}
  0x1a   : > { %286 = dma.hbm_to_vmem [thread:$0]  (!%p483_p8), %s95_s25, 64, %s97_s24, %s85_s27  }
  0x1b   : > { %p102_p5 = pnand %p274_p9, %p101_p10 }
  0x1c   : > { %s107_s6 = sand.u32 (!%p102_p5), 1, %s402_s7  }
  0x1d   : > { %105 = sbr.rel (%p102_p5) target bundleno = 595 (0x253), region = 24  ;;  %s275_s12 = sshll.u32 (!%p102_p5), %s107_s6, 2 }
  0x1e   : > { %s108_s13 = scalar_lea.sflag (!%p102_p5), [#allocation4], %s107_s6  ;;  %s111_s15 = scalar_lea.vmem (!%p102_p5), [#allocation3], %s275_s12 }
  0x22   : > { %393 = dma.done.wait (%p472_p7), %s108_s13, 64  }
  0x23   : > { %395 = vsyncadd (%p472_p7), %s108_s13, 4294967232  ;;  %v135_v0 = vlaneseq  ;;  %p130_p6 = scmp.lt.s32.totalorder %s451_s10, 1  ;;  %v420_v1 = vmov 1e+30   ;;  %vm138_vm0 = vcmask 261120   ;;  %v421_v3 = vmov 0  }
  0x24   : > { %137 = vst [vmem:[#allocation2] sm:$0x1] %v420_v1  ;;  %v134_v4 = vld [vmem:[%s111_s15] sm:$0x7]  ;;  %s519_s16 = smov 0   ;;  %s521_s20 = smov 1  }
  0x25   : > { %v509_v2 = vand.u32 127, %v135_v0  ;;  %s562_s10 = smov (!%p130_p6, %s451_s10), 1 }
  0x26   : > { %s276_s9 = sshll.u32 %s562_s10, 3 }
  0x27   : > { %s515_s19 = scalar_lea.vmem %s553_s1, %s276_s9 }
  0x28   : > { %139 = vst.msk [vmem:[%s515_s19] sm:$0xff] %vm138_vm0, %v421_v3 }
  0x29 LB: >> { %v147_v5 = vstv %s414_s16  ;;  %vm152_vm1 = vcmask 1042432   ;;  %vm168_vm3 = vcmask 1040384   ;;  %v190_v35 = vstv %s418_s20  ;;  %s145_s20 = sadd.s32 1, %s418_s20   ;;  %s418_s20 = sphi %s521_s20, %s145_s20   ;;  %s414_s16 = sphi %s519_s16, %s280_s16  }
  0x2a   : >> { %vm148_vm2 = vcmp.eq.s32.totalorder %v509_v2, %v147_v5  ;;  %vm191_vm6 = vcmp.eq.s32.totalorder %v509_v2, %v190_v35  ;;  %p142_p7 = scmp.ge.s32.totalorder %s145_s20, 32  }
  0x2b   : >> { %v151_v6 = vsel %vm148_vm2, %v134_v4, 0.0  ;;  %v165_v17 = vld [vmem:[#allocation2] sm:$0x1] }
  0x2c   : >> { %v153_v7 = vsel %vm152_vm1, %v151_v6, 0.0 }
  0x2d   : >> { %154 = vadd.xlane.f32.xlu0 %v153_v7 }
  0x2f   : >> { %v192_v36 = vld [vmem:[%s515_s19] sm:$0xff] }
  0xa0   : >> { %v155_v8 = vpop.xlane.xlu0 %154 }
  0xa1   : >> { %v156_v9 = vsub.f32 %v134_v4, %v155_v8 }
  0xa3   : >> { %v157_v10 = vmul.f32 %v156_v9, %v156_v9 }
  0xa5   : >> { %v158_v11 = vsel %vm152_vm1, %v157_v10, 0.0 }
  0xa6   : >> { %v159_v12 = vrot.slane %v158_v11, 4 }
  0xa8   : >> { %v160_v13 = vadd.f32 %v159_v12, %v158_v11 }
  0xaa   : >> { %v161_v14 = vrot.slane %v160_v13, 2 }
  0xac   : >> { %v162_v15 = vadd.f32 %v161_v14, %v160_v13 }
  0xae   : >> { %v163_v16 = vrot.slane %v162_v15, 1 }
  0xb0   : >> { %v164_v18 = vadd.f32 %v163_v16, %v162_v15 }
  0xb2   : >> { %v166_v19 = vmin.f32 %v165_v17, %v164_v18 }
  0xb4   : >> { %v169_v20 = vsel %vm168_vm3, %v166_v19, -inf  ;;  %167 = vst [vmem:[#allocation2] sm:$0x1] %v166_v19 }
  0xb5   : >> { %170 = vmax.xlane.f32.xlu0 %v169_v20 }
 0x128   : >> { %v171_v21 = vpop.xlane.xlu0 %170 }
 0x129   : >> { %vm172_vm4 = vcmp.ge.f32.partialorder %v166_v19, %v171_v21 }
 0x12a   : >> { %v173_v22 = vsel %vm172_vm4, %v509_v2, 128 }
 0x12b   : >> { %v174_v23 = vsel %vm168_vm3, %v173_v22, 2147483647 }
 0x12c   : >> { %v176_v24 = vshra.s32 %v174_v23, 16  ;;  %v175_v26 = vand.u32 65535, %v174_v23 }
 0x12e   : >> { %v178_v25 = vcvt.s32.f32 %v176_v24  ;;  %v177_v28 = vcvt.s32.f32 %v175_v26 }
 0x130   : >> { %179 = vmin.xlane.f32.xlu1 %v178_v25 }
 0x1a3   : >> { %v180_v27 = vpop.xlane.xlu1 %179 }
 0x1a4   : >> { %vm181_vm5 = vcmp.eq.f32.partialorder %v178_v25, %v180_v27  ;;  %v186_v30 = vcvt.f32.s32 %v180_v27 }
 0x1a5   : >> { %v182_v29 = vsel %vm181_vm5, %v177_v28, inf }
 0x1a6   : >> { %183 = vmin.xlane.f32.xlu1 %v182_v29  ;;  %v187_v33 = vshll.u32 %v186_v30, 16 }
 0x219   : >> { %v184_v31 = vpop.xlane.xlu1 %183 }
 0x21a   : >> { %v185_v32 = vcvt.f32.s32 %v184_v31 }
 0x21c   : >> { %v188_v34 = vadd.s32 %v187_v33, %v185_v32 }
 0x21e   : >> { %279 = vpush %v188_v34 }
 0x24e   : > { %144 = sbr.rel (!%p142_p7) target bundleno = 41 (0x29), region = 71 }
 0x24f   : >> { %s280_s16 = spop %279  }
 0x250   : >> { %v193_v37 = vstv %s280_s16 }
 0x251   : >> { %v194_v38 = vsel %vm191_vm6, %v193_v37, %v192_v36 }
 0x252   : >> { %195 = vst.msk [vmem:[%s515_s19] sm:$0xff] %vm138_vm0, %v194_v38 }
 0x253 PF: > { %p11_p8 = scmp.ge.s32.totalorder %s454_s11, 4   ;;  %s557_s6 = smov %s402_s7 }
 0x254   : > { %s558_s7 = smov %s406_s8  ;;  %s559_s8 = smov %s464_s14 }
 0x255   : > { %s560_s9 = smov %s454_s11  ;;  %13 = sbr.rel (!%p11_p8) target bundleno = 3 (0x3), region = 82 }
 0x25a   :  { %215 = vsyncpa [#allocation4], 1 }
 0x25b   :  { %217 = vsyncpa [#allocation4 + $0x1], 1 }

// kernel: sa_module_forward.4
= control target key start
LH: loop header
LB: loop body
LE: loop exit
PB: predicated region body
PF: predicated region fallthrough
CT: control target
= control target key end

     0   :  { %9 = vsyncpa [#allocation3], 0  ;;  %s944_s0 = inlined_call_operand.vmem [shape: f32[64,3], index: 0, kind: input, shape index: {}]   ;;  %s945_s1 = inlined_call_operand.vmem [shape: s32[64,1], index: 1, kind: input, shape index: {}]   ;;  %s946_s2 = inlined_call_operand.hbm [shape: f32[3,256], index: 2, kind: input, shape index: {}]   ;;  %s947_s3 = inlined_call_operand.hbm [shape: s32[1,256], index: 3, kind: input, shape index: {}]   ;;  %s948_s4 = inlined_call_operand.vmem [shape: s32[64,256], index: 4, kind: output, shape index: {}]  }
   0x1   :  { %10 = vsyncpa [#allocation5], 0  ;;  %s823_s15 = smov 0   ;;  %s825_s16 = smov 0  }
   0x2   :  { %s827_s17 = smov 0  }
   0x3 LB: > { %s623_s18 = sadd.s32 4294967295, %s791_s17   ;;  %s28_s19 = sadd.s32 1, %s787_s16  ;;  %s791_s17 = sphi %s827_s17, %s16_s17   ;;  %s787_s16 = sphi %s825_s16, %s958_s16   ;;  %s783_s15 = sphi %s823_s15, %s957_s15  }
   0x4   : > { %p30_p0 = scmp.ge.s32.totalorder %s28_s19, 2  ;;  %p625_p1 = scmp.ge.s32.totalorder %s791_s17, 1 }
   0x5   : > { %p165_p2 = scmp.lt.s32.totalorder %s791_s17, 3  ;;  %p848_p4 = scmp.eq.s32.totalorder %s623_s18, 0 }
   0x6   : > { %s960_s19 = smov (%p30_p0, %s28_s19), 0  ;;  %s180_s24 = sshll.u32 %s946_s2, 4  ;;  %s181_s24 = int_to_ptr.hbm [resolvable:$true] %s180_s24 }
   0x7   : > { %p844_p3 = pnand %p625_p1, %p165_p2  ;;  %s793_s25 = smov [#allocation2]  }
   0x8   : > { %s182_s26 = sshll.u32 %s793_s25, 4  ;;  %s194_s29 = sshll.u32 %s947_s3, 4  ;;  %s183_s26 = int_to_ptr.vmem [resolvable:$true] %s182_s26  ;;  %s195_s29 = int_to_ptr.hbm [resolvable:$true] %s194_s29 }
   0x9   : > { %p650_p5 = pneg %p844_p3  ;;  %s794_s30 = smov [#allocation4]  }
   0xa   : > { %s196_s5 = sshll.u32 %s794_s30, 4  ;;  %227 = sbr.rel (%p844_p3) target bundleno = 188 (0xbc), region = 36  ;;  %s197_s5 = int_to_ptr.vmem [resolvable:$true] %s196_s5 }
   0xb   : > { %p651_p6 = pnand %p848_p4, %p650_p5 }
   0xd   : > { %653 = dma.hbm_to_vmem [thread:$0]  (!%p651_p6), %s181_s24, 128, %s183_s26, [#allocation3]  }
   0xe   : > { %656 = dma.hbm_to_vmem [thread:$0]  (!%p651_p6), %s195_s29, 32, %s197_s5, [#allocation5]  }
   0xf   : > { %774 = dma.done.wait (%p848_p4), [#allocation3], 128  }
  0x10   : > { %776 = vsyncadd (%p848_p4), [#allocation3], 4294967168 }
  0x11   : > { %778 = dma.done.wait (%p848_p4), [#allocation5], 32  }
  0x12   : > { %780 = vsyncadd (%p848_p4), [#allocation5], 4294967264  ;;  %s632_s6 = sshll.u32 %s783_s15, 2  ;;  %v795_v0 = vmov 0   ;;  %v796_v1 = vmov 1   ;;  %v797_v6 = vmov 2   ;;  %v479_v42 = vlaneseq }
  0x13   : > { %691 = vset.pattern.permute.xlu1 %v795_v0  ;;  %690 = vset.pattern.permute.xlu0 %v795_v0  ;;  %p270_p7 = scmp.lt.s32.totalorder %s632_s6, 7  ;;  %v300_v18 = vld [vmem:[#allocation2] sm:$0x77]  ;;  %v448_v41 = vld [vmem:[#allocation4] sm:$0x3] }
  0x14   : > { %692 = vset.pattern.permute.xlu2 %v796_v1  ;;  %v360_v19 = vperm.slane %v300_v18, 1  ;;  %v361_v20 = vperm.slane %v300_v18, 5  ;;  %v322_v21 = vperm.slane %v300_v18, 0  ;;  %v406_v22 = vperm.slane %v300_v18, 2 }
  0x15   : > { %s962_s6 = smov (!%p270_p7, %s632_s6), 7  ;;  %v407_v23 = vperm.slane %v300_v18, 6  ;;  %v323_v25 = vperm.slane %v300_v18, 4  ;;  %v882_v52 = vperm.slane %v448_v41, 0  ;;  %v884_v55 = vperm.slane %v448_v41, 1 }
  0x16   : > { %s633_s7 = sshll.u32 %s962_s6, 3  ;;  %v364_v24 = vperm.slane %v360_v19, 1  ;;  %v365_v26 = vperm.slane %v361_v20, 1  ;;  %v326_v27 = vperm.slane %v322_v21, 0  ;;  %v410_v29 = vperm.slane %v406_v22, 2  ;;  %s641_s14 = sshll.u32 %s962_s6, 4 }
  0x17   : > { %s273_s10 = scalar_lea.vmem %s944_s0, %s633_s7  ;;  %s279_s13 = scalar_lea.vmem %s945_s1, %s633_s7  ;;  %v411_v30 = vperm.slane %v407_v23, 2  ;;  %v327_v34 = vperm.slane %v323_v25, 0  ;;  %v886_v56 = vand.u32 127, %v479_v42 }
  0x18   : > { %v298_v2 = vld [vmem:[%s273_s10 + $0x10] sm:$0xff]  ;;  %v296_v3 = vld [vmem:[%s273_s10] sm:$0xff]  ;;  %v299_v4 = vld [vmem:[%s273_s10 + $0x18] sm:$0xff]  ;;  %s900_s20 = scalar_lea.vmem %s948_s4, %s641_s14 }
  0x19   : > { %313 = vperm.xlu1 %691, %v298_v2   ;;  %303 = vperm.xlu0 %690, %v296_v3   ;;  %v297_v5 = vld [vmem:[%s273_s10 + $0x8] sm:$0xff]  ;;  %v444_v7 = vld [vmem:[%s279_s13] sm:$0xff]  ;;  %v446_v9 = vld [vmem:[%s279_s13 + $0x10] sm:$0xff] }
  0x1a   : > { %345 = vperm.xlu2 %692, %v296_v3   ;;  %v445_v8 = vld [vmem:[%s279_s13 + $0x8] sm:$0xff]  ;;  %v447_v10 = vld [vmem:[%s279_s13 + $0x18] sm:$0xff] }
  0x21   : > { %318 = vperm.xlu1 %691, %v299_v4   ;;  %308 = vperm.xlu0 %690, %v297_v5  }
  0x22   : > { %349 = vperm.xlu2 %692, %v297_v5  }
  0x29   : > { %694 = vset.pattern.permute.xlu1 %v796_v1  ;;  %693 = vset.pattern.permute.xlu0 %v796_v1 }
  0x2a   : > { %357 = vperm.xlu1 %694, %v299_v4   ;;  %353 = vperm.xlu0 %693, %v298_v2  }
  0x2b   : > { %695 = vset.pattern.permute.xlu2 %v797_v6 }
  0x2c   : > { %391 = vperm.xlu2 %695, %v296_v3  }
  0x32   : > { %696 = vset.pattern.permute.xlu1 %v797_v6  ;;  %697 = vset.pattern.permute.xlu0 %v797_v6 }
  0x33   : > { %395 = vperm.xlu1 %696, %v297_v5   ;;  %403 = vperm.xlu0 %697, %v299_v4  }
  0x34   : > { %399 = vperm.xlu2 %695, %v298_v2  }
  0x3b   : > { %698 = vset.pattern.permute.xlu1 %v795_v0  ;;  %700 = vset.pattern.permute.xlu0 %v795_v0 }
  0x3c   : > { %450 = vperm.xlu1 %698, %v444_v7   ;;  %699 = vset.pattern.permute.xlu2 %v795_v0 }
  0x3d   : > { %453 = vperm.xlu2 %699, %v445_v8  }
  0x44   : > { %456 = vperm.xlu1 %698, %v446_v9  }
  0x45   : > { %459 = vperm.xlu2 %699, %v447_v10  }
  0x74   : > { %v346_v11 = vpop.permute.xlu2 %345 }
  0x75   : > { %v366_v33 = vsub.f32 %v346_v11, %v364_v24  ;;  %v367_v36 = vsub.f32 %v346_v11, %v365_v26 }
  0x77   : > { %v374_v46 = vmul.f32 %v366_v33, %v366_v33  ;;  %v375_v49 = vmul.f32 %v367_v36, %v367_v36 }
  0x7c   : > { %v350_v12 = vpop.permute.xlu2 %349 }
  0x7d   : > { %v368_v37 = vsub.f32 %v350_v12, %v364_v24  ;;  %v369_v38 = vsub.f32 %v350_v12, %v365_v26 }
  0x7f   : > { %v376_v50 = vmul.f32 %v368_v37, %v368_v37  ;;  %v377_v51 = vmul.f32 %v369_v38, %v369_v38 }
  0x86   : > { %v392_v15 = vpop.permute.xlu2 %391 }
  0x87   : > { %v412_v44 = vsub.f32 %v392_v15, %v410_v29  ;;  %v413_v45 = vsub.f32 %v392_v15, %v411_v30 }
  0x89   : > { %v420_v59 = vmul.f32 %v412_v44, %v412_v44  ;;  %v421_v60 = vmul.f32 %v413_v45, %v413_v45  ;;  %v481_v44 = vadd.s32 128, %v886_v56 }
  0x8b   : > { %v314_v13 = vpop.permute.xlu1 %313  ;;  %v304_v14 = vpop.permute.xlu0 %303 }
  0x8c   : > { %v328_v35 = vsub.f32 %v304_v14, %v326_v27  ;;  %v332_v43 = vsub.f32 %v314_v13, %v326_v27  ;;  %v329_v47 = vsub.f32 %v304_v14, %v327_v34  ;;  %v333_v57 = vsub.f32 %v314_v13, %v327_v34 }
  0x8e   : > { %v400_v28 = vpop.permute.xlu2 %399  ;;  %v336_v48 = vmul.f32 %v328_v35, %v328_v35  ;;  %v340_v58 = vmul.f32 %v332_v43, %v332_v43  ;;  %v337_v61 = vmul.f32 %v329_v47, %v329_v47 }
  0x8f   : > { %v416_v18 = vsub.f32 %v400_v28, %v410_v29  ;;  %v417_v19 = vsub.f32 %v400_v28, %v411_v30 }
  0x90   : > { %v382_v62 = vadd.f32 %v374_v46, %v336_v48 }
  0x92   : > { %v428_v23 = vadd.f32 %v420_v59, %v382_v62 }
  0x93   : > { %v319_v16 = vpop.permute.xlu1 %318  ;;  %v309_v17 = vpop.permute.xlu0 %308 }
  0x94   : > { %v330_v39 = vsub.f32 %v309_v17, %v326_v27  ;;  %v331_v40 = vsub.f32 %v309_v17, %v327_v34  ;;  %v334_v63 = vsub.f32 %v319_v16, %v326_v27  ;;  %v335_v3 = vsub.f32 %v319_v16, %v327_v34 }
  0x95   : > { %v383_v17 = vadd.f32 %v375_v49, %v337_v61  ;;  %vm436_vm8 = vcmp.le.f32.partialorder %v428_v23, 0.16 }
  0x96   : > { %v338_v53 = vmul.f32 %v330_v39, %v330_v39  ;;  %v339_v54 = vmul.f32 %v331_v40, %v331_v40  ;;  %v342_v25 = vmul.f32 %v334_v63, %v334_v63  ;;  %v343_v27 = vmul.f32 %v335_v3, %v335_v3 }
  0x97   : > { %v454_v5 = vpop.permute.xlu2 %453  ;;  %v429_v28 = vadd.f32 %v421_v60, %v383_v17  ;;  %v425_v39 = vmul.f32 %v417_v19, %v417_v19 }
  0x98   : > { %v384_v8 = vadd.f32 %v376_v50, %v338_v53  ;;  %v385_v9 = vadd.f32 %v377_v51, %v339_v54  ;;  %vm465_vm0 = vcmp.eq.s32.totalorder %v454_v5, %v882_v52  ;;  %vm466_vm2 = vcmp.eq.s32.totalorder %v454_v5, %v884_v55 }
  0x99   : > { %vm437_vm9 = vcmp.le.f32.partialorder %v429_v28, 0.16 }
  0x9c   : > { %v358_v31 = vpop.permute.xlu1 %357  ;;  %v354_v32 = vpop.permute.xlu0 %353 }
  0x9d   : > { %v372_v0 = vsub.f32 %v358_v31, %v364_v24  ;;  %v373_v4 = vsub.f32 %v358_v31, %v365_v26  ;;  %v370_v10 = vsub.f32 %v354_v32, %v364_v24  ;;  %v371_v12 = vsub.f32 %v354_v32, %v365_v26 }
  0x9f   : > { %v380_v20 = vmul.f32 %v372_v0, %v372_v0  ;;  %v381_v21 = vmul.f32 %v373_v4, %v373_v4  ;;  %v378_v31 = vmul.f32 %v370_v10, %v370_v10  ;;  %v379_v34 = vmul.f32 %v371_v12, %v371_v12  ;;  %v460_v42 = vpop.permute.xlu2 %459 }
  0xa0   : > { %vm469_vm13 = vcmp.eq.s32.totalorder %v460_v42, %v882_v52  ;;  %vm470_vm15 = vcmp.eq.s32.totalorder %v460_v42, %v884_v55 }
  0xa1   : > { %v388_v26 = vadd.f32 %v380_v20, %v342_v25  ;;  %v389_v32 = vadd.f32 %v381_v21, %v343_v27  ;;  %v386_v36 = vadd.f32 %v378_v31, %v340_v58 }
  0xa5   : > { %v396_v1 = vpop.permute.xlu1 %395  ;;  %v404_v2 = vpop.permute.xlu0 %403 }
  0xa6   : > { %v414_v6 = vsub.f32 %v396_v1, %v410_v29  ;;  %v415_v7 = vsub.f32 %v396_v1, %v411_v30  ;;  %v418_v11 = vsub.f32 %v404_v2, %v410_v29  ;;  %v419_v15 = vsub.f32 %v404_v2, %v411_v30 }
  0xa7   : > { %v341_v29 = vmul.f32 %v333_v57, %v333_v57  ;;  %v424_v30 = vmul.f32 %v416_v18, %v416_v18 }
  0xa8   : > { %v422_v13 = vmul.f32 %v414_v6, %v414_v6  ;;  %v423_v14 = vmul.f32 %v415_v7, %v415_v7  ;;  %v426_v33 = vmul.f32 %v418_v11, %v418_v11  ;;  %v427_v24 = vmul.f32 %v419_v15, %v419_v15 }
  0xa9   : > { %v387_v40 = vadd.f32 %v379_v34, %v341_v29  ;;  %v432_v47 = vadd.f32 %v424_v30, %v386_v36 }
  0xaa   : > { %v430_v22 = vadd.f32 %v422_v13, %v384_v8  ;;  %v431_v16 = vadd.f32 %v423_v14, %v385_v9  ;;  %v434_v38 = vadd.f32 %v426_v33, %v388_v26  ;;  %v435_v43 = vadd.f32 %v427_v24, %v389_v32 }
  0xab   : > { %v433_v49 = vadd.f32 %v425_v39, %v387_v40 }
  0xac   : > { %vm438_vm1 = vcmp.le.f32.partialorder %v430_v22, 0.16  ;;  %vm439_vm3 = vcmp.le.f32.partialorder %v431_v16, 0.16  ;;  %vm442_vm12 = vcmp.le.f32.partialorder %v434_v38, 0.16 }
  0xad   : > { %vm891_vm4 = vmand %vm438_vm1, %vm465_vm0  ;;  %vm443_vm14 = vcmp.le.f32.partialorder %v435_v43, 0.16 }
  0xae   : > { %v451_v35 = vpop.permute.xlu1 %450  ;;  %vm904_vm7 = vmand %vm439_vm3, %vm466_vm2  ;;  %v487_v48 = vsel %vm891_vm4, %v886_v56, 256  ;;  %vm440_vm2 = vcmp.le.f32.partialorder %v432_v47, 0.16 }
  0xaf   : > { %vm463_vm5 = vcmp.eq.s32.totalorder %v451_v35, %v882_v52  ;;  %vm464_vm6 = vcmp.eq.s32.totalorder %v451_v35, %v884_v55  ;;  %v488_v50 = vsel %vm904_vm7, %v481_v44, 256  ;;  %495 = vst [vmem:[%s900_s20 + $0x10] sm:$0xff] %v487_v48  ;;  %vm920_vm0 = vmand %vm442_vm12, %vm469_vm13 }
  0xb0   : > { %vm471_vm10 = vmand %vm436_vm8, %vm463_vm5  ;;  %496 = vst [vmem:[%s900_s20 + $0x18] sm:$0xff] %v488_v50  ;;  %vm441_vm5 = vcmp.le.f32.partialorder %v433_v49, 0.16  ;;  %v491_v58 = vsel %vm920_vm0, %v886_v56, 256 }
  0xb1   : > { %vm472_vm11 = vmand %vm437_vm9, %vm464_vm6  ;;  %v485_v45 = vsel %vm471_vm10, %v886_v56, 256  ;;  %499 = vst [vmem:[%s900_s20 + $0x30] sm:$0xff] %v491_v58 }
  0xb2   : > { %v486_v46 = vsel %vm472_vm11, %v481_v44, 256  ;;  %493 = vst [vmem:[%s900_s20] sm:$0xff] %v485_v45  ;;  %vm478_vm1 = vmand %vm443_vm14, %vm470_vm15 }
  0xb3   : > { %494 = vst [vmem:[%s900_s20 + $0x8] sm:$0xff] %v486_v46  ;;  %v492_v59 = vsel %vm478_vm1, %v481_v44, 256 }
  0xb4   : > { %500 = vst [vmem:[%s900_s20 + $0x38] sm:$0xff] %v492_v59 }
  0xb6   : > { %v457_v53 = vpop.permute.xlu1 %456 }
  0xb7   : > { %vm467_vm3 = vcmp.eq.s32.totalorder %v457_v53, %v882_v52  ;;  %vm468_vm4 = vcmp.eq.s32.totalorder %v457_v53, %v884_v55 }
  0xb8   : > { %vm475_vm6 = vmand %vm440_vm2, %vm467_vm3 }
  0xb9   : > { %vm476_vm8 = vmand %vm441_vm5, %vm468_vm4  ;;  %v489_v54 = vsel %vm475_vm6, %v886_v56, 256 }
  0xba   : > { %v490_v57 = vsel %vm476_vm8, %v481_v44, 256  ;;  %497 = vst [vmem:[%s900_s20 + $0x20] sm:$0xff] %v489_v54 }
  0xbb   : > { %498 = vst [vmem:[%s900_s20 + $0x28] sm:$0xff] %v490_v57 }
  0xbc PF: > { %s16_s17 = sadd.s32 1, %s791_s17   ;;  %s957_s15 = smov %s787_s16 }
  0xbd   : > { %p13_p8 = scmp.ge.s32.totalorder %s16_s17, 4   ;;  %s958_s16 = smov %s960_s19 }
  0xbf   :  { %15 = sbr.rel (!%p13_p8) target bundleno = 3 (0x3), region = 80 }
  0xc4   :  { %534 = vsyncpa [#allocation3], 1 }
  0xc5   :  { %536 = vsyncpa [#allocation3 + $0x1], 1 }
  0xc6   :  { %537 = vsyncpa [#allocation5], 1 }

// kernel: sa_module_forward.5
= control target key start
LH: loop header
LB: loop body
LE: loop exit
PB: predicated region body
PF: predicated region fallthrough
CT: control target
= control target key end

     0   :  { %s3942_s0 = inlined_call_operand.vmem [shape: bf16[64,64,32], index: 0, kind: input, shape index: {}]   ;;  %s3943_s1 = inlined_call_operand.vmem [shape: s32[64,1], index: 1, kind: input, shape index: {}]   ;;  %s3944_s2 = inlined_call_operand.vmem [shape: bf16[32,32], index: 2, kind: input, shape index: {}]   ;;  %s3945_s3 = inlined_call_operand.vmem [shape: f32[1,32], index: 3, kind: input, shape index: {}]   ;;  %s3946_s4 = inlined_call_operand.vmem [shape: bf16[32,128], index: 4, kind: input, shape index: {}]   ;;  %s3947_s5 = inlined_call_operand.vmem [shape: f32[1,128], index: 5, kind: input, shape index: {}]   ;;  %s3948_s6 = inlined_call_operand.hbm [shape: f32[64,128], index: 6, kind: output, shape index: {}]  }
   0x1   :  { %3951 = sst [smem:[#allocation8_spill]] %s3942_s0 }
   0x2   :  { %3952 = sst [smem:[#allocation9_spill]] %s3943_s1 }
   0x3   :  { %11 = vsyncpa [#allocation4], 0 }
   0x4   :  { %13 = vsyncpa [#allocation4 + $0x1], 0  ;;  %s3057_s21 = smov 0   ;;  %s3059_s22 = smov 0  }
   0x5   :  { %s3061_s23 = smov 0   ;;  %s3063_s24 = smov 0  }
   0x6   :  { %s3065_s25 = smov 0   ;;  %s3067_s26 = smov 0  }
   0x7   :  { %s3069_s27 = smov 0   ;;  %s3071_s28 = smov 0  }
   0x8   :  { %s3073_s29 = smov 0   ;;  %s3075_s30 = smov 0  }
   0x9 LB: > { %s2532_s7 = sadd.s32 4294967295, %s3015_s30   ;;  %s2533_s8 = sadd.s32 4294967294, %s3015_s30   ;;  %s3015_s30 = sphi %s3075_s30, %s19_s30   ;;  %s3011_s29 = sphi %s3073_s29, %s3970_s29   ;;  %s3007_s28 = sphi %s3071_s28, %s3969_s28   ;;  %s3003_s27 = sphi %s3069_s27, %s3968_s27   ;;  %s2999_s26 = sphi %s3067_s26, %s3967_s26   ;;  %s2995_s25 = sphi %s3065_s25, %s3966_s25   ;;  %s2991_s24 = sphi %s3063_s24, %s3965_s24   ;;  %s2987_s23 = sphi %s3061_s23, %s3964_s23   ;;  %s2983_s22 = sphi %s3059_s22, %s3963_s22   ;;  %s2979_s21 = sphi %s3057_s21, %s3962_s21  }
   0xa   : > { %s28_s9 = sadd.s32 1, %s3007_s28  ;;  %s31_s10 = sadd.s32 1, %s3011_s29 }
   0xb   : > { %p29_p0 = scmp.ge.s32.totalorder %s28_s9, 4  ;;  %s40_s11 = sadd.s32 1, %s2995_s25 }
   0xc   : > { %p47_p1 = scmp.ne.s32.totalorder %s2995_s25, %s2991_s24  ;;  %p48_p2 = scmp.eq.s32.totalorder %s3015_s30, 0 }
   0xd   : > { %s3972_s9 = smov (%p29_p0, %s28_s9), 0  ;;  %s3974_s10 = smov (!%p29_p0, %s31_s10), %s3011_s29 }
   0xe   : > { %3953 = sst [smem:[#allocation6_spill]] %s3972_s9  ;;  %s36_s12 = ssub.s32 %s3007_s28, %s3972_s9 }
   0xf   : > { %p3120_p3 = por %p48_p2, %p47_p1  ;;  %p33_p4 = scmp.ge.s32.totalorder %s3974_s10, 2 }
  0x10   : > { %s176_s14 = sadd.s32 1, %s2987_s23  ;;  %p186_p5 = scmp.ne.s32.totalorder %s2987_s23, %s2983_s22 }
  0x11   : > { %p187_p6 = scmp.eq.s32.totalorder %s2532_s7, 7  ;;  %s3976_s10 = smov (%p33_p4, %s3974_s10), 0 }
  0x12   : > { %3955 = sst [smem:[#allocation7_spill]] %s3976_s10  ;;  %p192_p8 = scmp.ne.s32.totalorder %s2983_s22, %s2979_s21 }
  0x13   : > { %p3129_p7 = por %p187_p6, %p186_p5  ;;  %s35_s16 = ssub.s32 %s3011_s29, %s3976_s10 }
  0x14   : > { %p193_p9 = scmp.eq.s32.totalorder %s2533_s8, 7  ;;  %s37_s17 = sor.u32 %s36_s12, %s35_s16 }
  0x15   : > { %p174_p10 = scmp.eq.s32.totalorder %s35_s16, 0  ;;  %p38_p11 = scmp.eq.s32.totalorder %s37_s17, 0 }
  0x16   : > { %p3137_p12 = por %p193_p9, %p192_p8  ;;  %p2535_p13 = scmp.ge.s32.totalorder %s3015_s30, 8 }
  0x17   : > { %s3142_s19 = scalar_select %p174_p10, %s2987_s23, %s176_s14  }
  0x18   : > { %s3145_s20 = scalar_select %p38_p11, %s2995_s25, %s40_s11  }
  0x19   : > { %221 = sbr.rel (%p2535_p13) target bundleno = 72 (0x48), region = 32 }
  0x1e   : > { %224 = sbr.rel (!%p3120_p3) target bundleno = 72 (0x48), region = 36  ;;  %s226_s7 = sand.u32 (%p3120_p3), 1, %s2995_s25  }
  0x1f   : > { %s2538_s8 = sshll.u32 (%p3120_p3), %s3007_s28, 1  ;;  %s2536_s12 = sshll.u32 (%p3120_p3), %s226_s7, 8 }
  0x20   : > { %s2762_s16 = sshll.u32 (%p3120_p3), %s3011_s29, 8  ;;  %s3958_s0 = sld [smem:[#allocation8_spill]] (%p3120_p3) }
  0x21   : > { %s232_s17 = sadd.s32 (%p3120_p3), %s2762_s16, %s2538_s8  ;;  %s3161_s13 = scalar_lea.vmem (%p3120_p3), [#allocation2], %s2536_s12 }
  0x22   : > { %s2540_s10 = sshll.u32 (%p3120_p3), %s232_s17, 2 }
  0x26   : > { %s3156_s11 = scalar_lea.vmem %s3958_s0, %s2540_s10 }
  0x27   : > { %v251_v0 = vld [vmem:[%s3156_s11] sm:$0xff]  }
  0x28   : > { %v255_v1 = vld [vmem:[%s3156_s11 + $0x20] sm:$0xff]   ;;  %252 = vst [vmem:[%s3161_s13] sm:$0xff] %v251_v0  }
  0x29   : > { %v259_v2 = vld [vmem:[%s3156_s11 + $0x40] sm:$0xff]   ;;  %256 = vst [vmem:[%s3161_s13 + $0x8] sm:$0xff] %v255_v1  }
  0x2a   : > { %v263_v3 = vld [vmem:[%s3156_s11 + $0x60] sm:$0xff]   ;;  %260 = vst [vmem:[%s3161_s13 + $0x10] sm:$0xff] %v259_v2  }
  0x2b   : > { %v267_v4 = vld [vmem:[%s3156_s11 + $0x80] sm:$0xff]   ;;  %264 = vst [vmem:[%s3161_s13 + $0x18] sm:$0xff] %v263_v3  }
  0x2c   : > { %v271_v5 = vld [vmem:[%s3156_s11 + $0xa0] sm:$0xff]   ;;  %268 = vst [vmem:[%s3161_s13 + $0x20] sm:$0xff] %v267_v4  }
  0x2d   : > { %v275_v6 = vld [vmem:[%s3156_s11 + $0xc0] sm:$0xff]   ;;  %272 = vst [vmem:[%s3161_s13 + $0x28] sm:$0xff] %v271_v5  }
  0x2e   : > { %v279_v7 = vld [vmem:[%s3156_s11 + $0xe0] sm:$0xff]   ;;  %276 = vst [vmem:[%s3161_s13 + $0x30] sm:$0xff] %v275_v6  }
  0x2f   : > { %v283_v8 = vld [vmem:[%s3156_s11 + $0x100] sm:$0xff]   ;;  %280 = vst [vmem:[%s3161_s13 + $0x38] sm:$0xff] %v279_v7  }
  0x30   : > { %v287_v9 = vld [vmem:[%s3156_s11 + $0x120] sm:$0xff]   ;;  %284 = vst [vmem:[%s3161_s13 + $0x40] sm:$0xff] %v283_v8  }
  0x31   : > { %v291_v10 = vld [vmem:[%s3156_s11 + $0x140] sm:$0xff]   ;;  %288 = vst [vmem:[%s3161_s13 + $0x48] sm:$0xff] %v287_v9  }
  0x32   : > { %v295_v11 = vld [vmem:[%s3156_s11 + $0x160] sm:$0xff]   ;;  %292 = vst [vmem:[%s3161_s13 + $0x50] sm:$0xff] %v291_v10  }
  0x33   : > { %v299_v12 = vld [vmem:[%s3156_s11 + $0x180] sm:$0xff]   ;;  %296 = vst [vmem:[%s3161_s13 + $0x58] sm:$0xff] %v295_v11  }
  0x34   : > { %v303_v13 = vld [vmem:[%s3156_s11 + $0x1a0] sm:$0xff]   ;;  %300 = vst [vmem:[%s3161_s13 + $0x60] sm:$0xff] %v299_v12  }
  0x35   : > { %v307_v14 = vld [vmem:[%s3156_s11 + $0x1c0] sm:$0xff]   ;;  %304 = vst [vmem:[%s3161_s13 + $0x68] sm:$0xff] %v303_v13  }
  0x36   : > { %v311_v15 = vld [vmem:[%s3156_s11 + $0x1e0] sm:$0xff]   ;;  %308 = vst [vmem:[%s3161_s13 + $0x70] sm:$0xff] %v307_v14  }
  0x37   : > { %v315_v16 = vld [vmem:[%s3156_s11 + $0x200] sm:$0xff]   ;;  %312 = vst [vmem:[%s3161_s13 + $0x78] sm:$0xff] %v311_v15  }
  0x38   : > { %v319_v17 = vld [vmem:[%s3156_s11 + $0x220] sm:$0xff]   ;;  %316 = vst [vmem:[%s3161_s13 + $0x80] sm:$0xff] %v315_v16  }
  0x39   : > { %v323_v18 = vld [vmem:[%s3156_s11 + $0x240] sm:$0xff]   ;;  %320 = vst [vmem:[%s3161_s13 + $0x88] sm:$0xff] %v319_v17  }
  0x3a   : > { %v327_v19 = vld [vmem:[%s3156_s11 + $0x260] sm:$0xff]   ;;  %324 = vst [vmem:[%s3161_s13 + $0x90] sm:$0xff] %v323_v18  }
  0x3b   : > { %v331_v20 = vld [vmem:[%s3156_s11 + $0x280] sm:$0xff]   ;;  %328 = vst [vmem:[%s3161_s13 + $0x98] sm:$0xff] %v327_v19  }
  0x3c   : > { %v335_v21 = vld [vmem:[%s3156_s11 + $0x2a0] sm:$0xff]   ;;  %332 = vst [vmem:[%s3161_s13 + $0xa0] sm:$0xff] %v331_v20  }
  0x3d   : > { %v339_v22 = vld [vmem:[%s3156_s11 + $0x2c0] sm:$0xff]   ;;  %336 = vst [vmem:[%s3161_s13 + $0xa8] sm:$0xff] %v335_v21  }
  0x3e   : > { %v343_v23 = vld [vmem:[%s3156_s11 + $0x2e0] sm:$0xff]   ;;  %340 = vst [vmem:[%s3161_s13 + $0xb0] sm:$0xff] %v339_v22  }
  0x3f   : > { %v347_v24 = vld [vmem:[%s3156_s11 + $0x300] sm:$0xff]   ;;  %344 = vst [vmem:[%s3161_s13 + $0xb8] sm:$0xff] %v343_v23  }
  0x40   : > { %v351_v25 = vld [vmem:[%s3156_s11 + $0x320] sm:$0xff]   ;;  %348 = vst [vmem:[%s3161_s13 + $0xc0] sm:$0xff] %v347_v24  }
  0x41   : > { %v355_v26 = vld [vmem:[%s3156_s11 + $0x340] sm:$0xff]   ;;  %352 = vst [vmem:[%s3161_s13 + $0xc8] sm:$0xff] %v351_v25  }
  0x42   : > { %v359_v27 = vld [vmem:[%s3156_s11 + $0x360] sm:$0xff]   ;;  %356 = vst [vmem:[%s3161_s13 + $0xd0] sm:$0xff] %v355_v26  }
  0x43   : > { %v363_v28 = vld [vmem:[%s3156_s11 + $0x380] sm:$0xff]   ;;  %360 = vst [vmem:[%s3161_s13 + $0xd8] sm:$0xff] %v359_v27  }
  0x44   : > { %v367_v29 = vld [vmem:[%s3156_s11 + $0x3a0] sm:$0xff]   ;;  %364 = vst [vmem:[%s3161_s13 + $0xe0] sm:$0xff] %v363_v28  }
  0x45   : > { %v371_v30 = vld [vmem:[%s3156_s11 + $0x3c0] sm:$0xff]   ;;  %368 = vst [vmem:[%s3161_s13 + $0xe8] sm:$0xff] %v367_v29  }
  0x46   : > { %v375_v31 = vld [vmem:[%s3156_s11 + $0x3e0] sm:$0xff]   ;;  %372 = vst [vmem:[%s3161_s13 + $0xf0] sm:$0xff] %v371_v30  }
  0x47   : > { %376 = vst [vmem:[%s3161_s13 + $0xf8] sm:$0xff] %v375_v31  }
  0x48 PF: > { %p2541_p0 = scmp.ge.s32.totalorder %s3015_s30, 1  ;;  %p538_p1 = scmp.lt.s32.totalorder %s3015_s30, 9 }
  0x4a   : > { %p539_p2 = pnand %p2541_p0, %p538_p1 }
  0x4b   : > { %s545_s9 = sand.u32 (!%p539_p2), 1, %s2991_s24   ;;  %s576_s10 = sand.u32 (!%p539_p2), 1, %s2983_s22  }
  0x4c   : > { %542 = sbr.rel (%p539_p2) target bundleno = 795 (0x31b), region = 81  ;;  %s2542_s7 = sshll.u32 (!%p539_p2), %s545_s9, 8 }
  0x4d   : > { %s2543_s8 = sshll.u32 (!%p539_p2), %s576_s10, 5  ;;  %s2544_s12 = sshll.u32 (!%p539_p2), %s3003_s27, 2 }
  0x4e   : > { %p582_p3 = scmp.lt.s32.totalorder (!%p539_p2), %s2544_s12, 7  ;;  %s3959_s1 = sld [smem:[#allocation9_spill]] (!%p539_p2) }
  0x4f   : > { %s3236_s13 = scalar_lea.vmem (!%p539_p2), [#allocation2], %s2542_s7  ;;  %s3238_s0 = scalar_lea.vmem (!%p539_p2), [#allocation3], %s2543_s8 }
  0x50   : > { %p2546_p4 = scmp.ne.s32.totalorder (!%p539_p2), %s2999_s26, 0 }
  0x51   : > { %s3978_s12 = smov (!%p582_p3, %s2544_s12), 7 }
  0x52   : > { %s2545_s16 = sshll.u32 %s3978_s12, 3  ;;  %592 = sbr.rel (%p2546_p4) target bundleno = 92 (0x5c), region = 89 }
  0x54   : > { %s3234_s11 = scalar_lea.vmem %s3959_s1, %s2545_s16 }
  0x57   : > { %v3017_v32 = vmov -1e+30  }
  0x58   : > { %593 = vst [vmem:[%s3238_s0] sm:$0xff] %v3017_v32 }
  0x59   : > { %594 = vst [vmem:[%s3238_s0 + $0x8] sm:$0xff] %v3017_v32 }
  0x5a   : > { %595 = vst [vmem:[%s3238_s0 + $0x10] sm:$0xff] %v3017_v32 }
  0x5b   : > { %596 = vst [vmem:[%s3238_s0 + $0x18] sm:$0xff] %v3017_v32 }
  0x5c PF: > { %v2796_v33 = vld [vmem:[%s3944_s2 + $0x8] sm:$0xff]  ;;  %v2795_v34 = vld [vmem:[%s3944_s2] sm:$0xff]  ;;  %vm841_vm0 = vcmask 261120   ;;  %v2765_v39 = vld [vmem:[%s3236_s13 + $0x10] sm:$0xff]  ;;  %s2755_s12 = sshll.u32 %s2999_s26, 4  ;;  %v1553_v41 = vlaneseq  ;;  %v3018_v43 = vmov 0  }
  0x5d   : > { %944 = vmatpush.bf16.msra.mxu0 %v2796_v33  ;;  %2800 = vmatpush.bf16.msra.mxu2 %v2796_v33  ;;  %v2763_v35 = vld [vmem:[%s3236_s13] sm:$0xff]  ;;  %v2764_v37 = vld [vmem:[%s3236_s13 + $0x8] sm:$0xff]  ;;  %v2781_v40 = vld [vmem:[%s3236_s13 + $0x90] sm:$0xff]  ;;  %v1556_v44 = vstv %s2755_s12  ;;  %p2756_p5 = scmp.ne.s32.totalorder %s2999_s26, 3 }
  0x5e   : > { %v2779_v36 = vld [vmem:[%s3236_s13 + $0x80] sm:$0xff]  ;;  %v2780_v38 = vld [vmem:[%s3236_s13 + $0x88] sm:$0xff]  ;;  %2896 = vset.pattern.permute.xlu0 %v3018_v43  ;;  %2897 = vset.pattern.permute.xlu1 %v3018_v43  ;;  %v1554_v45 = vshrl.u32 %v1553_v41, 7  ;;  %v2766_v49 = vld [vmem:[%s3236_s13 + $0x18] sm:$0xff] }
  0x5f   : > { %v3265_v42 = vld [vmem:[%s3234_s11] sm:$0xff]  ;;  %2898 = vset.pattern.permute.xlu2 %v3018_v43  ;;  %v2782_v50 = vld [vmem:[%s3236_s13 + $0x98] sm:$0xff]  ;;  %v2768_v9 = vld [vmem:[%s3236_s13 + $0x28] sm:$0xff] }
  0x60   : > { %v1591_v46 = vperm.slane %v3265_v42, 0  ;;  %v3271_v47 = vadd.s32 %v1556_v44, %v1554_v45  ;;  %v1555_v51 = vadd.s32 8, %v1554_v45  ;;  %v1563_v52 = vrot.slane %v3265_v42, 1  ;;  %v2767_v60 = vld [vmem:[%s3236_s13 + $0x20] sm:$0xff]  ;;  %v2784_v10 = vld [vmem:[%s3236_s13 + $0xa8] sm:$0xff]  ;;  %v2769_v22 = vld [vmem:[%s3236_s13 + $0x30] sm:$0xff] }
  0x61   : > { %945 = vmatpush.bf16.msra.mxu0 %v2795_v34  ;;  %2801 = vmatpush.bf16.msra.mxu2 %v2795_v34  ;;  %v1565_v53 = vrot.slane %v3265_v42, 3  ;;  %v2783_v61 = vld [vmem:[%s3236_s13 + $0xa0] sm:$0xff]  ;;  %v1566_v62 = vrot.slane %v3265_v42, 4  ;;  %v1564_v63 = vrot.slane %v3265_v42, 2  ;;  %v1568_v1 = vrot.slane %v3265_v42, 6  ;;  %v3320_v18 = vld [vmem:[%s3234_s11 + $0x8] sm:$0xff] }
  0x62   : > { %vm1623_vm1 = vcmp.lt.s32.totalorder %v3271_v47, %v1591_v46  ;;  %v3281_v54 = vadd.s32 %v1556_v44, %v1555_v51  ;;  %v1592_v55 = vperm.slane %v1563_v52, 0  ;;  %v1567_v11 = vrot.slane %v3265_v42, 5  ;;  %v2785_v23 = vld [vmem:[%s3236_s13 + $0xb0] sm:$0xff]  ;;  %v2798_v29 = vld [vmem:[%s3946_s4 + $0x8] sm:$0xff]  ;;  %v2797_v33 = vld [vmem:[%s3946_s4] sm:$0xff] }
  0x63   : > { %v1687_v48 = vsel %vm1623_vm1, 1, %v3018_v43  ;;  %v1594_v56 = vperm.slane %v1565_v53, 0  ;;  %v1595_v2 = vperm.slane %v1566_v62, 0  ;;  %v1593_v3 = vperm.slane %v1564_v63, 0  ;;  %1325 = vmatpush.bf16.msra.mxu1 %v2798_v29  ;;  %2802 = vmatpush.bf16.msra.mxu3 %v2798_v29  ;;  %v2771_v52 = vld [vmem:[%s3236_s13 + $0x40] sm:$0xff]  ;;  %v3383_v62 = vld [vmem:[%s3234_s11 + $0x10] sm:$0xff] }
  0x64   : > { %2683 = vmatmul.msk.bf16.vlgmr.msra.gmra.mxu0 %vm841_vm0, %v2763_v35  ;;  %2699 = vmatmul.msk.bf16.vlgmr.msra.gmra.mxu2 %vm841_vm0, %v2779_v36  ;;  %vm1624_vm2 = vcmp.lt.s32.totalorder %v3281_v54, %v1591_v46  ;;  %vm1625_vm3 = vcmp.lt.s32.totalorder %v3271_v47, %v1592_v55  ;;  %vm1626_vm5 = vcmp.lt.s32.totalorder %v3281_v54, %v1592_v55  ;;  %v1597_v4 = vperm.slane %v1568_v1, 0  ;;  %v2770_v36 = vld [vmem:[%s3236_s13 + $0x38] sm:$0xff]  ;;  %v2787_v53 = vld [vmem:[%s3236_s13 + $0xc0] sm:$0xff] }
  0x65   : > { %1752 = vperm.xlu0 %2896, %v1687_v48   ;;  %v1688_v57 = vsel %vm1624_vm2, 1, %v3018_v43  ;;  %v1689_v58 = vsel %vm1625_vm3, 1, %v3018_v43  ;;  %vm1629_vm4 = vcmp.lt.s32.totalorder %v3271_v47, %v1594_v56  ;;  %v1690_v0 = vsel %vm1626_vm5, 1, %v3018_v43 }
  0x66   : > { %1758 = vperm.xlu1 %2897, %v1689_v58   ;;  %v1693_v59 = vsel %vm1629_vm4, 1, %v3018_v43  ;;  %vm1632_vm6 = vcmp.lt.s32.totalorder %v3281_v54, %v1595_v2  ;;  %vm1630_vm7 = vcmp.lt.s32.totalorder %v3281_v54, %v1594_v56  ;;  %vm1627_vm8 = vcmp.lt.s32.totalorder %v3271_v47, %v1593_v3 }
  0x67   : > { %v1696_v5 = vsel %vm1632_vm6, 1, %v3018_v43  ;;  %v1691_v6 = vsel %vm1627_vm8, 1, %v3018_v43  ;;  %v1694_v7 = vsel %vm1630_vm7, 1, %v3018_v43  ;;  %vm1635_vm9 = vcmp.lt.s32.totalorder %v3271_v47, %v1597_v4  ;;  %1326 = vmatpush.bf16.msra.mxu1 %v2797_v33  ;;  %2803 = vmatpush.bf16.msra.mxu3 %v2797_v33 }
  0x68   : > { %1764 = vperm.xlu2 %2898, %v1691_v6   ;;  %v1699_v8 = vsel %vm1635_vm9, 1, %v3018_v43  ;;  %vm1628_vm10 = vcmp.lt.s32.totalorder %v3281_v54, %v1593_v3  ;;  %v1569_v12 = vrot.slane %v3265_v42, 7  ;;  %v1596_v13 = vperm.slane %v1567_v11, 0 }
  0x69   : > { %v1692_v14 = vsel %vm1628_vm10, 1, %v3018_v43  ;;  %vm1636_vm13 = vcmp.lt.s32.totalorder %v3281_v54, %v1597_v4  ;;  %v1570_v19 = vrot.slane %v3320_v18, 1  ;;  %vm1631_vm14 = vcmp.lt.s32.totalorder %v3271_v47, %v1595_v2 }
  0x6a   : > { %v1598_v15 = vperm.slane %v1569_v12, 0  ;;  %vm1633_vm11 = vcmp.lt.s32.totalorder %v3271_v47, %v1596_v13  ;;  %v1700_v20 = vsel %vm1636_vm13, 1, %v3018_v43  ;;  %v1695_v24 = vsel %vm1631_vm14, 1, %v3018_v43 }
  0x6b   : > { %v1697_v16 = vsel %vm1633_vm11, 1, %v3018_v43  ;;  %v1600_v21 = vperm.slane %v1570_v19, 0  ;;  %v1571_v26 = vrot.slane %v3320_v18, 2  ;;  %v1599_v27 = vperm.slane %v3320_v18, 0 }
  0x6c   : > { %vm1638_vm12 = vcmp.lt.s32.totalorder %v3281_v54, %v1598_v15  ;;  %vm1634_vm2 = vcmp.lt.s32.totalorder %v3281_v54, %v1596_v13  ;;  %v1573_v34 = vrot.slane %v3320_v18, 4  ;;  %vm1637_vm5 = vcmp.lt.s32.totalorder %v3271_v47, %v1598_v15  ;;  %v2772_v15 = vld [vmem:[%s3236_s13 + $0x48] sm:$0xff] }
  0x6d   : > { %1755 = vperm.xlu0 %2896, %v1688_v57   ;;  %v1702_v17 = vsel %vm1638_vm12, 1, %v3018_v43  ;;  %vm1641_vm15 = vcmp.lt.s32.totalorder %v3271_v47, %v1600_v21  ;;  %v1601_v28 = vperm.slane %v1571_v26, 0  ;;  %vm1639_vm1 = vcmp.lt.s32.totalorder %v3271_v47, %v1599_v27 }
  0x6e   : > { %1761 = vperm.xlu1 %2897, %v1690_v0   ;;  %v1705_v25 = vsel %vm1641_vm15, 1, %v3018_v43  ;;  %v1703_v30 = vsel %vm1639_vm1, 1, %v3018_v43  ;;  %v1698_v31 = vsel %vm1634_vm2, 1, %v3018_v43  ;;  %v1603_v35 = vperm.slane %v1573_v34, 0 }
  0x6f   : > { %vm1644_vm3 = vcmp.lt.s32.totalorder %v3281_v54, %v1601_v28  ;;  %vm1642_vm4 = vcmp.lt.s32.totalorder %v3281_v54, %v1600_v21  ;;  %v1572_v41 = vrot.slane %v3320_v18, 3  ;;  %v1574_v42 = vrot.slane %v3320_v18, 5 }
  0x70   : > { %1767 = vperm.xlu2 %2898, %v1692_v14   ;;  %v1708_v32 = vsel %vm1644_vm3, 1, %v3018_v43  ;;  %vm1647_vm6 = vcmp.lt.s32.totalorder %v3271_v47, %v1603_v35  ;;  %vm1640_vm8 = vcmp.lt.s32.totalorder %v3281_v54, %v1599_v27  ;;  %vm1648_vm10 = vcmp.lt.s32.totalorder %v3281_v54, %v1603_v35 }
  0x71   : > { %v1602_v44 = vperm.slane %v1572_v41, 0  ;;  %v1604_v45 = vperm.slane %v1574_v42, 0  ;;  %v1704_v48 = vsel %vm1640_vm8, 1, %v3018_v43  ;;  %v1712_v55 = vsel %vm1648_vm10, 1, %v3018_v43 }
  0x72   : > { %vm1643_vm11 = vcmp.lt.s32.totalorder %v3271_v47, %v1601_v28  ;;  %v1607_v0 = vperm.slane %v3383_v62, 0 }
  0x73   : > { %vm1645_vm7 = vcmp.lt.s32.totalorder %v3271_v47, %v1602_v44  ;;  %vm1650_vm9 = vcmp.lt.s32.totalorder %v3281_v54, %v1604_v45  ;;  %v1707_v57 = vsel %vm1643_vm11, 1, %v3018_v43  ;;  %vm1646_vm14 = vcmp.lt.s32.totalorder %v3281_v54, %v1602_v44  ;;  %v2773_v44 = vld [vmem:[%s3236_s13 + $0x50] sm:$0xff] }
  0x74   : > { %2684 = vmatmul.msk.bf16.gmra.mxu0 %vm841_vm0, %v2764_v37  ;;  %2700 = vmatmul.msk.bf16.gmra.mxu2 %vm841_vm0, %v2780_v38  ;;  %v2786_v37 = vld [vmem:[%s3236_s13 + $0xb8] sm:$0xff]  ;;  %v1706_v38 = vsel %vm1642_vm4, 1, %v3018_v43  ;;  %v1709_v46 = vsel %vm1645_vm7, 1, %v3018_v43  ;;  %vm1656_vm15 = vcmp.lt.s32.totalorder %v3281_v54, %v1607_v0  ;;  %v1710_v4 = vsel %vm1646_vm14, 1, %v3018_v43 }
  0x75   : > { %1770 = vperm.xlu0 %2896, %v1693_v59   ;;  %v1575_v59 = vrot.slane %v3320_v18, 6  ;;  %vm1649_vm2 = vcmp.lt.s32.totalorder %v3271_v47, %v1604_v45  ;;  %v2789_v45 = vld [vmem:[%s3236_s13 + $0xd0] sm:$0xff]  ;;  %vm1655_vm8 = vcmp.lt.s32.totalorder %v3271_v47, %v1607_v0 }
  0x76   : > { %1773 = vperm.xlu1 %2897, %v1694_v7   ;;  %v1713_v19 = vsel %vm1649_vm2, 1, %v3018_v43 }
  0x78   : > { %1776 = vperm.xlu2 %2898, %v1695_v24  }
  0x7d   : > { %1779 = vperm.xlu0 %2896, %v1696_v5   ;;  %v1720_v5 = vsel %vm1656_vm15, 1, %v3018_v43 }
  0x7e   : > { %1782 = vperm.xlu1 %2897, %v1697_v16   ;;  %v2788_v16 = vld [vmem:[%s3236_s13 + $0xc8] sm:$0xff] }
  0x80   : > { %1785 = vperm.xlu2 %2898, %v1698_v31  }
  0x84   : > { %2685 = vmatmul.msk.bf16.gmra.mxu0 %vm841_vm0, %v2765_v39  ;;  %2701 = vmatmul.msk.bf16.gmra.mxu2 %vm841_vm0, %v2781_v40  ;;  %v1701_v39 = vsel %vm1637_vm5, 1, %v3018_v43  ;;  %v1711_v40 = vsel %vm1647_vm6, 1, %v3018_v43 }
  0x85   : > { %1788 = vperm.xlu0 %2896, %v1699_v8  }
  0x86   : > { %1791 = vperm.xlu1 %2897, %v1700_v20  }
  0x88   : > { %1794 = vperm.xlu2 %2898, %v1701_v39  }
  0x8d   : > { %1797 = vperm.xlu0 %2896, %v1702_v17  }
  0x8e   : > { %1800 = vperm.xlu1 %2897, %v1703_v30  }
  0x90   : > { %1803 = vperm.xlu2 %2898, %v1704_v48  }
  0x94   : > { %2686 = vmatmul.msk.bf16.gmra.mxu0 %vm841_vm0, %v2766_v49  ;;  %2702 = vmatmul.msk.bf16.gmra.mxu2 %vm841_vm0, %v2782_v50  ;;  %v1714_v49 = vsel %vm1650_vm9, 1, %v3018_v43  ;;  %v1576_v50 = vrot.slane %v3320_v18, 7 }
  0x95   : > { %1806 = vperm.xlu0 %2896, %v1705_v25   ;;  %v1579_v25 = vrot.slane %v3383_v62, 3 }
  0x96   : > { %1809 = vperm.xlu1 %2897, %v1706_v38   ;;  %v1606_v51 = vperm.slane %v1576_v50, 0 }
  0x97   : > { %v3416_v28 = vperm.slane %v1579_v25, 0 }
  0x98   : > { %vm1653_vm12 = vcmp.lt.s32.totalorder %v3271_v47, %v1606_v51  ;;  %1812 = vperm.xlu2 %2898, %v1707_v57   ;;  %vm1654_vm1 = vcmp.lt.s32.totalorder %v3281_v54, %v1606_v51 }
  0x99   : > { %v1717_v58 = vsel %vm1653_vm12, 1, %v3018_v43  ;;  %v1718_v17 = vsel %vm1654_vm1, 1, %v3018_v43  ;;  %vm1662_vm6 = vcmp.lt.s32.totalorder %v3281_v54, %v3416_v28  ;;  %vm1661_vm1 = vcmp.lt.s32.totalorder %v3271_v47, %v3416_v28 }
  0x9a   : > { %v1726_v33 = vsel %vm1662_vm6, 1, %v3018_v43 }
  0x9d   : > { %1815 = vperm.xlu0 %2896, %v1708_v32  }
  0x9e   : > { %1818 = vperm.xlu1 %2897, %v1709_v46  }
  0xa0   : > { %1821 = vperm.xlu2 %2898, %v1710_v4  }
  0xa4   : > { %2687 = vmatmul.msk.bf16.gmra.mxu0 %vm841_vm0, %v2767_v60  ;;  %2703 = vmatmul.msk.bf16.gmra.mxu2 %vm841_vm0, %v2783_v61  ;;  %v3378_v60 = vld [vmem:[%s3945_s3] ss:$0 sm:$0xff]  ;;  %v1605_v61 = vperm.slane %v1575_v59, 0 }
  0xa5   : > { %1824 = vperm.xlu0 %2896, %v1711_v40  }
  0xa6   : > { %1827 = vperm.xlu1 %2897, %v1712_v55   ;;  %vm1651_vm13 = vcmp.lt.s32.totalorder %v3271_v47, %v1605_v61  ;;  %vm1652_vm5 = vcmp.lt.s32.totalorder %v3281_v54, %v1605_v61 }
  0xa7   : > { %v1715_v2 = vsel %vm1651_vm13, 1, %v3018_v43  ;;  %v1716_v32 = vsel %vm1652_vm5, 1, %v3018_v43 }
  0xa8   : > { %1830 = vperm.xlu2 %2898, %v1713_v19   ;;  %v1583_v19 = vrot.slane %v3383_v62, 7 }
  0xad   : > { %1833 = vperm.xlu0 %2896, %v1714_v49   ;;  %v1719_v49 = vsel %vm1655_vm8, 1, %v3018_v43 }
  0xae   : > { %1836 = vperm.xlu1 %2897, %v1715_v2  }
  0xb0   : > { %1839 = vperm.xlu2 %2898, %v1716_v32  }
  0xb4   : > { %2688 = vmatmul.msk.bf16.gmra.mxu0 %vm841_vm0, %v2768_v9  ;;  %2704 = vmatmul.msk.bf16.gmra.mxu2 %vm841_vm0, %v2784_v10  ;;  %v1578_v9 = vrot.slane %v3383_v62, 2 }
  0xb5   : > { %1842 = vperm.xlu0 %2896, %v1717_v58  }
  0xb6   : > { %v1609_v12 = vperm.slane %v1578_v9, 0  ;;  %1845 = vperm.xlu1 %2897, %v1718_v17  }
  0xb8   : > { %vm1659_vm3 = vcmp.lt.s32.totalorder %v3271_v47, %v1609_v12  ;;  %vm1660_vm7 = vcmp.lt.s32.totalorder %v3281_v54, %v1609_v12  ;;  %1848 = vperm.xlu2 %2898, %v1719_v49   ;;  %v2790_v12 = vld [vmem:[%s3236_s13 + $0xd8] sm:$0xff] }
  0xb9   : > { %v1723_v20 = vsel %vm1659_vm3, 1, %v3018_v43  ;;  %v1724_v46 = vsel %vm1660_vm7, 1, %v3018_v43 }
  0xbd   : > { %1851 = vperm.xlu0 %2896, %v1720_v5   ;;  %v3459_v5 = vld [vmem:[%s3234_s11 + $0x18] sm:$0xff] }
  0xbe   : > { %v1586_v28 = vrot.slane %v3459_v5, 3 }
  0xc4   : > { %2689 = vmatmul.msk.bf16.gmra.mxu0 %vm841_vm0, %v2769_v22  ;;  %2705 = vmatmul.msk.bf16.gmra.mxu2 %vm841_vm0, %v2785_v23  ;;  %v1577_v23 = vrot.slane %v3383_v62, 1 }
  0xc5   : > { %1860 = vperm.xlu0 %2896, %v1723_v20  }
  0xc6   : > { %v3412_v26 = vperm.slane %v1577_v23, 0  ;;  %v3480_v23 = vperm.slane %v1583_v19, 0 }
  0xc8   : > { %vm1657_vm4 = vcmp.lt.s32.totalorder %v3271_v47, %v3412_v26  ;;  %vm1658_vm13 = vcmp.lt.s32.totalorder %v3281_v54, %v3412_v26  ;;  %vm1669_vm15 = vcmp.lt.s32.totalorder %v3271_v47, %v3480_v23 }
  0xc9   : > { %v1721_v30 = vsel %vm1657_vm4, 1, %v3018_v43 }
  0xca   : > { %1854 = vperm.xlu1 %2897, %v1721_v30  }
  0xcd   : > { %1869 = vperm.xlu0 %2896, %v1726_v33  }
  0xd2   : > { %1863 = vperm.xlu1 %2897, %v1724_v46  }
  0xd4   : > { %2690 = vmatmul.msk.bf16.gmra.mxu0 %vm841_vm0, %v2770_v36  ;;  %2706 = vmatmul.msk.bf16.gmra.mxu2 %vm841_vm0, %v2786_v37  ;;  %v1581_v37 = vrot.slane %v3383_v62, 5 }
  0xd6   : > { %v1612_v40 = vperm.slane %v1581_v37, 0 }
  0xd8   : > { %vm1665_vm9 = vcmp.lt.s32.totalorder %v3271_v47, %v1612_v40  ;;  %vm1666_vm12 = vcmp.lt.s32.totalorder %v3281_v54, %v1612_v40 }
  0xd9   : > { %v1729_v50 = vsel %vm1665_vm9, 1, %v3018_v43 }
  0xda   : > { %1878 = vperm.xlu0 %2896, %v1729_v50  }
  0xe1   : > { %v947_v56 = vpop.f32.mrf.mxu0 }
  0xe2   : > { %v948_v63 = vadd.f32 %v3378_v60, %v947_v56  ;;  %v1582_v56 = vrot.slane %v3383_v62, 6 }
  0xe4   : > { %2691 = vmatmul.msk.bf16.gmra.mxu0 %vm841_vm0, %v2771_v52  ;;  %2707 = vmatmul.msk.bf16.gmra.mxu2 %vm841_vm0, %v2787_v53  ;;  %v1107_v6 = vmax.f32 %v948_v63, 0.0  ;;  %v1580_v53 = vrot.slane %v3383_v62, 4  ;;  %v3449_v59 = vperm.slane %v1582_v56, 0  ;;  %v1733_v62 = vsel %vm1669_vm15, 1, %v3018_v43 }
  0xe6   : > { %v3445_v57 = vperm.slane %v1580_v53, 0  ;;  %vm1668_vm11 = vcmp.lt.s32.totalorder %v3281_v54, %v3449_v59  ;;  %vm1667_vm7 = vcmp.lt.s32.totalorder %v3271_v47, %v3449_v59  ;;  %v1589_v59 = vrot.slane %v3459_v5, 6 }
  0xe7   : > { %v1027_v1 = vpop.f32.mrf.mxu2 }
  0xe8   : > { %v1028_v10 = vadd.f32 %v3378_v60, %v1027_v1  ;;  %vm1663_vm10 = vcmp.lt.s32.totalorder %v3271_v47, %v3445_v57  ;;  %v1732_v1 = vsel %vm1668_vm11, 1, %v3018_v43  ;;  %vm1664_vm4 = vcmp.lt.s32.totalorder %v3281_v54, %v3445_v57 }
  0xe9   : > { %v949_v3 = vpop.f32.mrf.mxu0  ;;  %v1727_v63 = vsel %vm1663_vm10, 1, %v3018_v43  ;;  %1887 = vperm.xlu0 %2896, %v1732_v1   ;;  %vm1670_vm10 = vcmp.lt.s32.totalorder %v3281_v54, %v3480_v23 }
  0xea   : > { %v950_v7 = vadd.f32 %v3378_v60, %v949_v3  ;;  %v1139_v21 = vmax.f32 %v1028_v10, 0.0  ;;  %1872 = vperm.xlu1 %2897, %v1727_v63  }
  0xec   : > { %v1108_v8 = vmax.f32 %v950_v7, 0.0 }
  0xee   : > { %v1171_v11 = vpack.c.bf16 %v1108_v8, %v1107_v6  ;;  %v1615_v8 = vperm.slane %v3459_v5, 0 }
  0xef   : > { %v1029_v13 = vpop.f32.mrf.mxu2 }
  0xf0   : > { %v1030_v14 = vadd.f32 %v3378_v60, %v1029_v13  ;;  %2723 = vmatmul.msk.bf16.vlgmr.msra.gmra.mxu1 %vm841_vm0, %v1171_v11  ;;  %v2774_v11 = vld [vmem:[%s3236_s13 + $0x58] sm:$0xff]  ;;  %v1730_v13 = vsel %vm1666_vm12, 1, %v3018_v43  ;;  %vm1671_vm14 = vcmp.lt.s32.totalorder %v3271_v47, %v1615_v8  ;;  %vm1672_vm3 = vcmp.lt.s32.totalorder %v3281_v54, %v1615_v8 }
  0xf1   : > { %v952_v18 = vpop.f32.mrf.mxu0 }
  0xf2   : > { %v1140_v22 = vmax.f32 %v1030_v14, 0.0  ;;  %v953_v27 = vadd.f32 %v3378_v60, %v952_v18  ;;  %1881 = vperm.xlu1 %2897, %v1730_v13   ;;  %v1621_v13 = vperm.slane %v1589_v59, 0 }
  0xf4   : > { %2692 = vmatmul.msk.bf16.gmra.mxu0 %vm841_vm0, %v2772_v15  ;;  %2708 = vmatmul.msk.bf16.gmra.mxu2 %vm841_vm0, %v2788_v16  ;;  %v1187_v24 = vpack.c.bf16 %v1140_v22, %v1139_v21  ;;  %v1109_v34 = vmax.f32 %v953_v27, 0.0  ;;  %v1722_v15 = vsel %vm1658_vm13, 1, %v3018_v43  ;;  %v1735_v16 = vsel %vm1671_vm14, 1, %v3018_v43  ;;  %v3477_v21 = vpop.permute.xlu0 %1752 }
  0xf5   : > { %1857 = vperm.xlu2 %2898, %v1722_v15   ;;  %1896 = vperm.xlu0 %2896, %v1735_v16   ;;  %v1584_v22 = vrot.slane %v3459_v5, 1  ;;  %v2776_v15 = vld [vmem:[%s3236_s13 + $0x68] sm:$0xff]  ;;  %vm1683_vm11 = vcmp.lt.s32.totalorder %v3271_v47, %v1621_v13  ;;  %vm1684_vm15 = vcmp.lt.s32.totalorder %v3281_v54, %v1621_v13 }
  0xf6   : > { %2739 = vmatmul.msk.bf16.vlgmr.msra.gmra.mxu3 %vm841_vm0, %v1187_v24  ;;  %v2792_v16 = vld [vmem:[%s3236_s13 + $0xe8] sm:$0xff] }
  0xf7   : > { %v1032_v29 = vpop.f32.mrf.mxu2  ;;  %v3484_v25 = vperm.slane %v1584_v22, 0 }
  0xf8   : > { %v1033_v38 = vadd.f32 %v3378_v60, %v1032_v29  ;;  %v1725_v29 = vsel %vm1661_vm1, 1, %v3018_v43 }
  0xf9   : > { %v954_v31 = vpop.f32.mrf.mxu0  ;;  %vm1674_vm2 = vcmp.lt.s32.totalorder %v3281_v54, %v3484_v25  ;;  %vm1673_vm13 = vcmp.lt.s32.totalorder %v3271_v47, %v3484_v25 }
  0xfa   : > { %v955_v35 = vadd.f32 %v3378_v60, %v954_v31  ;;  %v1141_v51 = vmax.f32 %v1033_v38, 0.0  ;;  %1890 = vperm.xlu1 %2897, %v1733_v62   ;;  %v1738_v30 = vsel %vm1674_vm2, 1, %v3018_v43  ;;  %v1747_v62 = vsel %vm1683_vm11, 1, %v3018_v43 }
  0xfc   : > { %v1110_v36 = vmax.f32 %v955_v35, 0.0  ;;  %v3500_v37 = vpop.permute.xlu0 %1755 }
  0xfd   : > { %1866 = vperm.xlu2 %2898, %v1725_v29   ;;  %1905 = vperm.xlu0 %2896, %v1738_v30   ;;  %v1590_v30 = vrot.slane %v3459_v5, 7 }
  0xfe   : > { %v1172_v39 = vpack.c.bf16 %v1110_v36, %v1109_v34  ;;  %v3496_v34 = vpop.permute.xlu2 %1764 }
  0xff   : > { %v1034_v41 = vpop.f32.mrf.mxu2  ;;  %vm1947_vm11 = vcmp.eq.s32.totalorder %v3496_v34, 1 }
 0x100   : > { %v1035_v42 = vadd.f32 %v3378_v60, %v1034_v41  ;;  %2724 = vmatmul.msk.bf16.gmra.mxu1 %vm841_vm0, %v1172_v39  ;;  %v1618_v39 = vperm.slane %v1586_v28, 0  ;;  %v2775_v41 = vld [vmem:[%s3236_s13 + $0x60] sm:$0xff] }
 0x101   : > { %v957_v48 = vpop.f32.mrf.mxu0 }
 0x102   : > { %v1142_v52 = vmax.f32 %v1035_v42, 0.0  ;;  %v958_v58 = vadd.f32 %v3378_v60, %v957_v48  ;;  %v2791_v42 = vld [vmem:[%s3236_s13 + $0xe0] sm:$0xff]  ;;  %v1728_v48 = vsel %vm1664_vm4, 1, %v3018_v43  ;;  %vm1677_vm5 = vcmp.lt.s32.totalorder %v3271_v47, %v1618_v39 }
 0x103   : > { %vm1678_vm9 = vcmp.lt.s32.totalorder %v3281_v54, %v1618_v39 }
 0x104   : > { %2693 = vmatmul.msk.bf16.gmra.mxu0 %vm841_vm0, %v2773_v44  ;;  %2709 = vmatmul.msk.bf16.gmra.mxu2 %vm841_vm0, %v2789_v45  ;;  %v1188_v55 = vpack.c.bf16 %v1142_v52, %v1141_v51  ;;  %v1111_v2 = vmax.f32 %v958_v58, 0.0  ;;  %v3507_v44 = vpop.permute.xlu1 %1758  ;;  %v1736_v45 = vsel %vm1672_vm3, 1, %v3018_v43  ;;  %v1741_v51 = vsel %vm1677_vm5, 1, %v3018_v43 }
 0x105   : > { %1899 = vperm.xlu1 %2897, %v1736_v45   ;;  %1875 = vperm.xlu2 %2898, %v1728_v48   ;;  %v1585_v52 = vrot.slane %v3459_v5, 2  ;;  %vm1943_vm5 = vcmp.eq.s32.totalorder %v3477_v21, 1 }
 0x106   : > { %2740 = vmatmul.msk.bf16.gmra.mxu3 %vm841_vm0, %v1188_v55  ;;  %1914 = vperm.xlu0 %2896, %v1741_v51   ;;  %v1587_v55 = vrot.slane %v3459_v5, 4  ;;  %v3523_v58 = vpop.permute.xlu2 %1767  ;;  %v2777_v51 = vld [vmem:[%s3236_s13 + $0x70] sm:$0xff] }
 0x107   : > { %v1037_v61 = vpop.f32.mrf.mxu2  ;;  %v3519_v56 = vperm.slane %v1585_v52, 0  ;;  %v2793_v52 = vld [vmem:[%s3236_s13 + $0xf0] sm:$0xff] }
 0x108   : > { %v1038_v6 = vadd.f32 %v3378_v60, %v1037_v61  ;;  %v3525_v61 = vperm.slane %v1587_v55, 0 }
 0x109   : > { %v959_v0 = vpop.f32.mrf.mxu0  ;;  %vm1675_vm6 = vcmp.lt.s32.totalorder %v3271_v47, %v3519_v56  ;;  %vm1676_vm1 = vcmp.lt.s32.totalorder %v3281_v54, %v3519_v56 }
 0x10a   : > { %v960_v3 = vadd.f32 %v3378_v60, %v959_v0  ;;  %v1143_v17 = vmax.f32 %v1038_v6, 0.0  ;;  %v3529_v0 = vpop.permute.xlu0 %1770  ;;  %v1739_v1 = vsel %vm1675_vm6, 1, %v3018_v43  ;;  %vm1680_vm8 = vcmp.lt.s32.totalorder %v3281_v54, %v3525_v61 }
 0x10b   : > { %vm1679_vm2 = vcmp.lt.s32.totalorder %v3271_v47, %v3525_v61  ;;  %v2778_v61 = vld [vmem:[%s3236_s13 + $0x78] sm:$0xff]  ;;  %vm1944_vm6 = vcmp.eq.s32.totalorder %v3500_v37, 1 }
 0x10c   : > { %v1112_v4 = vmax.f32 %v960_v3, 0.0  ;;  %v1731_v3 = vsel %vm1667_vm7, 1, %v3018_v43  ;;  %v3539_v8 = vpop.permute.xlu1 %1761  ;;  %v1743_v59 = vsel %vm1679_vm2, 1, %v3018_v43  ;;  %vm1945_vm7 = vcmp.eq.s32.totalorder %v3507_v44, 1 }
 0x10d   : > { %1908 = vperm.xlu1 %2897, %v1739_v1   ;;  %1884 = vperm.xlu2 %2898, %v1731_v3  }
 0x10e   : > { %v1173_v7 = vpack.c.bf16 %v1112_v4, %v1111_v2  ;;  %v1744_v4 = vsel %vm1680_vm8, 1, %v3018_v43 }
 0x10f   : > { %v1039_v9 = vpop.f32.mrf.mxu2  ;;  %1923 = vperm.xlu0 %2896, %v1744_v4  }
 0x110   : > { %v1040_v10 = vadd.f32 %v3378_v60, %v1039_v9  ;;  %2725 = vmatmul.msk.bf16.gmra.mxu1 %vm841_vm0, %v1173_v7 }
 0x111   : > { %v962_v14 = vpop.f32.mrf.mxu0 }
 0x112   : > { %v1144_v18 = vmax.f32 %v1040_v10, 0.0  ;;  %v963_v24 = vadd.f32 %v3378_v60, %v962_v14 }
 0x114   : > { %2694 = vmatmul.msk.bf16.gmra.mxu0 %vm841_vm0, %v2774_v11  ;;  %2710 = vmatmul.msk.bf16.gmra.mxu2 %vm841_vm0, %v2790_v12  ;;  %v1189_v20 = vpack.c.bf16 %v1144_v18, %v1143_v17  ;;  %v1113_v31 = vmax.f32 %v963_v24, 0.0  ;;  %v3548_v17 = vpop.permute.xlu2 %1776  ;;  %v1742_v18 = vsel %vm1678_vm9, 1, %v3018_v43  ;;  %v3561_v23 = vpop.permute.xlu1 %1773 }
 0x115   : > { %1917 = vperm.xlu1 %2897, %v1742_v18  }
 0x116   : > { %2741 = vmatmul.msk.bf16.gmra.mxu3 %vm841_vm0, %v1189_v20  ;;  %v1734_v20 = vsel %vm1670_vm10, 1, %v3018_v43  ;;  %vm1946_vm10 = vcmp.eq.s32.totalorder %v3539_v8, 1 }
 0x117   : > { %v1042_v26 = vpop.f32.mrf.mxu2  ;;  %1893 = vperm.xlu2 %2898, %v1734_v20   ;;  %1932 = vperm.xlu0 %2896, %v1747_v62   ;;  %v2794_v20 = vld [vmem:[%s3236_s13 + $0xf8] sm:$0xff] }
 0x118   : > { %v1043_v35 = vadd.f32 %v3378_v60, %v1042_v26  ;;  %v3555_v26 = vpop.permute.xlu0 %1779 }
 0x119   : > { %v964_v27 = vpop.f32.mrf.mxu0 }
 0x11a   : > { %v965_v32 = vadd.f32 %v3378_v60, %v964_v27  ;;  %v1145_v49 = vmax.f32 %v1043_v35, 0.0  ;;  %v1588_v27 = vrot.slane %v3459_v5, 5 }
 0x11c   : > { %v1114_v33 = vmax.f32 %v965_v32, 0.0  ;;  %v3585_v48 = vpop.permute.xlu1 %1782 }
 0x11e   : > { %v1174_v36 = vpack.c.bf16 %v1114_v33, %v1113_v31  ;;  %v3564_v31 = vperm.slane %v1588_v27, 0  ;;  %v3568_v33 = vperm.slane %v1590_v30, 0 }
 0x11f   : > { %v1044_v38 = vpop.f32.mrf.mxu2 }
 0x120   : > { %v1045_v40 = vadd.f32 %v3378_v60, %v1044_v38  ;;  %2726 = vmatmul.msk.bf16.gmra.mxu1 %vm841_vm0, %v1174_v36  ;;  %vm1681_vm12 = vcmp.lt.s32.totalorder %v3271_v47, %v3564_v31  ;;  %vm1686_vm14 = vcmp.lt.s32.totalorder %v3281_v54, %v3568_v33  ;;  %v1737_v36 = vsel %vm1673_vm13, 1, %v3018_v43  ;;  %v3582_v25 = vpop.permute.xlu0 %1788 }
 0x121   : > { %v967_v46 = vpop.f32.mrf.mxu0  ;;  %v1745_v35 = vsel %vm1681_vm12, 1, %v3018_v43  ;;  %v1750_v38 = vsel %vm1686_vm14, 1, %v3018_v43  ;;  %1902 = vperm.xlu2 %2898, %v1737_v36   ;;  %vm1682_vm3 = vcmp.lt.s32.totalorder %v3281_v54, %v3564_v31  ;;  %vm1685_vm4 = vcmp.lt.s32.totalorder %v3271_v47, %v3568_v33 }
 0x122   : > { %v1146_v50 = vmax.f32 %v1045_v40, 0.0  ;;  %v968_v57 = vadd.f32 %v3378_v60, %v967_v46  ;;  %1926 = vperm.xlu1 %2897, %v1745_v35   ;;  %1941 = vperm.xlu0 %2896, %v1750_v38   ;;  %v1749_v31 = vsel %vm1685_vm4, 1, %v3018_v43  ;;  %vm1948_vm14 = vcmp.eq.s32.totalorder %v3523_v58, 1 }
 0x123   : > { %vm2333_vm4 = vcmask 1042434  }
 0x124   : > { %2695 = vmatmul.msk.bf16.gmra.mxu0 %vm841_vm0, %v2775_v41  ;;  %2711 = vmatmul.msk.bf16.gmra.mxu2 %vm841_vm0, %v2791_v42  ;;  %v1190_v53 = vpack.c.bf16 %v1146_v50, %v1145_v49  ;;  %v1115_v6 = vmax.f32 %v968_v57, 0.0  ;;  %v3580_v41 = vpop.permute.xlu2 %1785  ;;  %v1740_v57 = vsel %vm1676_vm1, 1, %v3018_v43  ;;  %vm1949_vm1 = vcmp.eq.s32.totalorder %v3529_v0, 1 }
 0x126   : > { %2742 = vmatmul.msk.bf16.gmra.mxu3 %vm841_vm0, %v1190_v53  ;;  %v1748_v53 = vsel %vm1684_vm15, 1, %v3018_v43  ;;  %vm2331_vm15 = vcmask 1041409  }
 0x127   : > { %v1047_v63 = vpop.f32.mrf.mxu2 }
 0x128   : > { %v1048_v10 = vadd.f32 %v3378_v60, %v1047_v63 }
 0x129   : > { %v969_v2 = vpop.f32.mrf.mxu0  ;;  %1911 = vperm.xlu2 %2898, %v1740_v57  }
 0x12a   : > { %v970_v7 = vadd.f32 %v3378_v60, %v969_v2  ;;  %v1147_v22 = vmax.f32 %v1048_v10, 0.0  ;;  %1935 = vperm.xlu1 %2897, %v1748_v53  }
 0x12c   : > { %v1116_v9 = vmax.f32 %v970_v7, 0.0  ;;  %v3598_v3 = vpop.permute.xlu2 %1794  ;;  %v3604_v7 = vpop.permute.xlu1 %1791 }
 0x12e   : > { %v1175_v11 = vpack.c.bf16 %v1116_v9, %v1115_v6  ;;  %v3602_v6 = vpop.permute.xlu0 %1797 }
 0x12f   : > { %v1049_v12 = vpop.f32.mrf.mxu2 }
 0x130   : > { %v1050_v14 = vadd.f32 %v3378_v60, %v1049_v12  ;;  %2727 = vmatmul.msk.bf16.gmra.mxu1 %vm841_vm0, %v1175_v11 }
 0x131   : > { %v972_v19 = vpop.f32.mrf.mxu0  ;;  %1920 = vperm.xlu2 %2898, %v1743_v59  }
 0x132   : > { %v1148_v24 = vmax.f32 %v1050_v14, 0.0  ;;  %v973_v32 = vadd.f32 %v3378_v60, %v972_v19 }
 0x134   : > { %v1191_v29 = vpack.c.bf16 %v1148_v24, %v1147_v22  ;;  %2696 = vmatmul.msk.bf16.gmra.mxu0 %vm841_vm0, %v2776_v15  ;;  %2712 = vmatmul.msk.bf16.gmra.mxu2 %vm841_vm0, %v2792_v16  ;;  %v1117_v39 = vmax.f32 %v973_v32, 0.0  ;;  %v3611_v15 = vpop.permute.xlu2 %1803  ;;  %v1746_v24 = vsel %vm1682_vm3, 1, %v3018_v43 }
 0x136   : > { %2743 = vmatmul.msk.bf16.gmra.mxu3 %vm841_vm0, %v1191_v29  ;;  %v3615_v19 = vpop.permute.xlu0 %1806  ;;  %v3622_v29 = vpop.permute.xlu1 %1800 }
 0x137   : > { %v1052_v28 = vpop.f32.mrf.mxu2 }
 0x138   : > { %v1053_v45 = vadd.f32 %v3378_v60, %v1052_v28 }
 0x139   : > { %v974_v5 = vpop.f32.mrf.mxu0  ;;  %1929 = vperm.xlu2 %2898, %v1746_v24  }
 0x13a   : > { %v975_v40 = vadd.f32 %v3378_v60, %v974_v5  ;;  %v1149_v63 = vmax.f32 %v1053_v45, 0.0 }
 0x13c   : > { %v1118_v42 = vmax.f32 %v975_v40, 0.0  ;;  %v3628_v35 = vpop.permute.xlu2 %1812 }
 0x13e   : > { %v1176_v46 = vpack.c.bf16 %v1118_v42, %v1117_v39  ;;  %v3634_v38 = vpop.permute.xlu0 %1815  ;;  %v3636_v40 = vpop.permute.xlu1 %1809 }
 0x13f   : > { %v1054_v49 = vpop.f32.mrf.mxu2 }
 0x140   : > { %v1055_v50 = vadd.f32 %v3378_v60, %v1054_v49  ;;  %2728 = vmatmul.msk.bf16.gmra.mxu1 %vm841_vm0, %v1176_v46 }
 0x141   : > { %v977_v55 = vpop.f32.mrf.mxu0  ;;  %1938 = vperm.xlu2 %2898, %v1749_v31  }
 0x142   : > { %v1150_v1 = vmax.f32 %v1055_v50, 0.0  ;;  %v978_v4 = vadd.f32 %v3378_v60, %v977_v55 }
 0x144   : > { %v1192_v2 = vpack.c.bf16 %v1150_v1, %v1149_v63  ;;  %2697 = vmatmul.msk.bf16.gmra.mxu0 %vm841_vm0, %v2777_v51  ;;  %2713 = vmatmul.msk.bf16.gmra.mxu2 %vm841_vm0, %v2793_v52  ;;  %v1119_v10 = vmax.f32 %v978_v4, 0.0  ;;  %v3641_v50 = vpop.permute.xlu2 %1821  ;;  %v3653_v4 = vld [vmem:[%s3947_s5] ss:$0 sm:$0xff] }
 0x146   : > { %2744 = vmatmul.msk.bf16.gmra.mxu3 %vm841_vm0, %v1192_v2  ;;  %v3643_v52 = vpop.permute.xlu0 %1824  ;;  %v3647_v55 = vpop.permute.xlu1 %1818 }
 0x147   : > { %v1057_v56 = vpop.f32.mrf.mxu2 }
 0x148   : > { %v1058_v13 = vadd.f32 %v3378_v60, %v1057_v56 }
 0x149   : > { %v979_v9 = vpop.f32.mrf.mxu0 }
 0x14a   : > { %v980_v11 = vadd.f32 %v3378_v60, %v979_v9  ;;  %v1151_v62 = vmax.f32 %v1058_v13, 0.0 }
 0x14c   : > { %v1120_v12 = vmax.f32 %v980_v11, 0.0  ;;  %v3655_v9 = vpop.permute.xlu2 %1830 }
 0x14e   : > { %v1177_v14 = vpack.c.bf16 %v1120_v12, %v1119_v10  ;;  %v3658_v12 = vpop.permute.xlu0 %1833 }
 0x14f   : > { %v1059_v16 = vpop.f32.mrf.mxu2 }
 0x150   : > { %v1060_v18 = vadd.f32 %v3378_v60, %v1059_v16  ;;  %2729 = vmatmul.msk.bf16.gmra.mxu1 %vm841_vm0, %v1177_v14 }
 0x151   : > { %v982_v22 = vpop.f32.mrf.mxu0 }
 0x152   : > { %v1152_v27 = vmax.f32 %v1060_v18, 0.0  ;;  %v983_v32 = vadd.f32 %v3378_v60, %v982_v22 }
 0x154   : > { %v1193_v30 = vpack.c.bf16 %v1152_v27, %v1151_v62  ;;  %2698 = vmatmul.msk.bf16.gmra.mxu0 %vm841_vm0, %v2778_v61  ;;  %2714 = vmatmul.msk.bf16.gmra.mxu2 %vm841_vm0, %v2794_v20  ;;  %v1121_v5 = vmax.f32 %v983_v32, 0.0  ;;  %v3664_v61 = vpop.permute.xlu1 %1827 }
 0x156   : > { %2745 = vmatmul.msk.bf16.gmra.mxu3 %vm841_vm0, %v1193_v30  ;;  %v3672_v31 = vpop.permute.xlu0 %1842 }
 0x157   : > { %v1062_v28 = vpop.f32.mrf.mxu2 }
 0x158   : > { %v1063_v42 = vadd.f32 %v3378_v60, %v1062_v28  ;;  %v3667_v28 = vpop.permute.xlu2 %1839 }
 0x159   : > { %v984_v54 = vpop.f32.mrf.mxu0 }
 0x15a   : > { %v985_v36 = vadd.f32 %v3378_v60, %v984_v54  ;;  %v1153_v33 = vmax.f32 %v1063_v42, 0.0 }
 0x15c   : > { %v1122_v39 = vmax.f32 %v985_v36, 0.0 }
 0x15e   : > { %v1178_v45 = vpack.c.bf16 %v1122_v39, %v1121_v5 }
 0x15f   : > { %v1064_v46 = vpop.f32.mrf.mxu2 }
 0x160   : > { %v1065_v49 = vadd.f32 %v3378_v60, %v1064_v46  ;;  %2730 = vmatmul.msk.bf16.gmra.mxu1 %vm841_vm0, %v1178_v45 }
 0x161   : > { %v987_v47 = vpop.f32.mrf.mxu0 }
 0x162   : > { %v1154_v43 = vmax.f32 %v1065_v49, 0.0  ;;  %v988_v53 = vadd.f32 %v3378_v60, %v987_v47  ;;  %v3675_v49 = vpop.permute.xlu1 %1836 }
 0x164   : > { %v1194_v51 = vpack.c.bf16 %v1154_v43, %v1153_v33  ;;  %v1123_v1 = vmax.f32 %v988_v53, 0.0 }
 0x166   : > { %2746 = vmatmul.msk.bf16.gmra.mxu3 %vm841_vm0, %v1194_v51 }
 0x167   : > { %v1067_v57 = vpop.f32.mrf.mxu2 }
 0x168   : > { %v1068_v10 = vadd.f32 %v3378_v60, %v1067_v57 }
 0x169   : > { %v989_v63 = vpop.f32.mrf.mxu0 }
 0x16a   : > { %v990_v2 = vadd.f32 %v3378_v60, %v989_v63  ;;  %v1155_v22 = vmax.f32 %v1068_v10, 0.0 }
 0x16c   : > { %v1124_v56 = vmax.f32 %v990_v2, 0.0 }
 0x16d   : > { %v1328_v59 = vpop.f32.mrf.mxu1 }
 0x16e   : > { %v1179_v11 = vpack.c.bf16 %v1124_v56, %v1123_v1  ;;  %v1329_v13 = vadd.f32 %v3653_v4, %v1328_v59  ;;  %v1849_v1 = vpop.permute.xlu2 %1848 }
 0x16f   : > { %v1069_v14 = vpop.f32.mrf.mxu2  ;;  %vm1975_vm8 = vcmp.eq.s32.totalorder %v1849_v1, 1 }
 0x170   : > { %v1488_v16 = vmax.f32 %v1329_v13, 0.0  ;;  %v1070_v18 = vadd.f32 %v3378_v60, %v1069_v14  ;;  %2731 = vmatmul.msk.bf16.gmra.mxu1 %vm841_vm0, %v1179_v11  ;;  %v1852_v14 = vpop.permute.xlu0 %1851 }
 0x171   : > { %v992_v20 = vpop.f32.mrf.mxu0  ;;  %vm1976_vm9 = vcmp.eq.s32.totalorder %v1852_v14, 1 }
 0x172   : > { %v2007_v24 = vsel %vm1943_vm5, %v1488_v16, -1e+30  ;;  %v1156_v62 = vmax.f32 %v1070_v18, 0.0  ;;  %v993_v32 = vadd.f32 %v3378_v60, %v992_v20  ;;  %vm1950_vm5 = vcmp.eq.s32.totalorder %v3561_v23, 1 }
 0x174   : > { %v1195_v27 = vpack.c.bf16 %v1156_v62, %v1155_v22  ;;  %v1125_v42 = vmax.f32 %v993_v32, 0.0  ;;  %v3684_v62 = vpop.permute.xlu1 %1845 }
 0x175   : > { %v1330_v30 = vpop.f32.mrf.mxu1 }
 0x176   : > { %v1331_v21 = vadd.f32 %v3653_v4, %v1330_v30  ;;  %2747 = vmatmul.msk.bf16.gmra.mxu3 %vm841_vm0, %v1195_v27 }
 0x177   : > { %v1072_v54 = vpop.f32.mrf.mxu2 }
 0x178   : > { %v1489_v5 = vmax.f32 %v1331_v21, 0.0  ;;  %v1073_v43 = vadd.f32 %v3378_v60, %v1072_v54 }
 0x179   : > { %v994_v36 = vpop.f32.mrf.mxu0  ;;  %v1408_v39 = vpop.f32.mrf.mxu3 }
 0x17a   : > { %v2008_v45 = vsel %vm1944_vm6, %v1489_v5, -1e+30  ;;  %v995_v46 = vadd.f32 %v3378_v60, %v994_v36  ;;  %v1409_v37 = vadd.f32 %v3653_v4, %v1408_v39  ;;  %v1157_v59 = vmax.f32 %v1073_v43, 0.0 }
 0x17b   : > { %v2075_v47 = vmax.f32 %v2007_v24, %v2008_v45 }
 0x17c   : > { %v1126_v33 = vmax.f32 %v995_v46, 0.0  ;;  %v1520_v13 = vmax.f32 %v1409_v37, 0.0 }
 0x17d   : > { %v1333_v51 = vpop.f32.mrf.mxu1  ;;  %v2076_v22 = vrot.slane %v2075_v47, 4 }
 0x17e   : > { %v1180_v53 = vpack.c.bf16 %v1126_v33, %v1125_v42  ;;  %v1334_v57 = vadd.f32 %v3653_v4, %v1333_v51  ;;  %v2039_v30 = vsel %vm1975_vm8, %v1520_v13, -1e+30  ;;  %vm2335_vm8 = vcmask 1043459  }
 0x17f   : > { %v1074_v63 = vpop.f32.mrf.mxu2  ;;  %v2077_v5 = vmax.f32 %v2075_v47, %v2076_v22  ;;  %v1855_v47 = vpop.permute.xlu1 %1854 }
 0x180   : > { %v1490_v2 = vmax.f32 %v1334_v57, 0.0  ;;  %v1075_v56 = vadd.f32 %v3378_v60, %v1074_v63  ;;  %2732 = vmatmul.msk.bf16.gmra.mxu1 %vm841_vm0, %v1180_v53  ;;  %vm1977_vm12 = vcmp.eq.s32.totalorder %v1855_v47, 1 }
 0x181   : > { %v997_v10 = vpop.f32.mrf.mxu0  ;;  %v1410_v11 = vpop.f32.mrf.mxu3  ;;  %v2078_v53 = vrot.slane %v2077_v5, 2 }
 0x182   : > { %v2009_v16 = vsel %vm1945_vm7, %v1490_v2, -1e+30  ;;  %v1158_v18 = vmax.f32 %v1075_v56, 0.0  ;;  %v1411_v20 = vadd.f32 %v3653_v4, %v1410_v11  ;;  %v998_v32 = vadd.f32 %v3378_v60, %v997_v10 }
 0x183   : > { %v2079_v10 = vmax.f32 %v2077_v5, %v2078_v53 }
 0x184   : > { %v1196_v44 = vpack.c.bf16 %v1158_v18, %v1157_v59  ;;  %v1521_v24 = vmax.f32 %v1411_v20, 0.0  ;;  %v1127_v33 = vmax.f32 %v998_v32, 0.0 }
 0x185   : > { %v1335_v27 = vpop.f32.mrf.mxu1 }
 0x186   : > { %v2040_v21 = vsel %vm1976_vm9, %v1521_v24, -1e+30  ;;  %v1336_v54 = vadd.f32 %v3653_v4, %v1335_v27  ;;  %2748 = vmatmul.msk.bf16.gmra.mxu3 %vm841_vm0, %v1196_v44  ;;  %vm1951_vm9 = vcmp.eq.s32.totalorder %v3548_v17, 1 }
 0x187   : > { %v2187_v36 = vmax.f32 %v2039_v30, %v2040_v21  ;;  %v1077_v39 = vpop.f32.mrf.mxu2  ;;  %v1858_v30 = vpop.permute.xlu2 %1857 }
 0x188   : > { %v1491_v42 = vmax.f32 %v1336_v54, 0.0  ;;  %v1078_v1 = vadd.f32 %v3378_v60, %v1077_v39  ;;  %v2080_v54 = vrot.slane %v2079_v10, 1  ;;  %vm1978_vm13 = vcmp.eq.s32.totalorder %v1858_v30, 1 }
 0x189   : > { %v999_v45 = vpop.f32.mrf.mxu0  ;;  %v1413_v46 = vpop.f32.mrf.mxu3  ;;  %v2188_v11 = vrot.slane %v2187_v36, 4 }
 0x18a   : > { %v2010_v43 = vsel %vm1946_vm10, %v1491_v42, -1e+30  ;;  %v1000_v51 = vadd.f32 %v3378_v60, %v999_v45  ;;  %v1414_v8 = vadd.f32 %v3653_v4, %v1413_v46  ;;  %v1159_v22 = vmax.f32 %v1078_v1, 0.0 }
 0x18b   : > { %v2082_v37 = vmax.f32 %v2009_v16, %v2010_v43  ;;  %v2189_v5 = vmax.f32 %v2187_v36, %v2188_v11  ;;  %vm1952_vm10 = vcmp.eq.s32.totalorder %v3555_v26, 1 }
 0x18c   : > { %v1128_v57 = vmax.f32 %v1000_v51, 0.0  ;;  %v1522_v27 = vmax.f32 %v1414_v8, 0.0 }
 0x18d   : > { %v2083_v63 = vrot.slane %v2082_v37, 4  ;;  %v1338_v2 = vpop.f32.mrf.mxu1  ;;  %v2190_v36 = vrot.slane %v2189_v5, 2 }
 0x18e   : > { %v1181_v56 = vpack.c.bf16 %v1128_v57, %v1127_v33  ;;  %v1339_v59 = vadd.f32 %v3653_v4, %v1338_v2  ;;  %v2041_v43 = vsel %vm1977_vm12, %v1522_v27, -1e+30  ;;  %v2081_v57 = vmax.f32 %v2079_v10, %v2080_v54 }
 0x18f   : > { %v2084_v13 = vmax.f32 %v2082_v37, %v2083_v63  ;;  %v1079_v14 = vpop.f32.mrf.mxu2  ;;  %vm1954_vm12 = vcmp.eq.s32.totalorder %v3580_v41, 1 }
 0x190   : > { %v1492_v18 = vmax.f32 %v1339_v59, 0.0  ;;  %v1080_v16 = vadd.f32 %v3378_v60, %v1079_v14  ;;  %2733 = vmatmul.msk.bf16.gmra.mxu1 %vm841_vm0, %v1181_v56 }
 0x191   : > { %v2085_v20 = vrot.slane %v2084_v13, 2  ;;  %v1002_v44 = vpop.f32.mrf.mxu0  ;;  %v1415_v24 = vpop.f32.mrf.mxu3 }
 0x192   : > { %v2011_v32 = vsel %vm1947_vm11, %v1492_v18, -1e+30  ;;  %v1160_v21 = vmax.f32 %v1080_v16, 0.0  ;;  %v1416_v34 = vadd.f32 %v3653_v4, %v1415_v24  ;;  %v1003_v51 = vadd.f32 %v3378_v60, %v1002_v44 }
 0x193   : > { %v2086_v39 = vmax.f32 %v2084_v13, %v2085_v20  ;;  %v2191_v16 = vmax.f32 %v2189_v5, %v2190_v36  ;;  %v1861_v5 = vpop.permute.xlu0 %1860  ;;  %vm2337_vm11 = vcmask 1044484  }
 0x194   : > { %v1197_v42 = vpack.c.bf16 %v1160_v21, %v1159_v22  ;;  %v1523_v45 = vmax.f32 %v1416_v34, 0.0  ;;  %v1129_v47 = vmax.f32 %v1003_v51, 0.0  ;;  %vm1979_vm2 = vcmp.eq.s32.totalorder %v1861_v5, 1 }
 0x195   : > { %v2087_v46 = vrot.slane %v2086_v39, 1  ;;  %v1340_v33 = vpop.f32.mrf.mxu1  ;;  %v2192_v58 = vrot.slane %v2191_v16, 1 }
 0x196   : > { %v2042_v53 = vsel %vm1978_vm13, %v1523_v45, -1e+30  ;;  %v1341_v37 = vadd.f32 %v3653_v4, %v1340_v33  ;;  %2749 = vmatmul.msk.bf16.gmra.mxu3 %vm841_vm0, %v1197_v42  ;;  %vm1953_vm13 = vcmp.eq.s32.totalorder %v3585_v48, 1 }
 0x197   : > { %v2088_v63 = vmax.f32 %v2086_v39, %v2087_v46  ;;  %v2194_v1 = vmax.f32 %v2041_v43, %v2042_v53  ;;  %v1082_v2 = vpop.f32.mrf.mxu2 }
 0x198   : > { %v1493_v56 = vmax.f32 %v1341_v37, 0.0  ;;  %v1083_v27 = vadd.f32 %v3378_v60, %v1082_v2 }
 0x199   : > { %v2332_v8 = vsel %vm2331_vm15, %v2088_v63, %v2081_v57  ;;  %v2195_v59 = vrot.slane %v2194_v1, 4  ;;  %v1004_v11 = vpop.f32.mrf.mxu0  ;;  %v1418_v13 = vpop.f32.mrf.mxu3 }
 0x19a   : > { %v2012_v14 = vsel %vm1948_vm14, %v1493_v56, -1e+30  ;;  %v1005_v18 = vadd.f32 %v3378_v60, %v1004_v11  ;;  %v1419_v34 = vadd.f32 %v3653_v4, %v1418_v13  ;;  %v1161_v51 = vmax.f32 %v1083_v27, 0.0  ;;  %v1864_v57 = vpop.permute.xlu1 %1863 }
 0x19b   : > { %v2196_v20 = vmax.f32 %v2194_v1, %v2195_v59  ;;  %v2089_v22 = vmax.f32 %v2011_v32, %v2012_v14  ;;  %v2193_v56 = vmax.f32 %v2191_v16, %v2192_v58  ;;  %vm1980_vm3 = vcmp.eq.s32.totalorder %v1864_v57, 1 }
 0x19c   : > { %v1130_v10 = vmax.f32 %v1005_v18, 0.0  ;;  %v1524_v36 = vmax.f32 %v1419_v34, 0.0  ;;  %vm2339_vm14 = vcmask 1045509  }
 0x19d   : > { %v2197_v44 = vrot.slane %v2196_v20, 2  ;;  %v2090_v24 = vrot.slane %v2089_v22, 4  ;;  %v1343_v30 = vpop.f32.mrf.mxu1 }
 0x19e   : > { %v1182_v21 = vpack.c.bf16 %v1130_v10, %v1129_v47  ;;  %v1344_v54 = vadd.f32 %v3653_v4, %v1343_v30 }
 0x19f   : > { %v2198_v39 = vmax.f32 %v2196_v20, %v2197_v44  ;;  %v2091_v42 = vmax.f32 %v2089_v22, %v2090_v24  ;;  %v1084_v45 = vpop.f32.mrf.mxu2  ;;  %v2043_v22 = vsel %vm1979_vm2, %v1524_v36, -1e+30  ;;  %vm1956_vm2 = vcmp.eq.s32.totalorder %v3604_v7, 1 }
 0x1a0   : > { %v1494_v46 = vmax.f32 %v1344_v54, 0.0  ;;  %v1085_v32 = vadd.f32 %v3378_v60, %v1084_v45  ;;  %2734 = vmatmul.msk.bf16.gmra.mxu1 %vm841_vm0, %v1182_v21 }
 0x1a1   : > { %v2199_v33 = vrot.slane %v2198_v39, 1  ;;  %v2092_v43 = vrot.slane %v2091_v42, 2  ;;  %v1007_v53 = vpop.f32.mrf.mxu0  ;;  %v1420_v37 = vpop.f32.mrf.mxu3 }
 0x1a2   : > { %v2013_v63 = vsel %vm1949_vm1, %v1494_v46, -1e+30  ;;  %v1162_v1 = vmax.f32 %v1085_v32, 0.0  ;;  %v1421_v2 = vadd.f32 %v3653_v4, %v1420_v37  ;;  %v1008_v10 = vadd.f32 %v3378_v60, %v1007_v53  ;;  %v3726_v60 = vld [vmem:[%s3945_s3] ss:$0 sm:$0xff] }
 0x1a3   : > { %v2200_v59 = vmax.f32 %v2198_v39, %v2199_v33  ;;  %v2093_v11 = vmax.f32 %v2091_v42, %v2092_v43  ;;  %vm1955_vm1 = vcmp.eq.s32.totalorder %v3582_v25, 1 }
 0x1a4   : > { %v1198_v13 = vpack.c.bf16 %v1162_v1, %v1161_v51  ;;  %v1525_v47 = vmax.f32 %v1421_v2, 0.0  ;;  %v1131_v39 = vmax.f32 %v1008_v10, 0.0  ;;  %v1867_v1 = vpop.permute.xlu2 %1866 }
 0x1a5   : > { %v2352_v14 = vsel %vm2331_vm15, %v2200_v59, %v2193_v56  ;;  %v2094_v18 = vrot.slane %v2093_v11, 1  ;;  %v1345_v20 = vpop.f32.mrf.mxu1  ;;  %vm1981_vm6 = vcmp.eq.s32.totalorder %v1867_v1, 1 }
 0x1a6   : > { %v2044_v0 = vsel %vm1980_vm3, %v1525_v47, -1e+30  ;;  %v1346_v44 = vadd.f32 %v3653_v4, %v1345_v20  ;;  %2750 = vmatmul.msk.bf16.gmra.mxu3 %vm841_vm0, %v1198_v13  ;;  %v1870_v47 = vpop.permute.xlu0 %1869 }
 0x1a7   : > { %v2095_v16 = vmax.f32 %v2093_v11, %v2094_v18  ;;  %v2201_v24 = vmax.f32 %v2043_v22, %v2044_v0  ;;  %v1087_v27 = vpop.f32.mrf.mxu2  ;;  %vm1982_vm7 = vcmp.eq.s32.totalorder %v1870_v47, 1 }
 0x1a8   : > { %v1495_v30 = vmax.f32 %v1346_v44, 0.0  ;;  %v1088_v51 = vadd.f32 %v3726_v60, %v1087_v27 }
 0x1a9   : > { %v2334_v21 = vsel %vm2333_vm4, %v2095_v16, %v2332_v8  ;;  %v2202_v34 = vrot.slane %v2201_v24, 4  ;;  %v1009_v54 = vpop.f32.mrf.mxu0  ;;  %v1423_v58 = vpop.f32.mrf.mxu3 }
 0x1aa   : > { %v2014_v42 = vsel %vm1950_vm5, %v1495_v30, -1e+30  ;;  %v1010_v45 = vadd.f32 %v3726_v60, %v1009_v54  ;;  %v1424_v43 = vadd.f32 %v3653_v4, %v1423_v58  ;;  %v1163_v18 = vmax.f32 %v1088_v51, 0.0 }
 0x1ab   : > { %v2203_v5 = vmax.f32 %v2201_v24, %v2202_v34  ;;  %v2096_v23 = vmax.f32 %v2013_v63, %v2014_v42 }
 0x1ac   : > { %v1132_v46 = vmax.f32 %v1010_v45, 0.0  ;;  %v1526_v59 = vmax.f32 %v1424_v43, 0.0 }
 0x1ad   : > { %v2204_v32 = vrot.slane %v2203_v5, 2  ;;  %v2097_v33 = vrot.slane %v2096_v23, 4  ;;  %v1348_v8 = vpop.f32.mrf.mxu1 }
 0x1ae   : > { %v1183_v53 = vpack.c.bf16 %v1132_v46, %v1131_v39  ;;  %v1349_v20 = vadd.f32 %v3653_v4, %v1348_v8  ;;  %v2045_v34 = vsel %vm1981_vm6, %v1526_v59, -1e+30 }
 0x1af   : > { %v2205_v37 = vmax.f32 %v2203_v5, %v2204_v32  ;;  %v2098_v57 = vmax.f32 %v2096_v23, %v2097_v33  ;;  %v1089_v36 = vpop.f32.mrf.mxu2 }
 0x1b0   : > { %v1090_v2 = vadd.f32 %v3726_v60, %v1089_v36  ;;  %2735 = vmatmul.msk.bf16.gmra.mxu1 %vm841_vm0, %v1183_v53  ;;  %v1496_v58 = vmax.f32 %v1349_v20, 0.0 }
 0x1b1   : > { %v2206_v56 = vrot.slane %v2205_v37, 1  ;;  %v2099_v63 = vrot.slane %v2098_v57, 2  ;;  %v1012_v11 = vpop.f32.mrf.mxu0  ;;  %v1425_v13 = vpop.f32.mrf.mxu3 }
 0x1b2   : > { %v1164_v22 = vmax.f32 %v1090_v2, 0.0  ;;  %v1426_v10 = vadd.f32 %v3653_v4, %v1425_v13  ;;  %v1013_v39 = vadd.f32 %v3726_v60, %v1012_v11  ;;  %v2015_v51 = vsel %vm1951_vm9, %v1496_v58, -1e+30 }
 0x1b3   : > { %v2207_v0 = vmax.f32 %v2205_v37, %v2206_v56  ;;  %v2100_v44 = vmax.f32 %v2098_v57, %v2099_v63 }
 0x1b4   : > { %v1199_v16 = vpack.c.bf16 %v1164_v22, %v1163_v18  ;;  %v1527_v24 = vmax.f32 %v1426_v10, 0.0  ;;  %v1133_v53 = vmax.f32 %v1013_v39, 0.0 }
 0x1b5   : > { %v2353_v27 = vsel %vm2333_vm4, %v2207_v0, %v2352_v14  ;;  %v2101_v30 = vrot.slane %v2100_v44, 1  ;;  %v1350_v54 = vpop.f32.mrf.mxu1 }
 0x1b6   : > { %v2046_v42 = vsel %vm1982_vm7, %v1527_v24, -1e+30  ;;  %v1351_v45 = vadd.f32 %v3653_v4, %v1350_v54  ;;  %2751 = vmatmul.msk.bf16.gmra.mxu3 %vm841_vm0, %v1199_v16 }
 0x1b7   : > { %v2102_v5 = vmax.f32 %v2100_v44, %v2101_v30  ;;  %v2208_v23 = vmax.f32 %v2045_v34, %v2046_v42  ;;  %v1092_v14 = vpop.f32.mrf.mxu2 }
 0x1b8   : > { %v1497_v46 = vmax.f32 %v1351_v45, 0.0  ;;  %v1093_v63 = vadd.f32 %v3726_v60, %v1092_v14 }
 0x1b9   : > { %v2336_v32 = vsel %vm2335_vm8, %v2102_v5, %v2334_v21  ;;  %v2209_v33 = vrot.slane %v2208_v23, 4  ;;  %v1014_v43 = vpop.f32.mrf.mxu0  ;;  %v3743_v8 = vpop.f32.mrf.mxu3 }
 0x1ba   : > { %v2016_v37 = vsel %vm1952_vm10, %v1497_v46, -1e+30  ;;  %v1015_v57 = vadd.f32 %v3726_v60, %v1014_v43  ;;  %v1165_v0 = vmax.f32 %v1093_v63, 0.0 }
 0x1bb   : > { %v2210_v36 = vmax.f32 %v2208_v23, %v2209_v33  ;;  %v2103_v1 = vmax.f32 %v2015_v51, %v2016_v37 }
 0x1bc   : > { %v1134_v17 = vmax.f32 %v1015_v57, 0.0 }
 0x1bd   : > { %v2211_v2 = vrot.slane %v2210_v36, 2  ;;  %v2104_v26 = vrot.slane %v2103_v1, 4  ;;  %v1353_v56 = vpop.f32.mrf.mxu1 }
 0x1be   : > { %v1184_v59 = vpack.c.bf16 %v1134_v17, %v1133_v53  ;;  %v1354_v44 = vadd.f32 %v3653_v4, %v1353_v56 }
 0x1bf   : > { %v2212_v11 = vmax.f32 %v2210_v36, %v2211_v2  ;;  %v2105_v21 = vmax.f32 %v2103_v1, %v2104_v26  ;;  %v1094_v13 = vpop.f32.mrf.mxu2 }
 0x1c0   : > { %v1095_v47 = vadd.f32 %v3726_v60, %v1094_v13  ;;  %2736 = vmatmul.msk.bf16.gmra.mxu1 %vm841_vm0, %v1184_v59  ;;  %v1498_v42 = vmax.f32 %v1354_v44, 0.0  ;;  %v1873_v44 = vpop.permute.xlu1 %1872 }
 0x1c1   : > { %v2213_v18 = vrot.slane %v2212_v11, 1  ;;  %v2106_v20 = vrot.slane %v2105_v21, 2  ;;  %v1017_v22 = vpop.f32.mrf.mxu0  ;;  %v1430_v10 = vpop.f32.mrf.mxu3  ;;  %vm1983_vm5 = vcmp.eq.s32.totalorder %v1873_v44, 1 }
 0x1c2   : > { %v1166_v16 = vmax.f32 %v1095_v47, 0.0  ;;  %v1018_v45 = vadd.f32 %v3726_v60, %v1017_v22  ;;  %v2017_v51 = vsel %vm1953_vm13, %v1498_v42, -1e+30  ;;  %vm1957_vm13 = vcmp.eq.s32.totalorder %v3598_v3, 1 }
 0x1c3   : > { %v2214_v24 = vmax.f32 %v2212_v11, %v2213_v18  ;;  %v2107_v30 = vmax.f32 %v2105_v21, %v2106_v20 }
 0x1c4   : > { %v1200_v34 = vpack.c.bf16 %v1166_v16, %v1165_v0  ;;  %v1135_v53 = vmax.f32 %v1018_v45, 0.0  ;;  %v1431_v45 = vadd.f32 %v3653_v4, %v1430_v10 }
 0x1c5   : > { %v3751_v54 = vsel %vm2335_vm8, %v2214_v24, %v2353_v27  ;;  %v2108_v58 = vrot.slane %v2107_v30, 1  ;;  %v1355_v39 = vpop.f32.mrf.mxu1 }
 0x1c6   : > { %v1356_v5 = vadd.f32 %v3653_v4, %v1355_v39  ;;  %2752 = vmatmul.msk.bf16.gmra.mxu3 %vm841_vm0, %v1200_v34  ;;  %v1879_v39 = vpop.permute.xlu0 %1878 }
 0x1c7   : > { %v2109_v23 = vmax.f32 %v2107_v30, %v2108_v58  ;;  %v1097_v14 = vpop.f32.mrf.mxu2  ;;  %vm1985_vm7 = vcmp.eq.s32.totalorder %v1879_v39, 1 }
 0x1c8   : > { %v1499_v46 = vmax.f32 %v1356_v5, 0.0  ;;  %v1098_v41 = vadd.f32 %v3726_v60, %v1097_v14 }
 0x1c9   : > { %v2338_v27 = vsel %vm2337_vm11, %v2109_v23, %v2336_v32  ;;  %v1019_v33 = vpop.f32.mrf.mxu0  ;;  %v1433_v43 = vpop.f32.mrf.mxu3 }
 0x1ca   : > { %v2018_v37 = vsel %vm1954_vm12, %v1499_v46, -1e+30  ;;  %v1020_v57 = vadd.f32 %v3726_v60, %v1019_v33  ;;  %v1167_v21 = vmax.f32 %v1098_v41, 0.0  ;;  %v1876_v46 = vpop.permute.xlu2 %1875  ;;  %v1434_v10 = vadd.f32 %v3653_v4, %v1433_v43 }
 0x1cb   : > { %v2110_v36 = vmax.f32 %v2017_v51, %v2018_v37  ;;  %vm1984_vm3 = vcmp.eq.s32.totalorder %v1876_v46, 1  ;;  %vm2341_vm12 = vcmask 1046534  }
 0x1cc   : > { %v1136_v1 = vmax.f32 %v1020_v57, 0.0 }
 0x1cd   : > { %v2111_v17 = vrot.slane %v2110_v36, 4  ;;  %v1358_v2 = vpop.f32.mrf.mxu1 }
 0x1ce   : > { %v1185_v26 = vpack.c.bf16 %v1136_v1, %v1135_v53  ;;  %v1359_v13 = vadd.f32 %v3653_v4, %v1358_v2  ;;  %v1529_v1 = vmax.f32 %v1431_v45, 0.0 }
 0x1cf   : > { %v2112_v48 = vmax.f32 %v2110_v36, %v2111_v17  ;;  %v1099_v56 = vpop.f32.mrf.mxu2  ;;  %v1429_v36 = vadd.f32 %v3653_v4, %v3743_v8 }
 0x1d0   : > { %v1100_v63 = vadd.f32 %v3726_v60, %v1099_v56  ;;  %2737 = vmatmul.msk.bf16.gmra.mxu1 %vm841_vm0, %v1185_v26  ;;  %v1500_v16 = vmax.f32 %v1359_v13, 0.0  ;;  %v2048_v43 = vsel %vm1984_vm3, %v1529_v1, -1e+30 }
 0x1d1   : > { %v2113_v32 = vrot.slane %v2112_v48, 2  ;;  %v1022_v59 = vpop.f32.mrf.mxu0  ;;  %v1435_v11 = vpop.f32.mrf.mxu3 }
 0x1d2   : > { %v1168_v47 = vmax.f32 %v1100_v63, 0.0  ;;  %v1023_v24 = vadd.f32 %v3726_v60, %v1022_v59  ;;  %v2019_v33 = vsel %vm1955_vm1, %v1500_v16, -1e+30  ;;  %v1436_v25 = vadd.f32 %v3653_v4, %v1435_v11  ;;  %v1882_v63 = vpop.permute.xlu1 %1881 }
 0x1d3   : > { %v2114_v18 = vmax.f32 %v2112_v48, %v2113_v32  ;;  %v1528_v32 = vmax.f32 %v1429_v36, 0.0  ;;  %vm1986_vm6 = vcmp.eq.s32.totalorder %v1882_v63, 1  ;;  %v1530_v11 = vmax.f32 %v1434_v10, 0.0 }
 0x1d4   : > { %v1201_v20 = vpack.c.bf16 %v1168_v47, %v1167_v21  ;;  %v1137_v51 = vmax.f32 %v1023_v24, 0.0  ;;  %v1531_v8 = vmax.f32 %v1436_v25, 0.0  ;;  %v1888_v47 = vpop.permute.xlu0 %1887  ;;  %vm1958_vm1 = vcmp.eq.s32.totalorder %v3602_v6, 1 }
 0x1d5   : > { %v2115_v22 = vrot.slane %v2114_v18, 1  ;;  %v1360_v0 = vpop.f32.mrf.mxu1  ;;  %vm1988_vm9 = vcmp.eq.s32.totalorder %v1888_v47, 1  ;;  %v2049_v46 = vsel %vm1985_vm7, %v1530_v11, -1e+30  ;;  %vm1961_vm7 = vcmp.eq.s32.totalorder %v3615_v19, 1 }
 0x1d6   : > { %v1361_v30 = vadd.f32 %v3653_v4, %v1360_v0  ;;  %2753 = vmatmul.msk.bf16.gmra.mxu3 %vm841_vm0, %v1201_v20 }
 0x1d7   : > { %v2116_v34 = vmax.f32 %v2114_v18, %v2115_v22  ;;  %v1102_v58 = vpop.f32.mrf.mxu2 }
 0x1d8   : > { %v1501_v42 = vmax.f32 %v1361_v30, 0.0  ;;  %v1103_v2 = vadd.f32 %v3726_v60, %v1102_v58  ;;  %v1885_v30 = vpop.permute.xlu2 %1884 }
 0x1d9   : > { %v3771_v5 = vsel %vm2339_vm14, %v2116_v34, %v2338_v27  ;;  %v1024_v23 = vpop.f32.mrf.mxu0  ;;  %v1438_v14 = vpop.f32.mrf.mxu3  ;;  %v2050_v34 = vsel %vm1986_vm6, %v1531_v8, -1e+30  ;;  %vm1987_vm10 = vcmp.eq.s32.totalorder %v1885_v30, 1  ;;  %vm1960_vm6 = vcmp.eq.s32.totalorder %v3611_v15, 1 }
 0x1da   : > { %v2020_v53 = vsel %vm1956_vm2, %v1501_v42, -1e+30  ;;  %v1025_v37 = vadd.f32 %v3726_v60, %v1024_v23  ;;  %v1439_v48 = vadd.f32 %v3653_v4, %v1438_v14  ;;  %v1169_v18 = vmax.f32 %v1103_v2, 0.0 }
 0x1db   : > { %v2117_v57 = vmax.f32 %v2019_v33, %v2020_v53  ;;  %v2222_v53 = vmax.f32 %v2049_v46, %v2050_v34 }
 0x1dc   : > { %v1138_v7 = vmax.f32 %v1025_v37, 0.0  ;;  %v1532_v24 = vmax.f32 %v1439_v48, 0.0 }
 0x1dd   : > { %v2118_v27 = vrot.slane %v2117_v57, 4  ;;  %v1363_v17 = vpop.f32.mrf.mxu1 }
 0x1de   : > { %v1186_v41 = vpack.c.bf16 %v1138_v7, %v1137_v51  ;;  %v1364_v20 = vadd.f32 %v3653_v4, %v1363_v17  ;;  %v2051_v44 = vsel %vm1987_vm10, %v1532_v24, -1e+30  ;;  %v2223_v17 = vrot.slane %v2222_v53, 4 }
 0x1df   : > { %v2119_v26 = vmax.f32 %v2117_v57, %v2118_v27  ;;  %v1104_v56 = vpop.f32.mrf.mxu2 }
 0x1e0   : > { %v1105_v59 = vadd.f32 %v3726_v60, %v1104_v56  ;;  %2738 = vmatmul.msk.bf16.gmra.mxu1 %vm841_vm0, %v1186_v41  ;;  %v2047_v60 = vsel %vm1983_vm5, %v1528_v32, -1e+30  ;;  %v1502_v33 = vmax.f32 %v1364_v20, 0.0  ;;  %v2224_v3 = vmax.f32 %v2222_v53, %v2223_v17 }
 0x1e1   : > { %v2120_v21 = vrot.slane %v2119_v26, 2  ;;  %v1440_v13 = vpop.f32.mrf.mxu3  ;;  %v2215_v45 = vmax.f32 %v2047_v60, %v2048_v43  ;;  %vm2343_vm5 = vcmask 1047559  }
 0x1e2   : > { %v1170_v22 = vmax.f32 %v1105_v59, 0.0  ;;  %v1441_v0 = vadd.f32 %v3653_v4, %v1440_v13  ;;  %v2021_v10 = vsel %vm1957_vm13, %v1502_v33, -1e+30  ;;  %vm1962_vm13 = vcmp.eq.s32.totalorder %v3636_v40, 1 }
 0x1e3   : > { %v2121_v16 = vmax.f32 %v2119_v26, %v2120_v21  ;;  %v2216_v25 = vrot.slane %v2215_v45, 4 }
 0x1e4   : > { %v1202_v58 = vpack.c.bf16 %v1170_v22, %v1169_v18  ;;  %v1533_v42 = vmax.f32 %v1441_v0, 0.0  ;;  %v2225_v18 = vrot.slane %v2224_v3, 2  ;;  %v1891_v22 = vpop.permute.xlu1 %1890  ;;  %v1894_v0 = vpop.permute.xlu2 %1893 }
 0x1e5   : > { %v2122_v23 = vrot.slane %v2121_v16, 1  ;;  %v1365_v14 = vpop.f32.mrf.mxu1  ;;  %v2217_v26 = vmax.f32 %v2215_v45, %v2216_v25  ;;  %vm1989_vm2 = vcmp.eq.s32.totalorder %v1891_v22, 1  ;;  %vm1990_vm3 = vcmp.eq.s32.totalorder %v1894_v0, 1 }
 0x1e6   : > { %v2052_v51 = vsel %vm1988_vm9, %v1533_v42, -1e+30  ;;  %v1366_v39 = vadd.f32 %v3653_v4, %v1365_v14  ;;  %2754 = vmatmul.msk.bf16.gmra.mxu3 %vm841_vm0, %v1202_v58  ;;  %vm1959_vm0 = vcmp.eq.s32.totalorder %v3622_v29, 1  ;;  %v2226_v45 = vmax.f32 %v2224_v3, %v2225_v18 }
 0x1e7   : > { %v2123_v37 = vmax.f32 %v2121_v16, %v2122_v23  ;;  %v2229_v57 = vmax.f32 %v2051_v44, %v2052_v51  ;;  %v2071_v23 = vld [vmem:[%s3238_s0] sm:$0xff] }
 0x1e8   : > { %v1503_v36 = vmax.f32 %v1366_v39, 0.0  ;;  %v2227_v25 = vrot.slane %v2226_v45, 1 }
 0x1e9   : > { %v2342_v7 = vsel %vm2341_vm12, %v2123_v37, %v3771_v5  ;;  %v1443_v1 = vpop.f32.mrf.mxu3  ;;  %v2230_v41 = vrot.slane %v2229_v57, 4  ;;  %v2218_v5 = vrot.slane %v2217_v26, 2 }
 0x1ea   : > { %v2022_v27 = vsel %vm1958_vm1, %v1503_v36, -1e+30  ;;  %v1444_v63 = vadd.f32 %v3653_v4, %v1443_v1  ;;  %vm1963_vm1 = vcmp.eq.s32.totalorder %v3628_v35, 1 }
 0x1eb   : > { %v2124_v2 = vmax.f32 %v2021_v10, %v2022_v27  ;;  %v2231_v6 = vmax.f32 %v2229_v57, %v2230_v41  ;;  %v2219_v30 = vmax.f32 %v2217_v26, %v2218_v5 }
 0x1ec   : > { %v1534_v21 = vmax.f32 %v1444_v63, 0.0  ;;  %v1900_v18 = vpop.permute.xlu1 %1899 }
 0x1ed   : > { %v2125_v48 = vrot.slane %v2124_v2, 4  ;;  %v1368_v56 = vpop.f32.mrf.mxu1  ;;  %v2232_v16 = vrot.slane %v2231_v6, 2  ;;  %v2220_v44 = vrot.slane %v2219_v30, 1  ;;  %vm1992_vm10 = vcmp.eq.s32.totalorder %v1900_v18, 1 }
 0x1ee   : > { %v1369_v32 = vadd.f32 %v3653_v4, %v1368_v56  ;;  %v2053_v29 = vsel %vm1989_vm2, %v1534_v21, -1e+30 }
 0x1ef   : > { %v2126_v8 = vmax.f32 %v2124_v2, %v2125_v48  ;;  %v2233_v33 = vmax.f32 %v2231_v6, %v2232_v16  ;;  %v2221_v41 = vmax.f32 %v2219_v30, %v2220_v44  ;;  %v2228_v48 = vmax.f32 %v2226_v45, %v2227_v25 }
 0x1f0   : > { %v1504_v59 = vmax.f32 %v1369_v32, 0.0 }
 0x1f1   : > { %v2127_v43 = vrot.slane %v2126_v8, 2  ;;  %v1445_v11 = vpop.f32.mrf.mxu3  ;;  %v2234_v27 = vrot.slane %v2233_v33, 1 }
 0x1f2   : > { %v2023_v13 = vsel %vm1959_vm0, %v1504_v59, -1e+30  ;;  %v1446_v47 = vadd.f32 %v3653_v4, %v1445_v11  ;;  %v2073_v11 = vld [vmem:[%s3238_s0 + $0x10] sm:$0xff] }
 0x1f3   : > { %v2128_v20 = vmax.f32 %v2126_v8, %v2127_v43  ;;  %v2235_v56 = vmax.f32 %v2233_v33, %v2234_v27  ;;  %v2355_v8 = vsel %vm2337_vm11, %v2221_v41, %v3751_v54  ;;  %v1903_v41 = vpop.permute.xlu2 %1902 }
 0x1f4   : > { %v1535_v24 = vmax.f32 %v1446_v47, 0.0  ;;  %v2356_v43 = vsel %vm2339_vm14, %v2228_v48, %v2355_v8  ;;  %v1897_v47 = vpop.permute.xlu0 %1896  ;;  %vm1993_vm2 = vcmp.eq.s32.totalorder %v1903_v41, 1 }
 0x1f5   : > { %v2129_v60 = vrot.slane %v2128_v20, 1  ;;  %v1370_v34 = vpop.f32.mrf.mxu1  ;;  %vm1991_vm9 = vcmp.eq.s32.totalorder %v1897_v47, 1 }
 0x1f6   : > { %v2054_v58 = vsel %vm1990_vm3, %v1535_v24, -1e+30  ;;  %v1371_v42 = vadd.f32 %v3653_v4, %v1370_v34  ;;  %vm1964_vm3 = vcmp.eq.s32.totalorder %v3634_v38, 1 }
 0x1f7   : > { %v2130_v14 = vmax.f32 %v2128_v20, %v2129_v60  ;;  %v2236_v46 = vmax.f32 %v2053_v29, %v2054_v58  ;;  %v2357_v20 = vsel %vm2341_vm12, %v2235_v56, %v2356_v43 }
 0x1f8   : > { %v1505_v51 = vmax.f32 %v1371_v42, 0.0 }
 0x1f9   : > { %v2344_v39 = vsel %vm2343_vm5, %v2130_v14, %v2342_v7  ;;  %v2237_v53 = vrot.slane %v2236_v46, 4  ;;  %v1448_v37 = vpop.f32.mrf.mxu3 }
 0x1fa   : > { %v2370_v57 = vmax.f32 %v2071_v23, %v2344_v39  ;;  %v2024_v36 = vsel %vm1960_vm6, %v1505_v51, -1e+30  ;;  %v1449_v26 = vadd.f32 %v3653_v4, %v1448_v37  ;;  %vm1965_vm6 = vcmp.eq.s32.totalorder %v3647_v55, 1 }
 0x1fb   : > { %v2238_v1 = vmax.f32 %v2236_v46, %v2237_v53  ;;  %v2131_v10 = vmax.f32 %v2023_v13, %v2024_v36 }
 0x1fc   : > { %2374 = vst [vmem:[%s3238_s0] sm:$0xff] %v2370_v57  ;;  %v1536_v6 = vmax.f32 %v1449_v26, 0.0 }
 0x1fd   : > { %v2239_v17 = vrot.slane %v2238_v1, 2  ;;  %v1373_v2 = vpop.f32.mrf.mxu1  ;;  %v2132_v13 = vrot.slane %v2131_v10, 4 }
 0x1fe   : > { %v1374_v15 = vadd.f32 %v3653_v4, %v1373_v2  ;;  %v2055_v16 = vsel %vm1991_vm9, %v1536_v6, -1e+30  ;;  %v1906_v2 = vpop.permute.xlu0 %1905 }
 0x1ff   : > { %v2240_v7 = vmax.f32 %v2238_v1, %v2239_v17  ;;  %v2133_v60 = vmax.f32 %v2131_v10, %v2132_v13  ;;  %vm1994_vm0 = vcmp.eq.s32.totalorder %v1906_v2, 1 }
 0x200   : > { %v1506_v63 = vmax.f32 %v1374_v15, 0.0 }
 0x201   : > { %v2241_v32 = vrot.slane %v2240_v7, 1  ;;  %v1450_v3 = vpop.f32.mrf.mxu3  ;;  %v2134_v45 = vrot.slane %v2133_v60, 2 }
 0x202   : > { %v2025_v59 = vsel %vm1961_vm7, %v1506_v63, -1e+30  ;;  %v1451_v5 = vadd.f32 %v3653_v4, %v1450_v3 }
 0x203   : > { %v2242_v21 = vmax.f32 %v2240_v7, %v2241_v32  ;;  %v2135_v39 = vmax.f32 %v2133_v60, %v2134_v45 }
 0x204   : > { %v1537_v19 = vmax.f32 %v1451_v5, 0.0 }
 0x205   : > { %v2358_v22 = vsel %vm2343_vm5, %v2242_v21, %v2357_v20  ;;  %v1375_v54 = vpop.f32.mrf.mxu1  ;;  %v2136_v10 = vrot.slane %v2135_v39, 1 }
 0x206   : > { %v2372_v0 = vmax.f32 %v2073_v11, %v2358_v22  ;;  %v2056_v24 = vsel %vm1992_vm10, %v1537_v19, -1e+30  ;;  %v1376_v30 = vadd.f32 %v3653_v4, %v1375_v54  ;;  %vm1966_vm10 = vcmp.eq.s32.totalorder %v3641_v50, 1 }
 0x207   : > { %v2243_v34 = vmax.f32 %v2055_v16, %v2056_v24  ;;  %v2137_v63 = vmax.f32 %v2135_v39, %v2136_v10 }
 0x208   : > { %2376 = vst [vmem:[%s3238_s0 + $0x10] sm:$0xff] %v2372_v0  ;;  %v1507_v29 = vmax.f32 %v1376_v30, 0.0 }
 0x209   : > { %v1453_v58 = vpop.f32.mrf.mxu3  ;;  %v2244_v53 = vrot.slane %v2243_v34, 4 }
 0x20a   : > { %v2026_v42 = vsel %vm1962_vm13, %v1507_v29, -1e+30  ;;  %v1454_v33 = vadd.f32 %v3653_v4, %v1453_v58 }
 0x20b   : > { %v2138_v23 = vmax.f32 %v2025_v59, %v2026_v42  ;;  %v2245_v27 = vmax.f32 %v2243_v34, %v2244_v53 }
 0x20c   : > { %v1538_v25 = vmax.f32 %v1454_v33, 0.0  ;;  %v1912_v33 = vpop.permute.xlu2 %1911 }
 0x20d   : > { %v2139_v14 = vrot.slane %v2138_v23, 4  ;;  %v1378_v46 = vpop.f32.mrf.mxu1  ;;  %v2246_v32 = vrot.slane %v2245_v27, 2  ;;  %vm1996_vm9 = vcmp.eq.s32.totalorder %v1912_v33, 1 }
 0x20e   : > { %v1379_v51 = vadd.f32 %v3653_v4, %v1378_v46  ;;  %v2057_v7 = vsel %vm1993_vm2, %v1538_v25, -1e+30  ;;  %v1909_v46 = vpop.permute.xlu1 %1908  ;;  %vm1970_vm2 = vcmp.eq.s32.totalorder %v3658_v12, 1 }
 0x20f   : > { %v2140_v37 = vmax.f32 %v2138_v23, %v2139_v14  ;;  %v2247_v21 = vmax.f32 %v2245_v27, %v2246_v32  ;;  %vm1995_vm7 = vcmp.eq.s32.totalorder %v1909_v46, 1 }
 0x210   : > { %v1508_v44 = vmax.f32 %v1379_v51, 0.0 }
 0x211   : > { %v2141_v57 = vrot.slane %v2140_v37, 2  ;;  %v1455_v36 = vpop.f32.mrf.mxu3  ;;  %v2248_v54 = vrot.slane %v2247_v21, 1 }
 0x212   : > { %v2027_v40 = vsel %vm1963_vm1, %v1508_v44, -1e+30  ;;  %v1456_v1 = vadd.f32 %v3653_v4, %v1455_v36  ;;  %vm1967_vm1 = vcmp.eq.s32.totalorder %v3643_v52, 1 }
 0x213   : > { %v2142_v17 = vmax.f32 %v2140_v37, %v2141_v57  ;;  %v2249_v45 = vmax.f32 %v2247_v21, %v2248_v54 }
 0x214   : > { %v1539_v26 = vmax.f32 %v1456_v1, 0.0 }
 0x215   : > { %v2143_v15 = vrot.slane %v2142_v17, 1  ;;  %v1380_v48 = vpop.f32.mrf.mxu1 }
 0x216   : > { %v2058_v56 = vsel %vm1994_vm0, %v1539_v26, -1e+30  ;;  %v1381_v35 = vadd.f32 %v3653_v4, %v1380_v48  ;;  %v3824_v4 = vld [vmem:[%s3947_s5] ss:$0 sm:$0xff]  ;;  %vm1968_vm0 = vcmp.eq.s32.totalorder %v3664_v61, 1 }
 0x217   : > { %v2144_v3 = vmax.f32 %v2142_v17, %v2143_v15  ;;  %v2250_v8 = vmax.f32 %v2057_v7, %v2058_v56 }
 0x218   : > { %v1509_v6 = vmax.f32 %v1381_v35, 0.0 }
 0x219   : > { %v2345_v59 = vsel %vm2331_vm15, %v2144_v3, %v2137_v63  ;;  %v2251_v5 = vrot.slane %v2250_v8, 4  ;;  %v1458_v43 = vpop.f32.mrf.mxu3 }
 0x21a   : > { %v2028_v11 = vsel %vm1964_vm3, %v1509_v6, -1e+30  ;;  %v1459_v22 = vadd.f32 %v3824_v4, %v1458_v43  ;;  %v1915_v43 = vpop.permute.xlu0 %1914  ;;  %vm1971_vm3 = vcmp.eq.s32.totalorder %v3675_v49, 1 }
 0x21b   : > { %v2252_v13 = vmax.f32 %v2250_v8, %v2251_v5  ;;  %v2145_v47 = vmax.f32 %v2027_v40, %v2028_v11  ;;  %v1918_v11 = vpop.permute.xlu1 %1917 }
 0x21c   : > { %v1540_v29 = vmax.f32 %v1459_v22, 0.0  ;;  %vm1998_vm13 = vcmp.eq.s32.totalorder %v1918_v11, 1 }
 0x21d   : > { %v2253_v18 = vrot.slane %v2252_v13, 2  ;;  %v2146_v20 = vrot.slane %v2145_v47, 4  ;;  %v1383_v19 = vpop.f32.mrf.mxu1 }
 0x21e   : > { %v1384_v38 = vadd.f32 %v3824_v4, %v1383_v19  ;;  %v2059_v55 = vsel %vm1995_vm7, %v1540_v29, -1e+30 }
 0x21f   : > { %v2254_v0 = vmax.f32 %v2252_v13, %v2253_v18  ;;  %v2147_v16 = vmax.f32 %v2145_v47, %v2146_v20 }
 0x220   : > { %v1510_v24 = vmax.f32 %v1384_v38, 0.0 }
 0x221   : > { %v2255_v30 = vrot.slane %v2254_v0, 1  ;;  %v2148_v60 = vrot.slane %v2147_v16, 2  ;;  %v1460_v34 = vpop.f32.mrf.mxu3 }
 0x222   : > { %v2029_v58 = vsel %vm1965_vm6, %v1510_v24, -1e+30  ;;  %v1461_v42 = vadd.f32 %v3824_v4, %v1460_v34 }
 0x223   : > { %v2256_v23 = vmax.f32 %v2254_v0, %v2255_v30  ;;  %v2149_v14 = vmax.f32 %v2147_v16, %v2148_v60 }
 0x224   : > { %v1541_v51 = vmax.f32 %v1461_v42, 0.0 }
 0x225   : > { %v2359_v39 = vsel %vm2331_vm15, %v2256_v23, %v2249_v45  ;;  %v2150_v53 = vrot.slane %v2149_v14, 1  ;;  %v1385_v37 = vpop.f32.mrf.mxu1  ;;  %vm1997_vm15 = vcmp.eq.s32.totalorder %v1915_v43, 1 }
 0x226   : > { %v2060_v44 = vsel %vm1996_vm9, %v1541_v51, -1e+30  ;;  %v1386_v57 = vadd.f32 %v3824_v4, %v1385_v37 }
 0x227   : > { %v2151_v36 = vmax.f32 %v2149_v14, %v2150_v53  ;;  %v2257_v25 = vmax.f32 %v2059_v55, %v2060_v44 }
 0x228   : > { %v1511_v40 = vmax.f32 %v1386_v57, 0.0 }
 0x229   : > { %v2346_v1 = vsel %vm2333_vm4, %v2151_v36, %v2345_v59  ;;  %v2258_v10 = vrot.slane %v2257_v25, 4  ;;  %v1463_v27 = vpop.f32.mrf.mxu3 }
 0x22a   : > { %v2030_v17 = vsel %vm1966_vm10, %v1511_v40, -1e+30  ;;  %v1464_v7 = vadd.f32 %v3824_v4, %v1463_v27 }
 0x22b   : > { %v2259_v2 = vmax.f32 %v2257_v25, %v2258_v10  ;;  %v2152_v41 = vmax.f32 %v2029_v58, %v2030_v17 }
 0x22c   : > { %v1542_v8 = vmax.f32 %v1464_v7, 0.0 }
 0x22d   : > { %v2260_v26 = vrot.slane %v2259_v2, 2  ;;  %v2153_v15 = vrot.slane %v2152_v41, 4  ;;  %v1388_v48 = vpop.f32.mrf.mxu1 }
 0x22e   : > { %v1389_v50 = vadd.f32 %v3824_v4, %v1388_v48  ;;  %v2061_v20 = vsel %vm1997_vm15, %v1542_v8, -1e+30 }
 0x22f   : > { %v2261_v56 = vmax.f32 %v2259_v2, %v2260_v26  ;;  %v2154_v35 = vmax.f32 %v2152_v41, %v2153_v15 }
 0x230   : > { %v1512_v19 = vmax.f32 %v1389_v50, 0.0  ;;  %v1921_v50 = vpop.permute.xlu2 %1920 }
 0x231   : > { %v2262_v63 = vrot.slane %v2261_v56, 1  ;;  %v2155_v32 = vrot.slane %v2154_v35, 2  ;;  %v1465_v3 = vpop.f32.mrf.mxu3  ;;  %vm1999_vm7 = vcmp.eq.s32.totalorder %v1921_v50, 1 }
 0x232   : > { %v1466_v6 = vadd.f32 %v3824_v4, %v1465_v3  ;;  %v2031_v34 = vsel %vm1967_vm1, %v1512_v19, -1e+30  ;;  %vm1973_vm1 = vcmp.eq.s32.totalorder %v3672_v31, 1 }
 0x233   : > { %v2263_v59 = vmax.f32 %v2261_v56, %v2262_v63  ;;  %v2156_v5 = vmax.f32 %v2154_v35, %v2155_v32 }
 0x234   : > { %v1543_v21 = vmax.f32 %v1466_v6, 0.0  ;;  %v1927_v6 = vpop.permute.xlu1 %1926 }
 0x235   : > { %v2360_v13 = vsel %vm2333_vm4, %v2263_v59, %v2359_v39  ;;  %v2157_v47 = vrot.slane %v2156_v5, 1  ;;  %v1390_v18 = vpop.f32.mrf.mxu1  ;;  %vm1969_vm4 = vcmp.eq.s32.totalorder %v3655_v9, 1  ;;  %vm2001_vm15 = vcmp.eq.s32.totalorder %v1927_v6, 1 }
 0x236   : > { %v2062_v22 = vsel %vm1998_vm13, %v1543_v21, -1e+30  ;;  %v1391_v38 = vadd.f32 %v3824_v4, %v1390_v18 }
 0x237   : > { %v2158_v54 = vmax.f32 %v2156_v5, %v2157_v47  ;;  %v2264_v0 = vmax.f32 %v2061_v20, %v2062_v22  ;;  %v1924_v5 = vpop.permute.xlu0 %1923 }
 0x238   : > { %v1513_v16 = vmax.f32 %v1391_v38, 0.0  ;;  %vm2000_vm6 = vcmp.eq.s32.totalorder %v1924_v5, 1 }
 0x239   : > { %v2347_v24 = vsel %vm2335_vm8, %v2158_v54, %v2346_v1  ;;  %v2265_v30 = vrot.slane %v2264_v0, 4  ;;  %v1468_v60 = vpop.f32.mrf.mxu3 }
 0x23a   : > { %v2032_v29 = vsel %vm1968_vm0, %v1513_v16, -1e+30  ;;  %v1469_v20 = vadd.f32 %v3824_v4, %v1468_v60  ;;  %vm1974_vm0 = vcmp.eq.s32.totalorder %v3684_v62, 1 }
 0x23b   : > { %v2266_v58 = vmax.f32 %v2264_v0, %v2265_v30  ;;  %v2159_v42 = vmax.f32 %v2031_v34, %v2032_v29  ;;  %v1930_v29 = vpop.permute.xlu2 %1929 }
 0x23c   : > { %v1544_v16 = vmax.f32 %v1469_v20, 0.0  ;;  %vm2002_vm9 = vcmp.eq.s32.totalorder %v1930_v29, 1 }
 0x23d   : > { %v2267_v45 = vrot.slane %v2266_v58, 2  ;;  %v2160_v23 = vrot.slane %v2159_v42, 4  ;;  %v1393_v14 = vpop.f32.mrf.mxu1 }
 0x23e   : > { %v1394_v52 = vadd.f32 %v3824_v4, %v1393_v14 }
 0x23f   : > { %v2268_v46 = vmax.f32 %v2266_v58, %v2267_v45  ;;  %v2161_v33 = vmax.f32 %v2159_v42, %v2160_v23  ;;  %v1936_v58 = vpop.permute.xlu1 %1935  ;;  %v1933_v14 = vpop.permute.xlu0 %1932 }
 0x240   : > { %v1514_v36 = vmax.f32 %v1394_v52, 0.0  ;;  %vm2003_vm10 = vcmp.eq.s32.totalorder %v1933_v14, 1  ;;  %vm2004_vm13 = vcmp.eq.s32.totalorder %v1936_v58, 1 }
 0x241   : > { %v2269_v51 = vrot.slane %v2268_v46, 1  ;;  %v2162_v39 = vrot.slane %v2161_v33, 2  ;;  %v1470_v53 = vpop.f32.mrf.mxu3 }
 0x242   : > { %v2033_v17 = vsel %vm1969_vm4, %v1514_v36, -1e+30  ;;  %v1471_v21 = vadd.f32 %v3824_v4, %v1470_v53 }
 0x243   : > { %v2270_v37 = vmax.f32 %v2268_v46, %v2269_v51  ;;  %v2163_v61 = vmax.f32 %v2161_v33, %v2162_v39  ;;  %v2063_v51 = vsel %vm1999_vm7, %v1544_v16, -1e+30  ;;  %v1939_v62 = vpop.permute.xlu2 %1938 }
 0x244   : > { %v1545_v54 = vmax.f32 %v1471_v21, 0.0 }
 0x245   : > { %v3844_v55 = vsel %vm2335_vm8, %v2270_v37, %v2360_v13  ;;  %v2164_v44 = vrot.slane %v2163_v61, 1  ;;  %v1395_v57 = vpop.f32.mrf.mxu1  ;;  %vm1972_vm8 = vcmp.eq.s32.totalorder %v3667_v28, 1 }
 0x246   : > { %v1396_v25 = vadd.f32 %v3824_v4, %v1395_v57  ;;  %v2064_v42 = vsel %vm2000_vm6, %v1545_v54, -1e+30  ;;  %v2072_v54 = vld [vmem:[%s3238_s0 + $0x8] sm:$0xff] }
 0x247   : > { %v2165_v40 = vmax.f32 %v2163_v61, %v2164_v44  ;;  %v2271_v52 = vmax.f32 %v2063_v51, %v2064_v42  ;;  %v1942_v6 = vpop.permute.xlu0 %1941 }
 0x248   : > { %v1515_v1 = vmax.f32 %v1396_v25, 0.0  ;;  %vm2006_vm4 = vcmp.eq.s32.totalorder %v1942_v6, 1 }
 0x249   : > { %v2348_v10 = vsel %vm2337_vm11, %v2165_v40, %v2347_v24  ;;  %v1473_v27 = vpop.f32.mrf.mxu3 }
 0x24a   : > { %v2034_v2 = vsel %vm1970_vm2, %v1515_v1, -1e+30  ;;  %v1474_v28 = vadd.f32 %v3824_v4, %v1473_v27  ;;  %vm2005_vm2 = vcmp.eq.s32.totalorder %v1939_v62, 1 }
 0x24b   : > { %v2166_v41 = vmax.f32 %v2033_v17, %v2034_v2 }
 0x24c   : > { %v1546_v45 = vmax.f32 %v1474_v28, 0.0 }
 0x24d   : > { %v2167_v26 = vrot.slane %v2166_v41, 4  ;;  %v1398_v15 = vpop.f32.mrf.mxu1 }
 0x24e   : > { %v1399_v35 = vadd.f32 %v3824_v4, %v1398_v15  ;;  %v2065_v44 = vsel %vm2001_vm15, %v1546_v45, -1e+30 }
 0x24f   : > { %v2168_v48 = vmax.f32 %v2166_v41, %v2167_v26  ;;  %v2272_v26 = vrot.slane %v2271_v52, 4 }
 0x250   : > { %v1516_v8 = vmax.f32 %v1399_v35, 0.0 }
 0x251   : > { %v2169_v7 = vrot.slane %v2168_v48, 2  ;;  %v1475_v56 = vpop.f32.mrf.mxu3 }
 0x252   : > { %v2035_v13 = vsel %vm1971_vm3, %v1516_v8, -1e+30  ;;  %v1476_v19 = vadd.f32 %v3824_v4, %v1475_v56 }
 0x253   : > { %v2170_v63 = vmax.f32 %v2168_v48, %v2169_v7 }
 0x254   : > { %v1547_v24 = vmax.f32 %v1476_v19, 0.0 }
 0x255   : > { %v2171_v32 = vrot.slane %v2170_v63, 1  ;;  %v1400_v3 = vpop.f32.mrf.mxu1 }
 0x256   : > { %v1401_v9 = vadd.f32 %v3824_v4, %v1400_v3  ;;  %v2066_v39 = vsel %vm2002_vm9, %v1547_v24, -1e+30 }
 0x257   : > { %v2172_v12 = vmax.f32 %v2170_v63, %v2171_v32  ;;  %v2278_v40 = vmax.f32 %v2065_v44, %v2066_v39  ;;  %v2273_v32 = vmax.f32 %v2271_v52, %v2272_v26  ;;  %v2074_v39 = vld [vmem:[%s3238_s0 + $0x18] sm:$0xff] }
 0x258   : > { %v1517_v59 = vmax.f32 %v1401_v9, 0.0 }
 0x259   : > { %v2349_v43 = vsel %vm2339_vm14, %v2172_v12, %v2348_v10  ;;  %v1478_v11 = vpop.f32.mrf.mxu3  ;;  %v2279_v7 = vrot.slane %v2278_v40, 4 }
 0x25a   : > { %v2036_v47 = vsel %vm1972_vm8, %v1517_v59, -1e+30  ;;  %v1479_v49 = vadd.f32 %v3824_v4, %v1478_v11  ;;  %v2274_v59 = vrot.slane %v2273_v32, 2 }
 0x25b   : > { %v2173_v18 = vmax.f32 %v2035_v13, %v2036_v47  ;;  %v2280_v8 = vmax.f32 %v2278_v40, %v2279_v7 }
 0x25c   : > { %v1548_v33 = vmax.f32 %v1479_v49, 0.0  ;;  %v2275_v20 = vmax.f32 %v2273_v32, %v2274_v59 }
 0x25d   : > { %v2174_v22 = vrot.slane %v2173_v18, 4  ;;  %v1403_v38 = vpop.f32.mrf.mxu1  ;;  %v2281_v11 = vrot.slane %v2280_v8, 2 }
 0x25e   : > { %v1404_v60 = vadd.f32 %v3824_v4, %v1403_v38  ;;  %v2067_v10 = vsel %vm2003_vm10, %v1548_v33, -1e+30  ;;  %v2276_v24 = vrot.slane %v2275_v20, 1 }
 0x25f   : > { %v2175_v0 = vmax.f32 %v2173_v18, %v2174_v22  ;;  %v2282_v38 = vmax.f32 %v2280_v8, %v2281_v11 }
 0x260   : > { %v1518_v57 = vmax.f32 %v1404_v60, 0.0  ;;  %v2277_v45 = vmax.f32 %v2275_v20, %v2276_v24 }
 0x261   : > { %v2176_v30 = vrot.slane %v2175_v0, 2  ;;  %v1480_v34 = vpop.f32.mrf.mxu3 }
 0x262   : > { %v1481_v23 = vadd.f32 %v3824_v4, %v1480_v34  ;;  %v2037_v15 = vsel %vm1973_vm1, %v1518_v57, -1e+30  ;;  %v2283_v34 = vrot.slane %v2282_v38, 1  ;;  %v2362_v33 = vsel %vm2337_vm11, %v2277_v45, %v3844_v55 }
 0x263   : > { %v2177_v46 = vmax.f32 %v2175_v0, %v2176_v30 }
 0x264   : > { %v1549_v53 = vmax.f32 %v1481_v23, 0.0  ;;  %v2284_v60 = vmax.f32 %v2282_v38, %v2283_v34 }
 0x265   : > { %v2178_v37 = vrot.slane %v2177_v46, 1  ;;  %v1405_v61 = vpop.f32.mrf.mxu1 }
 0x266   : > { %v2068_v36 = vsel %vm2004_vm13, %v1549_v53, -1e+30  ;;  %v1406_v25 = vadd.f32 %v3824_v4, %v1405_v61  ;;  %v2363_v51 = vsel %vm2339_vm14, %v2284_v60, %v2362_v33 }
 0x267   : > { %v2179_v1 = vmax.f32 %v2177_v46, %v2178_v37  ;;  %v2285_v27 = vmax.f32 %v2067_v10, %v2068_v36 }
 0x268   : > { %v1519_v17 = vmax.f32 %v1406_v25, 0.0 }
 0x269   : > { %v2350_v2 = vsel %vm2341_vm12, %v2179_v1, %v2349_v43  ;;  %v1483_v41 = vpop.f32.mrf.mxu3  ;;  %v2286_v35 = vrot.slane %v2285_v27, 4 }
 0x26a   : > { %v2038_v48 = vsel %vm1974_vm0, %v1519_v17, -1e+30  ;;  %v1484_v3 = vadd.f32 %v3824_v4, %v1483_v41 }
 0x26b   : > { %v2180_v56 = vmax.f32 %v2037_v15, %v2038_v48  ;;  %v2287_v12 = vmax.f32 %v2285_v27, %v2286_v35 }
 0x26c   : > { %v1550_v5 = vmax.f32 %v1484_v3, 0.0 }
 0x26d   : > { %v2181_v63 = vrot.slane %v2180_v56, 4  ;;  %v2288_v13 = vrot.slane %v2287_v12, 2 }
 0x26e   : > { %v2069_v19 = vsel %vm2005_vm2, %v1550_v5, -1e+30 }
 0x26f   : > { %v2182_v9 = vmax.f32 %v2180_v56, %v2181_v63  ;;  %v2289_v49 = vmax.f32 %v2287_v12, %v2288_v13 }
 0x271   : > { %v2183_v50 = vrot.slane %v2182_v9, 2  ;;  %v1485_v31 = vpop.f32.mrf.mxu3  ;;  %v2290_v58 = vrot.slane %v2289_v49, 1 }
 0x272   : > { %v1486_v43 = vadd.f32 %v3824_v4, %v1485_v31 }
 0x273   : > { %v2184_v21 = vmax.f32 %v2182_v9, %v2183_v50  ;;  %v2291_v14 = vmax.f32 %v2289_v49, %v2290_v58 }
 0x274   : > { %v1551_v47 = vmax.f32 %v1486_v43, 0.0 }
 0x275   : > { %v2185_v18 = vrot.slane %v2184_v21, 1  ;;  %v2364_v52 = vsel %vm2341_vm12, %v2291_v14, %v2363_v51 }
 0x276   : > { %v2070_v22 = vsel %vm2006_vm4, %v1551_v47, -1e+30 }
 0x277   : > { %v2186_v28 = vmax.f32 %v2184_v21, %v2185_v18  ;;  %v2292_v0 = vmax.f32 %v2069_v19, %v2070_v22 }
 0x279   : > { %v2351_v16 = vsel %vm2343_vm5, %v2186_v28, %v2350_v2  ;;  %v2293_v4 = vrot.slane %v2292_v0, 4 }
 0x27a   : > { %v2371_v30 = vmax.f32 %v2072_v54, %v2351_v16 }
 0x27b   : > { %v2294_v29 = vmax.f32 %v2292_v0, %v2293_v4 }
 0x27c   : > { %2375 = vst [vmem:[%s3238_s0 + $0x8] sm:$0xff] %v2371_v30 }
 0x27d   : > { %v2295_v42 = vrot.slane %v2294_v29, 2 }
 0x27f   : > { %v2296_v23 = vmax.f32 %v2294_v29, %v2295_v42 }
 0x281   : > { %v2297_v46 = vrot.slane %v2296_v23, 1 }
 0x283   : > { %v2298_v53 = vmax.f32 %v2296_v23, %v2297_v46 }
 0x284   : > { %2381 = sbr.rel (%p2756_p5) target bundleno = 779 (0x30b), region = 93 }
 0x285   : > { %v2365_v37 = vsel %vm2343_vm5, %v2298_v53, %v2364_v52 }
 0x286   : > { %v2373_v61 = vmax.f32 %v2074_v39, %v2365_v37 }
 0x288   : > { %2377 = vst [vmem:[%s3238_s0 + $0x18] sm:$0xff] %v2373_v61 }
 0x289   : > { %v2384_v44 = vld [vmem:[%s3234_s11 + $0x10] sm:$0xff]  ;;  %v2382_v57 = vld [vmem:[%s3234_s11] sm:$0xff]  ;;  %v3019_v55 = vmov 0   ;;  %v2385_v40 = vld [vmem:[%s3234_s11 + $0x18] sm:$0xff] }
 0x28a   : > { %2904 = vset.pattern.permute.xlu1 %v3019_v55  ;;  %2903 = vset.pattern.permute.xlu0 %v3019_v55  ;;  %vm2388_vm11 = vcmp.gt.s32.totalorder %v2384_v44, 0  ;;  %vm2386_vm14 = vcmp.gt.s32.totalorder %v2382_v57, 0  ;;  %v2383_v1 = vld [vmem:[%s3234_s11 + $0x8] sm:$0xff]  ;;  %vm2389_vm12 = vcmp.gt.s32.totalorder %v2385_v40, 0  ;;  %v2392_v17 = vld [vmem:[%s3238_s0 + $0x10] sm:$0xff]  ;;  %v2390_v2 = vld [vmem:[%s3238_s0] sm:$0xff] }
 0x28b   : > { %v2396_v36 = vsel %vm2388_vm11, 1, %v3019_v55  ;;  %v2394_v25 = vsel %vm2386_vm14, 1, %v3019_v55  ;;  %vm2387_vm5 = vcmp.gt.s32.totalorder %v2383_v1, 0  ;;  %v2397_v10 = vsel %vm2389_vm12, 1, %v3019_v55  ;;  %v2391_v56 = vld [vmem:[%s3238_s0 + $0x8] sm:$0xff] }
 0x28c   : > { %2405 = vperm.xlu1 %2904, %v2396_v36   ;;  %2399 = vperm.xlu0 %2903, %v2394_v25   ;;  %v2395_v27 = vsel %vm2387_vm5, 1, %v3019_v55 }
 0x28f   : > { %v2393_v7 = vld [vmem:[%s3238_s0 + $0x18] sm:$0xff] }
 0x294   : > { %2408 = vperm.xlu1 %2904, %v2397_v10   ;;  %2402 = vperm.xlu0 %2903, %v2395_v27  }
 0x2fe   : > { %v2406_v41 = vpop.permute.xlu1 %2405  ;;  %v2400_v26 = vpop.permute.xlu0 %2399 }
 0x2ff   : > { %vm2412_vm8 = vcmp.eq.s32.totalorder %v2406_v41, 1  ;;  %vm2410_vm3 = vcmp.eq.s32.totalorder %v2400_v26, 1 }
 0x300   : > { %v2416_v15 = vsel %vm2412_vm8, %v2392_v17, 0.0  ;;  %v2414_v48 = vsel %vm2410_vm3, %v2390_v2, 0.0 }
 0x301   : > { %2420 = vst [vmem:[%s3238_s0 + $0x10] sm:$0xff] %v2416_v15 }
 0x302   : > { %2418 = vst [vmem:[%s3238_s0] sm:$0xff] %v2414_v48 }
 0x306   : > { %v2409_v35 = vpop.permute.xlu1 %2408  ;;  %v2403_v63 = vpop.permute.xlu0 %2402 }
 0x307   : > { %vm2413_vm6 = vcmp.eq.s32.totalorder %v2409_v35, 1  ;;  %vm2411_vm7 = vcmp.eq.s32.totalorder %v2403_v63, 1 }
 0x308   : > { %v2417_v32 = vsel %vm2413_vm6, %v2393_v7, 0.0  ;;  %v2415_v3 = vsel %vm2411_vm7, %v2391_v56, 0.0 }
 0x309   : > { %2421 = vst [vmem:[%s3238_s0 + $0x18] sm:$0xff] %v2417_v32 }
 0x30a   : > { %2419 = vst [vmem:[%s3238_s0 + $0x8] sm:$0xff] %v2415_v3 }
 0x30b PF: > { %s2799_s26 = sshll.u32 %s3003_s27, 5  ;;  %s2435_s7 = sshll.u32 %s3238_s0, 4  ;;  %s2436_s7 = int_to_ptr.vmem [resolvable:$true] %s2435_s7 }
 0x30c   : > { %s2434_s9 = scalar_lea.hbm %s3948_s6, %s2799_s26  ;;  %s2423_s8 = scalar_lea.sflag [#allocation4], %s576_s10 }
 0x30d   : > { %s2437_s13 = sshll.u32 %s2434_s9, 4  ;;  %s2925_s27 = scalar_lea.hbm %s3948_s6, 64  ;;  %s2438_s13 = int_to_ptr.hbm [resolvable:$true] %s2437_s13 }
 0x30e   : > { %s2919_s12 = sshra.s32 %s2438_s13, 4  ;;  %s2920_s12 = int_to_ptr.hbm [resolvable:$true] %s2919_s12 }
 0x30f   : > { %s2921_s16 = scalar_lea.hbm %s2920_s12, 32  ;;  %p2926_p10 = scmp.lt.s32.totalorder %s2920_s12, %s3948_s6 }
 0x310   : > { %p2922_p6 = scmp.ne.s32.totalorder %s2920_s12, %s2921_s16  ;;  %p2927_p11 = scmp.lt.s32.totalorder %s2925_s27, %s2921_s16 }
 0x312   : > { %p2923_p8 = pnand %p2922_p6, %p3129_p7  ;;  %p2928_p13 = por %p2927_p11, %p2926_p10 }
 0x314   : > { %p2924_p9 = pneg %p2923_p8 }
 0x316   : > { %p2929_p0 = pnand %p2928_p13, %p2924_p9 }
 0x318   : > { %2932 = shalt.err (!%p2929_p0)
}
 0x319   : > { %s3020_s0 = smov 128   ;;  %s3021_s10 = smov 8  }
 0x31a   : > { %2804 = dma.vmem_to_hbm [thread:$0]  (%p3129_p7), %s2436_s7, 512, %s2438_s13, %s2423_s8, %s3020_s0, %s3020_s0, %s3021_s10  }
 0x31b PF: > { %p2810_p1 = scmp.ge.s32.totalorder %s3015_s30, 2  ;;  %s2452_s26 = sand.u32 1, %s2979_s21  }
 0x31c   : > { %s2453_s1 = scalar_lea.sflag [#allocation4], %s2452_s26 }
 0x31d   : > { %p2807_p2 = pnand %p2810_p1, %p3137_p12 }
 0x31f   : > { %p2808_p3 = pneg %p2807_p2 }
 0x321   : > { %2974 = dma.done.wait (%p2808_p3), %s2453_s1, 512  }
 0x322   : > { %2976 = vsyncadd (%p2808_p3), %s2453_s1, 4294966784  ;;  %s19_s30 = sadd.s32 1, %s3015_s30   ;;  %s3960_s15 = sld [smem:[#allocation6_spill]] }
 0x323   : > { %p16_p4 = scmp.ge.s32.totalorder %s19_s30, 10   ;;  %s3961_s9 = sld [smem:[#allocation7_spill]] }
 0x324   : > { %s3962_s21 = smov %s2983_s22  ;;  %s3963_s22 = smov %s2987_s23 }
 0x325   : > { %s3964_s23 = smov %s3142_s19  ;;  %s3965_s24 = smov %s2995_s25 }
 0x326   : > { %s3966_s25 = smov %s3145_s20  ;;  %s3967_s26 = smov %s3007_s28 }
 0x327   : > { %s3968_s27 = smov %s3011_s29  ;;  %18 = sbr.rel (!%p16_p4) target bundleno = 9 (0x9), region = 136 }
 0x328   : > { %s3969_s28 = smov %s3960_s15 }
 0x329   : > { %s3970_s29 = smov %s3961_s9 }
 0x32c   :  { %2459 = vsyncpa [#allocation4], 1 }
 0x32d   :  { %2461 = vsyncpa [#allocation4 + $0x1], 1 }

</bundles_post_ra>
